<compile_context>
chip_gen: v6e
topology: v6e:2x2x1
jax: 0.10.0
libtpu: 0.0.40
codegen_flags: <defaults>
</compile_context>

<pallas_src>
import jax
import jax.numpy as jnp
from jax import lax
from jax.experimental import pallas as pl
from jax.experimental.pallas import tpu as pltpu

# --- sizes (consistent with EMNIST CROP_SIZE=32, num_classes~20) ---
B = 8                    # samples per CoTTA micro-batch (= one PyTorch forward)
IMG = 32                 # spatial
DIN = 1 * IMG * IMG      # flattened image dim = 1024
Z = 32                   # latent / logit dim
K = 20                   # number of source cluster centers
K_PAD = 32               # centers table padded once at init (one-hot matmul friendly)

TG = 16                  # micro-batches per grid step
ROWS = TG * B            # 128 matmul rows per grid step (MXU row occupancy)
NB = 32                  # micro-batches per pallas_call (the streamed "batch of batches")
NSTEPS = NB // TG        # grid size
NROWS = NB * B           # total samples per call

CONSIS = 1.0
CONTRA = 1.0
ALPHA_TEACHER = 0.999
EPS = 1e-8


def _log_softmax(logits):
    m = jnp.max(logits, axis=1, keepdims=True)
    shifted = logits - m
    lse = jnp.log(jnp.sum(jnp.exp(shifted), axis=1, keepdims=True))
    return shifted - lse


def cotta_forward_kernel(x_ref, lp_ref, clu_ref, cent_ref,
                         w_enc_ref, b_enc_ref, w_ema_ref, b_ema_ref,
                         w_dec_ref, b_dec_ref, z_ref, losses_ref):
    x = x_ref[...]                                    # [ROWS, DIN] f32 (kept f32 for losses)
    xb = x.astype(jnp.bfloat16)                       # bf16 only as MXU operand

    # ---- student + EMA-teacher encoder: two dots sharing the same x vregs.
    #      Weights are [Z, DIN]; contract last dims of both (no concat, no lane slice). ----
    trans_rhs = (((1,), (1,)), ((), ()))
    z = lax.dot_general(xb, w_enc_ref[...], trans_rhs,
                        preferred_element_type=jnp.float32) + b_enc_ref[...]     # [ROWS, Z]
    z_ema = lax.dot_general(xb, w_ema_ref[...], trans_rhs,
                            preferred_element_type=jnp.float32) + b_ema_ref[...]

    # ---- decoder in f32 (z not re-quantized) + per-micro-batch recon MSE ----
    recon = jnp.dot(z, w_dec_ref[...],
                    preferred_element_type=jnp.float32) + b_dec_ref[...]          # [ROWS, DIN]
    sq = (recon - x) ** 2
    row_sq = jnp.sum(sq, axis=1, keepdims=True)                                   # [ROWS, 1]
    rec_g = jnp.sum(row_sq.reshape(TG, B, 1), axis=1) / float(B * DIN)            # [TG, 1]

    # ---- fused gather of source_center[last_pre] via one-hot matmul ----
    lp = lp_ref[...]                                                              # [ROWS, 1] i32
    k_iota = lax.broadcasted_iota(jnp.int32, (ROWS, K_PAD), 1)
    onehot = (lp == k_iota).astype(jnp.float32)                                   # [ROWS, K_PAD]
    centers = jnp.dot(onehot, cent_ref[...],
                      preferred_element_type=jnp.float32)                         # [ROWS, Z]

    # ---- similarity weights: 1 / ||z - center||^2 (exact divide, eps-clamped) ----
    diff = z - centers
    dist_sq = jnp.sum(diff * diff, axis=1, keepdims=True)                         # [ROWS, 1]
    sim_w = 1.0 / jnp.maximum(dist_sq, EPS)

    # ---- symmetric softmax entropy + per-micro-batch weighted consistency loss ----
    lsm_z = _log_softmax(z)
    lsm_e = _log_softmax(z_ema)
    ent = (-0.5 * jnp.sum(jnp.exp(lsm_e) * lsm_z, axis=1, keepdims=True)
           - 0.5 * jnp.sum(jnp.exp(lsm_z) * lsm_e, axis=1, keepdims=True))        # [ROWS, 1]
    went = sim_w * ent
    consis_g = CONSIS * jnp.sum(went.reshape(TG, B, 1), axis=1) / float(B)        # [TG, 1]

    # ---- per-micro-batch pairwise cosine similarity + structural MSE loss ----
    inv_norm = lax.rsqrt(jnp.maximum(jnp.sum(z * z, axis=1, keepdims=True), EPS * EPS))
    zn = z * inv_norm                                                             # [ROWS, Z]
    zg = zn.reshape(TG, B, Z)                       # sublane-split: layout-free reshape
    cosg = lax.dot_general(zg, zg, (((2,), (2,)), ((0,), (0,))),
                           preferred_element_type=jnp.float32)                    # [TG, B, B]
    d2 = (clu_ref[...] - cosg) ** 2
    stru_g = CONTRA * jnp.sum(jnp.sum(d2, axis=2), axis=1,
                              keepdims=True) / float(B * B)                       # [TG, 1]

    # ---- outputs: latent tile + one lane-dense loss row per micro-batch ----
    z_ref[...] = z
    lane = lax.broadcasted_iota(jnp.int32, (TG, 128), 1)
    losses_ref[...] = jnp.where(lane == 0, rec_g,
                      jnp.where(lane == 1, consis_g,
                      jnp.where(lane == 2, stru_g, 0.0)))


def ema_update_kernel(w_ema_ref, w_stu_ref, b_ema_ref, b_stu_ref,
                      w_out_ref, b_out_ref, w_bf_out_ref):
    # ema = a*ema + (1-a)*param on lane-dense [Z, DIN] f32 masters (unmasked vld/vst),
    # plus the refreshed bf16 MXU-operand copy of the teacher weight for the next forward.
    a = ALPHA_TEACHER
    w_new = a * w_ema_ref[...] + (1.0 - a) * w_stu_ref[...]
    b_new = a * b_ema_ref[...] + (1.0 - a) * b_stu_ref[...]
    w_out_ref[...] = w_new
    b_out_ref[...] = b_new
    w_bf_out_ref[...] = w_new.astype(jnp.bfloat16)


def cotta_forward(x_img, last_pre, source_center_pad, clu_sim,
                  w_enc_bf, b_enc, w_ema_bf, b_ema, w_dec, b_dec):
    # Wrapper does only free/contiguous reshapes — no gather, no concat, no dtype cast.
    nrows = x_img.shape[0]
    x_flat = x_img.reshape(nrows, -1)
    lp = last_pre.reshape(nrows, 1).astype(jnp.int32)

    inv = lambda t: (0, 0)    # grid-invariant weight blocks: DMA'd once, VMEM-resident
    z, losses = pl.pallas_call(
        cotta_forward_kernel,
        out_shape=(
            jax.ShapeDtypeStruct((NROWS, Z), jnp.float32),
            jax.ShapeDtypeStruct((NB, 128), jnp.float32),   # [rec, consis, stru, 0...] per µ-batch
        ),
        grid=(NSTEPS,),
        in_specs=[
            pl.BlockSpec((ROWS, DIN), lambda t: (t, 0)),      # x tile (streams)
            pl.BlockSpec((ROWS, 1), lambda t: (t, 0)),        # last_pre tile
            pl.BlockSpec((TG, B, B), lambda t: (t, 0, 0)),    # clu_sim tile
            pl.BlockSpec((K_PAD, Z), inv),                    # source centers (resident)
            pl.BlockSpec((Z, DIN), inv),                      # w_enc bf16 (resident)
            pl.BlockSpec((1, Z), inv),                        # b_enc
            pl.BlockSpec((Z, DIN), inv),                      # w_ema bf16 (resident)
            pl.BlockSpec((1, Z), inv),                        # b_ema
            pl.BlockSpec((Z, DIN), inv),                      # w_dec f32 (resident)
            pl.BlockSpec((1, DIN), inv),                      # b_dec
        ],
        out_specs=(
            pl.BlockSpec((ROWS, Z), lambda t: (t, 0)),
            pl.BlockSpec((TG, 128), lambda t: (t, 0)),
        ),
        compiler_params=pltpu.CompilerParams(
            dimension_semantics=("parallel",)),               # v7x: shard grid over both TCs
    )(x_flat, lp, clu_sim, source_center_pad,
      w_enc_bf, b_enc, w_ema_bf, b_ema, w_dec, b_dec)
    return z, losses[:, 0], losses[:, 1], losses[:, 2]


def update_ema(w_ema, w_enc, b_ema, b_enc):
    # Single pallas_call: in-place EMA masters (P8 aliasing) + cached bf16 teacher weight.
    vmem = pl.BlockSpec(memory_space=pltpu.MemorySpace.VMEM)
    return pl.pallas_call(
        ema_update_kernel,
        out_shape=(jax.ShapeDtypeStruct(w_ema.shape, jnp.float32),
                   jax.ShapeDtypeStruct(b_ema.shape, jnp.float32),
                   jax.ShapeDtypeStruct(w_ema.shape, jnp.bfloat16)),
        in_specs=[vmem] * 4,
        out_specs=(vmem, vmem, vmem),
        input_output_aliases={0: 0, 2: 1},
    )(w_ema, w_enc, b_ema, b_enc)


if __name__ == "__main__":
    key = jax.random.PRNGKey(0)
    ks = jax.random.split(key, 10)

    # CoTTA input tuple x = (images, last predictions, source cluster centers, cluster sim)
    # for NB micro-batches of B images each (NCHW like PyTorch).
    x_img = jax.random.uniform(ks[0], (NROWS, 1, IMG, IMG), jnp.float32)
    last_pre = jax.random.randint(ks[1], (NROWS,), 0, K)
    source_center = jax.random.normal(ks[2], (K, Z), jnp.float32)
    source_center_pad = jnp.zeros((K_PAD, Z), jnp.float32).at[:K].set(source_center)
    clu_sim = jax.random.uniform(ks[3], (NB, B, B), jnp.float32)

    # Model / EMA-teacher parameters.  Encoder weights stored [Z, DIN] (PyTorch Linear
    # [out,in] layout): DIN sits on the lane dim, so matmuls and EMA update are lane-dense.
    w_enc = 0.02 * jax.random.normal(ks[4], (Z, DIN), jnp.float32)
    b_enc = 0.01 * jax.random.normal(ks[5], (1, Z), jnp.float32)
    w_ema = 0.02 * jax.random.normal(ks[6], (Z, DIN), jnp.float32)
    b_ema = 0.01 * jax.random.normal(ks[7], (1, Z), jnp.float32)
    w_dec = 0.02 * jax.random.normal(ks[8], (Z, DIN), jnp.float32)   # decoder kept f32
    b_dec = jnp.zeros((1, DIN), jnp.float32)

    # One-time bf16 MXU-operand copies (NOT per step).  The teacher copy is refreshed by
    # the EMA kernel each step.  TODO(synk): with a real optimizer step, that step's kernel
    # would also refresh w_enc_bf; here the student weights are static (no backward pass).
    w_enc_bf = w_enc.astype(jnp.bfloat16)
    w_ema_bf = w_ema.astype(jnp.bfloat16)

    # --- TTA step 1: fused forward (losses + z), then EMA teacher update ---
    z, rec, consis, stru = cotta_forward(
        x_img, last_pre, source_center_pad, clu_sim,
        w_enc_bf, b_enc, w_ema_bf, b_ema, w_dec, b_dec)
    w_ema, b_ema, w_ema_bf = update_ema(w_ema, w_enc, b_ema, b_enc)

    # --- TTA step 2: reuses the cached bf16 teacher weights from the EMA kernel;
    #     no concat / cast / gather ops outside the two pallas_calls per step ---
    z2, rec2, consis2, stru2 = cotta_forward(
        x_img, last_pre, source_center_pad, clu_sim,
        w_enc_bf, b_enc, w_ema_bf, b_ema, w_dec, b_dec)
    w_ema, b_ema, w_ema_bf = update_ema(w_ema, w_enc, b_ema, b_enc)

    jax.block_until_ready((z, rec, consis, stru,
                           z2, rec2, consis2, stru2,
                           w_ema, b_ema, w_ema_bf))
    print("KERNEL_OK")
</pallas_src>

<mosaic_0001>
module attributes {stable_mosaic.version = 11 : i64} {
  func.func @cotta_forward_kernel(%arg0: i32, %arg1: memref<128x1024xf32, #tpu.memory_space<vmem>>, %arg2: memref<128x1xi32, #tpu.memory_space<vmem>>, %arg3: memref<16x8x8xf32, #tpu.memory_space<vmem>>, %arg4: memref<32x32xf32, #tpu.memory_space<vmem>>, %arg5: memref<32x1024xbf16, #tpu.memory_space<vmem>>, %arg6: memref<1x32xf32, #tpu.memory_space<vmem>>, %arg7: memref<32x1024xbf16, #tpu.memory_space<vmem>>, %arg8: memref<1x32xf32, #tpu.memory_space<vmem>>, %arg9: memref<32x1024xf32, #tpu.memory_space<vmem>>, %arg10: memref<1x1024xf32, #tpu.memory_space<vmem>>, %arg11: memref<128x32xf32, #tpu.memory_space<vmem>>, %arg12: memref<16x128xf32, #tpu.memory_space<vmem>>) attributes {dimension_semantics = [#tpu.dimension_semantics<parallel>], iteration_bounds = array<i64: 2>, scalar_prefetch = 0 : i64, scratch_operands = 0 : i64, tpu.core_type = #tpu.core_type<tc>, window_params = [{transform_indices = @transform_0, window_bounds = array<i64: 128, 1024>}, {transform_indices = @transform_1, window_bounds = array<i64: 128, 1>}, {transform_indices = @transform_2, window_bounds = array<i64: 16, 8, 8>}, {pipeline_mode = #tpu.pipeline_mode<synchronous>, transform_indices = @transform_3, window_bounds = array<i64: 32, 32>}, {pipeline_mode = #tpu.pipeline_mode<synchronous>, transform_indices = @transform_4, window_bounds = array<i64: 32, 1024>}, {pipeline_mode = #tpu.pipeline_mode<synchronous>, transform_indices = @transform_5, window_bounds = array<i64: 1, 32>}, {pipeline_mode = #tpu.pipeline_mode<synchronous>, transform_indices = @transform_6, window_bounds = array<i64: 32, 1024>}, {pipeline_mode = #tpu.pipeline_mode<synchronous>, transform_indices = @transform_7, window_bounds = array<i64: 1, 32>}, {pipeline_mode = #tpu.pipeline_mode<synchronous>, transform_indices = @transform_8, window_bounds = array<i64: 32, 1024>}, {pipeline_mode = #tpu.pipeline_mode<synchronous>, transform_indices = @transform_9, window_bounds = array<i64: 1, 1024>}, {transform_indices = @transform_10, window_bounds = array<i64: 128, 32>}, {transform_indices = @transform_11, window_bounds = array<i64: 16, 128>}]} {
    %c0 = arith.constant 0 : index
    %c0_0 = arith.constant 0 : index
    %0 = vector.load %arg1[%c0, %c0_0] : memref<128x1024xf32, #tpu.memory_space<vmem>>, vector<128x1024xf32>
    %1 = arith.truncf %0 : vector<128x1024xf32> to vector<128x1024xbf16>
    %c0_1 = arith.constant 0 : index
    %c0_2 = arith.constant 0 : index
    %2 = vector.load %arg5[%c0_1, %c0_2] : memref<32x1024xbf16, #tpu.memory_space<vmem>>, vector<32x1024xbf16>
    %cst = arith.constant dense<0.000000e+00> : vector<128x32xf32>
    %3 = tpu.matmul %1, %2, %cst {dimension_numbers = #tpu.dot_dimension_numbers<[1], [1], [0], [0], [0, 0, 1, 0], [], []>} : vector<128x1024xbf16>, vector<32x1024xbf16>, vector<128x32xf32> -> vector<128x32xf32>
    %c0_3 = arith.constant 0 : index
    %c0_4 = arith.constant 0 : index
    %4 = vector.load %arg6[%c0_3, %c0_4] : memref<1x32xf32, #tpu.memory_space<vmem>>, vector<1x32xf32>
    %5 = vector.broadcast %4 : vector<1x32xf32> to vector<128x32xf32>
    %6 = arith.addf %3, %5 : vector<128x32xf32>
    %c0_5 = arith.constant 0 : index
    %c0_6 = arith.constant 0 : index
    %7 = vector.load %arg7[%c0_5, %c0_6] : memref<32x1024xbf16, #tpu.memory_space<vmem>>, vector<32x1024xbf16>
    %cst_7 = arith.constant dense<0.000000e+00> : vector<128x32xf32>
    %8 = tpu.matmul %1, %7, %cst_7 {dimension_numbers = #tpu.dot_dimension_numbers<[1], [1], [0], [0], [0, 0, 1, 0], [], []>} : vector<128x1024xbf16>, vector<32x1024xbf16>, vector<128x32xf32> -> vector<128x32xf32>
    %c0_8 = arith.constant 0 : index
    %c0_9 = arith.constant 0 : index
    %9 = vector.load %arg8[%c0_8, %c0_9] : memref<1x32xf32, #tpu.memory_space<vmem>>, vector<1x32xf32>
    %10 = vector.broadcast %9 : vector<1x32xf32> to vector<128x32xf32>
    %11 = arith.addf %8, %10 : vector<128x32xf32>
    %c0_10 = arith.constant 0 : index
    %c0_11 = arith.constant 0 : index
    %12 = vector.load %arg9[%c0_10, %c0_11] : memref<32x1024xf32, #tpu.memory_space<vmem>>, vector<32x1024xf32>
    %cst_12 = arith.constant dense<0.000000e+00> : vector<128x1024xf32>
    %13 = tpu.matmul %6, %12, %cst_12 {dimension_numbers = #tpu.dot_dimension_numbers<[1], [0], [0], [1], [0, 0, 1, 1], [], []>} : vector<128x32xf32>, vector<32x1024xf32>, vector<128x1024xf32> -> vector<128x1024xf32>
    %c0_13 = arith.constant 0 : index
    %c0_14 = arith.constant 0 : index
    %14 = vector.load %arg10[%c0_13, %c0_14] : memref<1x1024xf32, #tpu.memory_space<vmem>>, vector<1x1024xf32>
    %15 = vector.broadcast %14 : vector<1x1024xf32> to vector<128x1024xf32>
    %16 = arith.addf %13, %15 : vector<128x1024xf32>
    %17 = arith.subf %16, %0 : vector<128x1024xf32>
    %18 = arith.mulf %17, %17 : vector<128x1024xf32>
    %cst_15 = arith.constant dense<0.000000e+00> : vector<128xf32>
    %19 = vector.multi_reduction <add>, %18, %cst_15 [1] : vector<128x1024xf32> to vector<128xf32>
    %20 = vector.shape_cast %19 : vector<128xf32> to vector<128x1xf32>
    %21 = vector.shape_cast %20 : vector<128x1xf32> to vector<16x8x1xf32>
    %cst_16 = arith.constant dense<0.000000e+00> : vector<16x1xf32>
    %22 = vector.multi_reduction <add>, %21, %cst_16 [1] : vector<16x8x1xf32> to vector<16x1xf32>
    %cst_17 = arith.constant 8.192000e+03 : f32
    %23 = vector.broadcast %cst_17 : f32 to vector<16x1xf32>
    %24 = arith.divf %22, %23 : vector<16x1xf32>
    %c0_18 = arith.constant 0 : index
    %c0_19 = arith.constant 0 : index
    %25 = vector.load %arg2[%c0_18, %c0_19] : memref<128x1xi32, #tpu.memory_space<vmem>>, vector<128x1xi32>
    %26 = tpu.iota {dimensions = array<i32: 1>} : vector<128x32xi32>
    %27 = vector.broadcast %25 : vector<128x1xi32> to vector<128x32xi32>
    %28 = arith.cmpi eq, %27, %26 : vector<128x32xi32>
    %29 = arith.extui %28 : vector<128x32xi1> to vector<128x32xi32>
    %30 = arith.sitofp %29 : vector<128x32xi32> to vector<128x32xf32>
    %c0_20 = arith.constant 0 : index
    %c0_21 = arith.constant 0 : index
    %31 = vector.load %arg4[%c0_20, %c0_21] : memref<32x32xf32, #tpu.memory_space<vmem>>, vector<32x32xf32>
    %cst_22 = arith.constant dense<0.000000e+00> : vector<128x32xf32>
    %32 = tpu.matmul %30, %31, %cst_22 {dimension_numbers = #tpu.dot_dimension_numbers<[1], [0], [0], [1], [0, 0, 1, 1], [], []>} : vector<128x32xf32>, vector<32x32xf32>, vector<128x32xf32> -> vector<128x32xf32>
    %33 = arith.subf %6, %32 : vector<128x32xf32>
    %34 = arith.mulf %33, %33 : vector<128x32xf32>
    %cst_23 = arith.constant dense<0.000000e+00> : vector<128xf32>
    %35 = vector.multi_reduction <add>, %34, %cst_23 [1] : vector<128x32xf32> to vector<128xf32>
    %36 = vector.shape_cast %35 : vector<128xf32> to vector<128x1xf32>
    %cst_24 = arith.constant 9.99999993E-9 : f32
    %37 = vector.broadcast %cst_24 : f32 to vector<128x1xf32>
    %38 = arith.maximumf %36, %37 : vector<128x1xf32>
    %cst_25 = arith.constant 1.000000e+00 : f32
    %39 = vector.broadcast %cst_25 : f32 to vector<128x1xf32>
    %40 = arith.divf %39, %38 : vector<128x1xf32>
    %cst_26 = arith.constant dense<0xFF800000> : vector<128xf32>
    %41 = vector.multi_reduction <maximumf>, %6, %cst_26 [1] : vector<128x32xf32> to vector<128xf32>
    %42 = vector.shape_cast %41 : vector<128xf32> to vector<128x1xf32>
    %43 = vector.broadcast %42 : vector<128x1xf32> to vector<128x32xf32>
    %44 = arith.subf %6, %43 : vector<128x32xf32>
    %45 = math.exp %44 : vector<128x32xf32>
    %cst_27 = arith.constant dense<0.000000e+00> : vector<128xf32>
    %46 = vector.multi_reduction <add>, %45, %cst_27 [1] : vector<128x32xf32> to vector<128xf32>
    %47 = vector.shape_cast %46 : vector<128xf32> to vector<128x1xf32>
    %48 = math.log %47 : vector<128x1xf32>
    %49 = vector.broadcast %48 : vector<128x1xf32> to vector<128x32xf32>
    %50 = arith.subf %44, %49 : vector<128x32xf32>
    %cst_28 = arith.constant dense<0xFF800000> : vector<128xf32>
    %51 = vector.multi_reduction <maximumf>, %11, %cst_28 [1] : vector<128x32xf32> to vector<128xf32>
    %52 = vector.shape_cast %51 : vector<128xf32> to vector<128x1xf32>
    %53 = vector.broadcast %52 : vector<128x1xf32> to vector<128x32xf32>
    %54 = arith.subf %11, %53 : vector<128x32xf32>
    %55 = math.exp %54 : vector<128x32xf32>
    %cst_29 = arith.constant dense<0.000000e+00> : vector<128xf32>
    %56 = vector.multi_reduction <add>, %55, %cst_29 [1] : vector<128x32xf32> to vector<128xf32>
    %57 = vector.shape_cast %56 : vector<128xf32> to vector<128x1xf32>
    %58 = math.log %57 : vector<128x1xf32>
    %59 = vector.broadcast %58 : vector<128x1xf32> to vector<128x32xf32>
    %60 = arith.subf %54, %59 : vector<128x32xf32>
    %61 = math.exp %60 : vector<128x32xf32>
    %62 = arith.mulf %61, %50 : vector<128x32xf32>
    %cst_30 = arith.constant dense<0.000000e+00> : vector<128xf32>
    %63 = vector.multi_reduction <add>, %62, %cst_30 [1] : vector<128x32xf32> to vector<128xf32>
    %64 = vector.shape_cast %63 : vector<128xf32> to vector<128x1xf32>
    %cst_31 = arith.constant -5.000000e-01 : f32
    %65 = vector.broadcast %cst_31 : f32 to vector<128x1xf32>
    %66 = arith.mulf %65, %64 : vector<128x1xf32>
    %67 = math.exp %50 : vector<128x32xf32>
    %68 = arith.mulf %67, %60 : vector<128x32xf32>
    %cst_32 = arith.constant dense<0.000000e+00> : vector<128xf32>
    %69 = vector.multi_reduction <add>, %68, %cst_32 [1] : vector<128x32xf32> to vector<128xf32>
    %70 = vector.shape_cast %69 : vector<128xf32> to vector<128x1xf32>
    %cst_33 = arith.constant 5.000000e-01 : f32
    %71 = vector.broadcast %cst_33 : f32 to vector<128x1xf32>
    %72 = arith.mulf %71, %70 : vector<128x1xf32>
    %73 = arith.subf %66, %72 : vector<128x1xf32>
    %74 = arith.mulf %40, %73 : vector<128x1xf32>
    %75 = vector.shape_cast %74 : vector<128x1xf32> to vector<16x8x1xf32>
    %cst_34 = arith.constant dense<0.000000e+00> : vector<16x1xf32>
    %76 = vector.multi_reduction <add>, %75, %cst_34 [1] : vector<16x8x1xf32> to vector<16x1xf32>
    %cst_35 = arith.constant 1.000000e+00 : f32
    %77 = vector.broadcast %cst_35 : f32 to vector<16x1xf32>
    %78 = arith.mulf %77, %76 : vector<16x1xf32>
    %cst_36 = arith.constant 8.000000e+00 : f32
    %79 = vector.broadcast %cst_36 : f32 to vector<16x1xf32>
    %80 = arith.divf %78, %79 : vector<16x1xf32>
    %81 = arith.mulf %6, %6 : vector<128x32xf32>
    %cst_37 = arith.constant dense<0.000000e+00> : vector<128xf32>
    %82 = vector.multi_reduction <add>, %81, %cst_37 [1] : vector<128x32xf32> to vector<128xf32>
    %83 = vector.shape_cast %82 : vector<128xf32> to vector<128x1xf32>
    %cst_38 = arith.constant 1.000000e-16 : f32
    %84 = vector.broadcast %cst_38 : f32 to vector<128x1xf32>
    %85 = arith.maximumf %83, %84 : vector<128x1xf32>
    %86 = math.rsqrt %85 : vector<128x1xf32>
    %87 = vector.broadcast %86 : vector<128x1xf32> to vector<128x32xf32>
    %88 = arith.mulf %6, %87 : vector<128x32xf32>
    %89 = vector.shape_cast %88 : vector<128x32xf32> to vector<16x8x32xf32>
    %cst_39 = arith.constant dense<0.000000e+00> : vector<16x8x8xf32>
    %90 = tpu.matmul %89, %89, %cst_39 {dimension_numbers = #tpu.dot_dimension_numbers<[2], [2], [1], [1], [0, 0, 0, 1, 1, 1], [0], [0]>} : vector<16x8x32xf32>, vector<16x8x32xf32>, vector<16x8x8xf32> -> vector<16x8x8xf32>
    %c0_40 = arith.constant 0 : index
    %c0_41 = arith.constant 0 : index
    %c0_42 = arith.constant 0 : index
    %91 = vector.load %arg3[%c0_40, %c0_41, %c0_42] : memref<16x8x8xf32, #tpu.memory_space<vmem>>, vector<16x8x8xf32>
    %92 = arith.subf %91, %90 : vector<16x8x8xf32>
    %93 = arith.mulf %92, %92 : vector<16x8x8xf32>
    %cst_43 = arith.constant dense<0.000000e+00> : vector<16x8xf32>
    %94 = vector.multi_reduction <add>, %93, %cst_43 [2] : vector<16x8x8xf32> to vector<16x8xf32>
    %cst_44 = arith.constant dense<0.000000e+00> : vector<16xf32>
    %95 = vector.multi_reduction <add>, %94, %cst_44 [1] : vector<16x8xf32> to vector<16xf32>
    %96 = vector.shape_cast %95 : vector<16xf32> to vector<16x1xf32>
    %cst_45 = arith.constant 1.000000e+00 : f32
    %97 = vector.broadcast %cst_45 : f32 to vector<16x1xf32>
    %98 = arith.mulf %97, %96 : vector<16x1xf32>
    %cst_46 = arith.constant 6.400000e+01 : f32
    %99 = vector.broadcast %cst_46 : f32 to vector<16x1xf32>
    %100 = arith.divf %98, %99 : vector<16x1xf32>
    %c0_47 = arith.constant 0 : index
    %c0_48 = arith.constant 0 : index
    %101 = vector.load %arg11[%c0_47, %c0_48] : memref<128x32xf32, #tpu.memory_space<vmem>>, vector<128x32xf32>
    tpu.vector_store %arg11[%c0_47, %c0_48], %6 {strides = array<i32>} : memref<128x32xf32, #tpu.memory_space<vmem>>, vector<128x32xf32>,
    %102 = tpu.iota {dimensions = array<i32: 1>} : vector<16x128xi32>
    %c0_i32 = arith.constant 0 : i32
    %103 = vector.broadcast %c0_i32 : i32 to vector<16x128xi32>
    %104 = arith.cmpi eq, %102, %103 : vector<16x128xi32>
    %c1_i32 = arith.constant 1 : i32
    %105 = vector.broadcast %c1_i32 : i32 to vector<16x128xi32>
    %106 = arith.cmpi eq, %102, %105 : vector<16x128xi32>
    %c2_i32 = arith.constant 2 : i32
    %107 = vector.broadcast %c2_i32 : i32 to vector<16x128xi32>
    %108 = arith.cmpi eq, %102, %107 : vector<16x128xi32>
    %cst_49 = arith.constant 0.000000e+00 : f32
    %109 = vector.shape_cast %100 : vector<16x1xf32> to vector<16x1xf32>
    %110 = vector.broadcast %109 : vector<16x1xf32> to vector<16x128xf32>
    %111 = vector.broadcast %cst_49 : f32 to vector<16x128xf32>
    %112 = arith.select %108, %110, %111 : vector<16x128xi1>, vector<16x128xf32>
    %113 = vector.shape_cast %80 : vector<16x1xf32> to vector<16x1xf32>
    %114 = vector.broadcast %113 : vector<16x1xf32> to vector<16x128xf32>
    %115 = arith.select %106, %114, %112 : vector<16x128xi1>, vector<16x128xf32>
    %116 = vector.shape_cast %24 : vector<16x1xf32> to vector<16x1xf32>
    %117 = vector.broadcast %116 : vector<16x1xf32> to vector<16x128xf32>
    %118 = arith.select %104, %117, %115 : vector<16x128xi1>, vector<16x128xf32>
    %c0_50 = arith.constant 0 : index
    %c0_51 = arith.constant 0 : index
    %119 = vector.load %arg12[%c0_50, %c0_51] : memref<16x128xf32, #tpu.memory_space<vmem>>, vector<16x128xf32>
    tpu.vector_store %arg12[%c0_50, %c0_51], %118 {strides = array<i32>} : memref<16x128xf32, #tpu.memory_space<vmem>>, vector<16x128xf32>,
    return
  }
  func.func @transform_0(%arg0: i32) -> (i32, i32) {
    %c0_i32 = arith.constant 0 : i32
    %c0_i32_0 = arith.constant 0 : i32
    return %arg0, %c0_i32 : i32, i32
  }
  func.func @transform_1(%arg0: i32) -> (i32, i32) {
    %c0_i32 = arith.constant 0 : i32
    %c0_i32_0 = arith.constant 0 : i32
    return %arg0, %c0_i32 : i32, i32
  }
  func.func @transform_2(%arg0: i32) -> (i32, i32, i32) {
    %c0_i32 = arith.constant 0 : i32
    %c0_i32_0 = arith.constant 0 : i32
    %c0_i32_1 = arith.constant 0 : i32
    return %arg0, %c0_i32, %c0_i32_0 : i32, i32, i32
  }
  func.func @transform_3(%arg0: i32) -> (i32, i32) {
    %c0_i32 = arith.constant 0 : i32
    %c0_i32_0 = arith.constant 0 : i32
    %c0_i32_1 = arith.constant 0 : i32
    return %c0_i32, %c0_i32_0 : i32, i32
  }
  func.func @transform_4(%arg0: i32) -> (i32, i32) {
    %c0_i32 = arith.constant 0 : i32
    %c0_i32_0 = arith.constant 0 : i32
    %c0_i32_1 = arith.constant 0 : i32
    return %c0_i32, %c0_i32_0 : i32, i32
  }
  func.func @transform_5(%arg0: i32) -> (i32, i32) {
    %c0_i32 = arith.constant 0 : i32
    %c0_i32_0 = arith.constant 0 : i32
    %c0_i32_1 = arith.constant 0 : i32
    return %c0_i32, %c0_i32_0 : i32, i32
  }
  func.func @transform_6(%arg0: i32) -> (i32, i32) {
    %c0_i32 = arith.constant 0 : i32
    %c0_i32_0 = arith.constant 0 : i32
    %c0_i32_1 = arith.constant 0 : i32
    return %c0_i32, %c0_i32_0 : i32, i32
  }
  func.func @transform_7(%arg0: i32) -> (i32, i32) {
    %c0_i32 = arith.constant 0 : i32
    %c0_i32_0 = arith.constant 0 : i32
    %c0_i32_1 = arith.constant 0 : i32
    return %c0_i32, %c0_i32_0 : i32, i32
  }
  func.func @transform_8(%arg0: i32) -> (i32, i32) {
    %c0_i32 = arith.constant 0 : i32
    %c0_i32_0 = arith.constant 0 : i32
    %c0_i32_1 = arith.constant 0 : i32
    return %c0_i32, %c0_i32_0 : i32, i32
  }
  func.func @transform_9(%arg0: i32) -> (i32, i32) {
    %c0_i32 = arith.constant 0 : i32
    %c0_i32_0 = arith.constant 0 : i32
    %c0_i32_1 = arith.constant 0 : i32
    return %c0_i32, %c0_i32_0 : i32, i32
  }
  func.func @transform_10(%arg0: i32) -> (i32, i32) {
    %c0_i32 = arith.constant 0 : i32
    %c0_i32_0 = arith.constant 0 : i32
    return %arg0, %c0_i32 : i32, i32
  }
  func.func @transform_11(%arg0: i32) -> (i32, i32) {
    %c0_i32 = arith.constant 0 : i32
    %c0_i32_0 = arith.constant 0 : i32
    return %arg0, %c0_i32 : i32, i32
  }
}

</mosaic_0001>

<bundles_post_ra>
// kernel: tpu_custom_call.1
= control target key start
LH: loop header
LB: loop body
LE: loop exit
PB: predicated region body
PF: predicated region fallthrough
CT: control target
= control target key end

     0   :  { %s9967_s0 = inlined_call_operand.hbm [shape: f32[256,1024], index: 0, kind: input, shape index: {}]   ;;  %s9968_s1 = inlined_call_operand.vmem [shape: s32[256,1], index: 1, kind: input, shape index: {}]   ;;  %s9969_s2 = inlined_call_operand.vmem [shape: f32[32,8,8], index: 2, kind: input, shape index: {}]   ;;  %s9970_s3 = inlined_call_operand.hbm [shape: f32[32,32], index: 3, kind: input, shape index: {}]   ;;  %s9971_s4 = inlined_call_operand.vmem [shape: bf16[32,1024], index: 4, kind: input, shape index: {}]   ;;  %s9972_s5 = inlined_call_operand.vmem [shape: f32[1,32], index: 5, kind: input, shape index: {}]   ;;  %s9973_s6 = inlined_call_operand.vmem [shape: bf16[32,1024], index: 6, kind: input, shape index: {}]   ;;  %s9974_s7 = inlined_call_operand.hbm [shape: f32[1,32], index: 7, kind: input, shape index: {}]   ;;  %s9975_s8 = inlined_call_operand.vmem [shape: f32[32,1024], index: 8, kind: input, shape index: {}]   ;;  %s9976_s9 = inlined_call_operand.vmem [shape: f32[1,1024], index: 9, kind: input, shape index: {}]   ;;  %s9977_s10 = inlined_call_operand.vmem [shape: f32[256,32], index: 10, kind: output, shape index: {0}]   ;;  %s9978_s11 = inlined_call_operand.hbm [shape: f32[32,128], index: 11, kind: output, shape index: {1}]  }
   0x1   :  { %10065 = sst [smem:[#allocation95_spill]] %s9970_s3 }
   0x2   :  { %10066 = sst [smem:[#allocation96_spill]] %s9974_s7 }
   0x3   :  { %17 = vsyncpa [#allocation3], 0 }
   0x4   :  { %19 = vsyncpa [#allocation3 + $0x1], 0 }
   0x5   :  { %20 = vsyncpa [#allocation6], 0 }
   0x6   :  { %21 = vsyncpa [#allocation4], 0 }
   0x7   :  { %23 = vsyncpa [#allocation4 + $0x1], 0  ;;  %s6923_s17 = smov 0   ;;  %s6925_s18 = smov 0  }
   0x8   :  { %s6927_s19 = smov 0   ;;  %s6929_s20 = smov 0  }
   0x9 LB: > { %10067 = sst [smem:[#allocation12_spill]] %s6844_s19  ;;  %s6944_s21 = sadd.s32 4294967295, %s6848_s20   ;;  %s6848_s20 = sphi %s6929_s20, %s10329_s20   ;;  %s6844_s19 = sphi %s6927_s19, %s10331_s19   ;;  %s6840_s18 = sphi %s6925_s18, %s10333_s18   ;;  %s6836_s17 = sphi %s6923_s17, %s10332_s17  }
   0xa   : > { %s5884_s22 = sadd.s32 4294967294, %s6848_s20   ;;  %p49_p0 = scmp.ne.s32.totalorder %s6840_s18, %s6836_s17 }
   0xb   : > { %p9979_p1 = scmp.eq.s32.totalorder %s6944_s21, 0  ;;  %p304_p3 = scmp.eq.s32.totalorder %s5884_s22, 1 }
   0xc   : > { %p5885_p5 = scmp.ge.s32.totalorder %s6848_s20, 1  ;;  %p311_p7 = scmp.lt.s32.totalorder %s6848_s20, 3 }
   0xd   : > { %p6953_p4 = por %p9979_p1, %p49_p0  ;;  %p6958_p6 = por %p304_p3, %p49_p0 }
   0xe   : > { %p6963_p8 = pnand %p5885_p5, %p311_p7  ;;  %s6850_s26 = smov [#allocation5]  }
   0xf   : > { %s10068_s23 = scalar_select %p6953_p4, 1, 0 }
  0x10   : > { %s10069_s24 = scalar_select %p6958_p6, 1, 0 }
  0x11   : > { %s10070_s25 = scalar_select %p6963_p8, 1, 0 }
  0x12   : > { %s323_s27 = sshll.u32 %s6850_s26, 4  ;;  %p6250_p9 = pneg %p6963_p8  ;;  %s324_s27 = int_to_ptr.vmem [resolvable:$true] %s323_s27 }
  0x13   : > { %s6851_s29 = smov [#allocation7]   ;;  %s6711_s12 = scalar_lea.vmem %s324_s27, 512 }
  0x14   : > { %p6972_p11 = pnand %p6250_p9, %p9979_p1  ;;  %s346_s30 = sshll.u32 %s6851_s29, 4  ;;  %s347_s30 = int_to_ptr.vmem [resolvable:$true] %s346_s30 }
  0x15   : > { %p6712_p13 = scmp.ne.s32.totalorder %s324_s27, %s6711_s12  ;;  %p6719_p5 = scmp.lt.s32.totalorder %s324_s27, %s324_s27 }
  0x16   : > { %p6702_p12 = pneg %p6972_p11  ;;  %p6720_p7 = scmp.lt.s32.totalorder %s6711_s12, %s6711_s12 }
  0x18   : > { %p6714_p0 = pnand %p6712_p13, %p6702_p12  ;;  %p6721_p10 = por %p6720_p7, %p6719_p5 }
  0x1a   : > { %p6715_p3 = pneg %p6714_p0 }
  0x1c   : > { %p6722_p9 = pnand %p6721_p10, %p6715_p3 }
  0x1e   : > { %6725 = shalt.err (!%p6722_p9)
}
  0x1f   : > { %s6852_s13 = smov 128   ;;  %s6853_s14 = smov 8  }
  0x20   : > { %s10072_s3 = sld [smem:[#allocation95_spill]]  ;;  %s6737_s22 = scalar_lea.vmem %s347_s30, 16 }
  0x21   : > { %p6738_p1 = scmp.ne.s32.totalorder %s347_s30, %s6737_s22  ;;  %s6744_s26 = scalar_lea.vmem %s347_s30, 32 }
  0x22   : > { %p6745_p2 = scmp.lt.s32.totalorder %s347_s30, %s347_s30  ;;  %p6746_p5 = scmp.lt.s32.totalorder %s6744_s26, %s6737_s22 }
  0x23   : > { %p6740_p13 = pnand %p6738_p1, %p6702_p12 }
  0x24   : > { %p6747_p10 = por %p6746_p5, %p6745_p2 }
  0x25   : > { %p6741_p0 = pneg %p6740_p13 }
  0x26   : > { %6253 = dma.hbm_to_vmem [thread:$0]  (!%p6972_p11), %s10072_s3, 512, %s324_s27, [#allocation6], %s6852_s13, %s6852_s13, %s6853_s14  }
  0x27   : > { %p6748_p3 = pnand %p6747_p10, %p6741_p0 }
  0x29   : > { %6751 = shalt.err (!%p6748_p3)
}
  0x2a   : > { %s10073_s7 = sld [smem:[#allocation96_spill]]  ;;  %s6995_s27 = sadd.s32 1, %s6848_s20  }
  0x2b   : > { %10074 = sst [smem:[#allocation13_spill]] %s6995_s27  ;;  %s36_s13 = sadd.s32 1, %s6844_s19 }
  0x2c   : > { %s33_s28 = ssub.s32 %s6848_s20, %s6995_s27  ;;  %p43_p1 = scmp.ne.s32.totalorder %s6844_s19, %s6840_s18 }
  0x2d   : > { %p34_p2 = scmp.eq.s32.totalorder %s33_s28, 0  ;;  %p44_p12 = scmp.eq.s32.totalorder %s6848_s20, 0 }
  0x2e   : > { %p10075_p7 = scmp.eq.s32.totalorder %s6944_s21, 1  ;;  %p6267_p13 = scmp.lt.s32.totalorder %s6848_s20, 2 }
  0x2f   : > { %s7011_s15 = scalar_select %p34_p2, %s6844_s19, %s36_s13  }
  0x30   : > { %6256 = dma.hbm_to_vmem [thread:$0]  (!%p6972_p11), %s10073_s7, 16, %s347_s30, [#allocation6]  }
  0x31   : > { %p7005_p9 = por %p10075_p7, %p43_p1  ;;  %10077 = sst [smem:[#allocation14_spill]] %s7011_s15 }
  0x32   : > { %p45_p0 = por %p44_p12, %p43_p1  ;;  %s363_s16 = sand.u32 1, %s6844_s19  }
  0x33   : > { %s10076_s14 = scalar_select %p7005_p9, 1, 0 }
  0x34   : > { %s5889_s22 = sshll.u32 %s363_s16, 10  ;;  %s6072_s30 = sshll.u32 %s6848_s20, 14 }
  0x35   : > { %s7018_s12 = scalar_lea.hbm %s9967_s0, %s6072_s30  ;;  %s367_s28 = scalar_lea.vmem [#allocation2], %s5889_s22 }
  0x36   : > { %s375_s3 = sshll.u32 %s367_s28, 4  ;;  %p7022_p11 = pnand %p6267_p13, %p45_p0  ;;  %s7020_s3 = int_to_ptr.vmem [resolvable:$true] %s375_s3 }
  0x37   : > { %s7026_s13 = scalar_lea.sflag [#allocation3], %s363_s16  ;;  %s6752_s15 = scalar_lea.hbm %s7018_s12, 16384 }
  0x38   : > { %p6753_p5 = scmp.ne.s32.totalorder %s7018_s12, %s6752_s15  ;;  %p6754_p10 = pneg %p7022_p11 }
  0x39   : > { %s6757_s22 = scalar_lea.hbm %s9967_s0, 32768  ;;  %p6758_p2 = scmp.lt.s32.totalorder %s7018_s12, %s9967_s0 }
  0x3a   : > { %p6755_p3 = pnand %p6754_p10, %p6753_p5  ;;  %p6759_p12 = scmp.lt.s32.totalorder %s6757_s22, %s6752_s15 }
  0x3c   : > { %p6756_p1 = pneg %p6755_p3  ;;  %p6760_p7 = por %p6759_p12, %p6758_p2 }
  0x3e   : > { %p6761_p13 = pnand %p6760_p7, %p6756_p1 }
  0x40   : > { %6764 = shalt.err (!%p6761_p13)
}
  0x41   : > { %s6765_s16 = scalar_lea.vmem %s7020_s3, 16384  ;;  %s6854_s19 = smov [#allocation2]  }
  0x42   : > { %p6766_p0 = scmp.ne.s32.totalorder %s7020_s3, %s6765_s16  ;;  %s6770_s27 = sshll.u32 %s6854_s19, 4  ;;  %s6771_s27 = int_to_ptr.vmem [resolvable:$false] %s6770_s27 }
  0x43   : > { %s6772_s30 = scalar_lea.vmem %s6771_s27, 32768  ;;  %p6773_p3 = scmp.lt.s32.totalorder %s7020_s3, %s6771_s27 }
  0x44   : > { %p6768_p6 = pnand %p6766_p0, %p6754_p10  ;;  %p6774_p9 = scmp.lt.s32.totalorder %s6772_s30, %s6765_s16 }
  0x46   : > { %p6769_p5 = pneg %p6768_p6  ;;  %p6775_p4 = por %p6774_p9, %p6773_p3 }
  0x48   : > { %p6776_p8 = pnand %p6775_p4, %p6769_p5 }
  0x4a   : > { %6779 = shalt.err (!%p6776_p8)
}
  0x4b   : > { %s6855_s15 = smov 1024   ;;  %s6856_s26 = smov 64  }
  0x4c   : > { %6260 = dma.hbm_to_vmem [thread:$0]  (!%p7022_p11), %s7018_s12, 16384, %s7020_s3, %s7026_s13, %s6855_s15, %s6855_s15, %s6856_s26  }
  0x4d   : > { %p10079_p10 = scmp.ne.s32.totalorder %s10070_s25, 0 }
  0x4f   : > { %405 = sbr.rel (%p10079_p10) target bundleno = 1232 (0x4d0), region = 60 }
  0x54   : > { %s7050_s19 = sand.u32 1, %s6840_s18   ;;  %p10080_p4 = scmp.ne.s32.totalorder %s10068_s23, 0 }
  0x55   : > { %s5894_s27 = sshll.u32 %s7050_s19, 10  ;;  %s408_s22 = scalar_lea.sflag [#allocation3], %s7050_s19 }
  0x56   : > { %s7054_s29 = scalar_lea.vmem [#allocation2], %s5894_s27 }
  0x57   : > { %6823 = dma.done.wait (%p10080_p4), %s408_s22, 16384  }
  0x58   : > { %6825 = vsyncadd (%p10080_p4), %s408_s22, 4294950912  ;;  %p10081_p6 = scmp.eq.s32.totalorder %s6944_s21, 0 }
  0x5a   : > { %6827 = dma.done.wait (%p10081_p6), [#allocation6], 528   ;;  %p10082_p8 = pmov %p10081_p6 }
  0x5b   : > { %v694_v0 = vld [vmem:[%s9971_s4 + $0x40] sm:$0xff]  ;;  %v695_v2 = vld [vmem:[%s9971_s4 + $0x48] sm:$0xff]  ;;  %v497_v16 = vld [vmem:[%s7054_s29 + $0x18] sm:$0xff]  ;;  %s5898_s13 = sshll.u32 %s6944_s21, 4  ;;  %vm1742_vm0 = vcmask 261120   ;;  %vm6859_vm4 = vmmov 0  }
  0x5c   : > { %6829 = vsyncadd (%p10082_p8), [#allocation6], 4294966768  ;;  %v698_v1 = vld [vmem:[%s9971_s4 + $0x60] sm:$0xff]  ;;  %v699_v4 = vld [vmem:[%s9971_s4 + $0x68] sm:$0xff]  ;;  %p475_p9 = scmp.lt.s32.totalorder %s5898_s13, 31  ;;  %s6073_s12 = sshll.u32 %s6944_s21, 8 }
  0x5d   : > { %v5914_v3 = vcombine.high %v694_v0, %v698_v1  ;;  %v5913_v5 = vcombine.low %v694_v0, %v698_v1  ;;  %v686_v6 = vld [vmem:[%s9971_s4] sm:$0xff]  ;;  %v5916_v8 = vcombine.high %v695_v2, %v699_v4  ;;  %v5915_v9 = vcombine.low %v695_v2, %v699_v4  ;;  %v687_v11 = vld [vmem:[%s9971_s4 + $0x8] sm:$0xff]  ;;  %v505_v17 = vld [vmem:[%s7054_s29 + $0x58] sm:$0xff]  ;;  %s9920_s23 = scalar_lea.hbm %s9978_s11, %s6073_s12  ;;  %s5726_s16 = scalar_lea.sflag [#allocation4], %s7050_s19 }
  0x5e   : > { %v690_v7 = vld [vmem:[%s9971_s4 + $0x20] sm:$0xff]  ;;  %v691_v12 = vld [vmem:[%s9971_s4 + $0x28] sm:$0xff]  ;;  %v7094_v19 = vpack.c.bf16 %v505_v17, %v497_v16  ;;  %v696_v20 = vld [vmem:[%s9971_s4 + $0x50] sm:$0xff]  ;;  %s10335_s13 = smov (!%p475_p9, %s5898_s13), 31  ;;  %p10326_p1 = scmp.ne.s32.totalorder %s10076_s14, 0 }
  0x5f   : > { %v5906_v10 = vcombine.high %v686_v6, %v690_v7  ;;  %v495_v13 = vld [vmem:[%s7054_s29 + $0x8] sm:$0xff]  ;;  %801 = vmatprep.subr.bf16.mxu0 %v5914_v3  ;;  %v5908_v14 = vcombine.high %v687_v11, %v691_v12  ;;  %898 = vmatprep.subr.bf16.mxu1 %v5916_v8  ;;  %v700_v21 = vld [vmem:[%s9971_s4 + $0x70] sm:$0xff]  ;;  %v697_v22 = vld [vmem:[%s9971_s4 + $0x58] sm:$0xff]  ;;  %v5905_v24 = vcombine.low %v686_v6, %v690_v7  ;;  %s7423_s28 = sshll.u32 %s10335_s13, 3  ;;  %s6860_s26 = smov [#allocation8]  }
  0x60   : > { %v503_v15 = vld [vmem:[%s7054_s29 + $0x48] sm:$0xff]  ;;  %802 = vmatpush1.bf16.xpose.msra.mxu0 %v5913_v5  ;;  %899 = vmatpush1.bf16.xpose.msra.mxu1 %v5915_v9  ;;  %v701_v23 = vld [vmem:[%s9971_s4 + $0x78] sm:$0xff]  ;;  %v5907_v25 = vcombine.low %v687_v11, %v691_v12  ;;  %v5918_v26 = vcombine.high %v696_v20, %v700_v21  ;;  %v494_v28 = vld [vmem:[%s7054_s29] sm:$0xff]  ;;  %v5917_v38 = vcombine.low %v696_v20, %v700_v21  ;;  %s7431_s30 = scalar_lea.vmem %s9968_s1, %s7423_s28  ;;  %s7729_s3 = scalar_lea.vmem %s9977_s10, %s7423_s28 }
  0x61   : > { %v7092_v18 = vpack.c.bf16 %v503_v15, %v495_v13  ;;  %803 = vmatprep.subr.bf16.mxu0 %v5906_v10  ;;  %900 = vmatprep.subr.bf16.mxu1 %v5908_v14  ;;  %v5920_v27 = vcombine.high %v697_v22, %v701_v23  ;;  %v502_v29 = vld [vmem:[%s7054_s29 + $0x40] sm:$0xff]  ;;  %v496_v30 = vld [vmem:[%s7054_s29 + $0x10] sm:$0xff]  ;;  %v511_v32 = vld [vmem:[%s7054_s29 + $0x88] sm:$0xff]  ;;  %v5919_v39 = vcombine.low %v697_v22, %v701_v23  ;;  %s9387_s22 = scalar_lea.vmem %s9969_s2, %s7423_s28  ;;  %s5897_s28 = sshll.u32 %s7050_s19, 4 }
  0x62   : > { %918 = vmatprep.mubr.bf16.mxu1 %v7094_v19  ;;  %v504_v31 = vld [vmem:[%s7054_s29 + $0x50] sm:$0xff]  ;;  %v519_v33 = vld [vmem:[%s7054_s29 + $0xc8] sm:$0xff]  ;;  %v7116_v34 = vpack.c.bf16 %v502_v29, %v494_v28  ;;  %v513_v35 = vld [vmem:[%s7054_s29 + $0x98] sm:$0xff]  ;;  %s9888_s7 = scalar_lea.vmem [#allocation8], %s5897_s28 }
  0x63   : > { %821 = vmatprep.mubr.bf16.mxu0 %v7092_v18  ;;  %v521_v36 = vld [vmem:[%s7054_s29 + $0xd8] sm:$0xff]  ;;  %v7120_v37 = vpack.c.bf16 %v504_v31, %v496_v30  ;;  %v7122_v40 = vpack.c.bf16 %v519_v33, %v511_v32  ;;  %v688_v41 = vld [vmem:[%s9971_s4 + $0x10] sm:$0xff]  ;;  %v510_v48 = vld [vmem:[%s7054_s29 + $0x80] sm:$0xff]  ;;  %s5743_s25 = sshll.u32 %s9888_s7, 4  ;;  %s9909_s25 = int_to_ptr.vmem [resolvable:$true] %s5743_s25 }
  0x64   : > { %v692_v42 = vld [vmem:[%s9971_s4 + $0x30] sm:$0xff]  ;;  %v7130_v43 = vpack.c.bf16 %v521_v36, %v513_v35  ;;  %v689_v45 = vld [vmem:[%s9971_s4 + $0x18] sm:$0xff]  ;;  %v518_v49 = vld [vmem:[%s7054_s29 + $0xc0] sm:$0xff]  ;;  %s6780_s15 = scalar_lea.vmem %s9909_s25, 256 }
  0x65   : > { %v5910_v44 = vcombine.high %v688_v41, %v692_v42  ;;  %v693_v46 = vld [vmem:[%s9971_s4 + $0x38] sm:$0xff]  ;;  %v512_v50 = vld [vmem:[%s7054_s29 + $0x90] sm:$0xff]  ;;  %v527_v52 = vld [vmem:[%s7054_s29 + $0x108] sm:$0xff]  ;;  %v7150_v56 = vpack.c.bf16 %v518_v49, %v510_v48  ;;  %v5909_v60 = vcombine.low %v688_v41, %v692_v42  ;;  %p6781_p11 = scmp.ne.s32.totalorder %s9909_s25, %s6780_s15 }
  0x66   : > { %v5912_v47 = vcombine.high %v689_v45, %v693_v46  ;;  %v520_v51 = vld [vmem:[%s7054_s29 + $0xd0] sm:$0xff]  ;;  %v535_v53 = vld [vmem:[%s7054_s29 + $0x148] sm:$0xff]  ;;  %v529_v54 = vld [vmem:[%s7054_s29 + $0x118] sm:$0xff]  ;;  %v5911_v61 = vcombine.low %v689_v45, %v693_v46 }
  0x67   : > { %v537_v55 = vld [vmem:[%s7054_s29 + $0x158] sm:$0xff]  ;;  %v7152_v57 = vpack.c.bf16 %v520_v51, %v512_v50  ;;  %v7154_v58 = vpack.c.bf16 %v535_v53, %v527_v52  ;;  %v526_v62 = vld [vmem:[%s7054_s29 + $0x100] sm:$0xff]  ;;  %v528_v0 = vld [vmem:[%s7054_s29 + $0x110] sm:$0xff]  ;;  %p6782_p2 = pnand %p6781_p11, %p10326_p1 }
  0x68   : > { %804 = vmatpush1.bf16.xpose.msra.mxu0 %v5905_v24  ;;  %901 = vmatpush1.bf16.xpose.msra.mxu1 %v5907_v25  ;;  %v7156_v59 = vpack.c.bf16 %v537_v55, %v529_v54  ;;  %v534_v63 = vld [vmem:[%s7054_s29 + $0x140] sm:$0xff]  ;;  %v536_v1 = vld [vmem:[%s7054_s29 + $0x150] sm:$0xff]  ;;  %v543_v2 = vld [vmem:[%s7054_s29 + $0x188] sm:$0xff] }
  0x69   : > { %995 = vmatprep.subr.bf16.mxu0 %v5918_v26  ;;  %1092 = vmatprep.subr.bf16.mxu1 %v5920_v27  ;;  %v551_v3 = vld [vmem:[%s7054_s29 + $0x1c8] sm:$0xff]  ;;  %v545_v4 = vld [vmem:[%s7054_s29 + $0x198] sm:$0xff]  ;;  %v7170_v6 = vpack.c.bf16 %v534_v63, %v526_v62  ;;  %v7172_v7 = vpack.c.bf16 %v536_v1, %v528_v0  ;;  %v542_v10 = vld [vmem:[%s7054_s29 + $0x180] sm:$0xff]  ;;  %p6783_p12 = pneg %p6782_p2 }
  0x6a   : > { %v553_v5 = vld [vmem:[%s7054_s29 + $0x1d8] sm:$0xff]  ;;  %v7174_v8 = vpack.c.bf16 %v551_v3, %v543_v2  ;;  %v550_v11 = vld [vmem:[%s7054_s29 + $0x1c0] sm:$0xff]  ;;  %v544_v12 = vld [vmem:[%s7054_s29 + $0x190] sm:$0xff] }
  0x6b   : > { %v7176_v9 = vpack.c.bf16 %v553_v5, %v545_v4  ;;  %v552_v13 = vld [vmem:[%s7054_s29 + $0x1d0] sm:$0xff]  ;;  %v559_v14 = vld [vmem:[%s7054_s29 + $0x208] sm:$0xff]  ;;  %v561_v16 = vld [vmem:[%s7054_s29 + $0x218] sm:$0xff]  ;;  %v7190_v20 = vpack.c.bf16 %v550_v11, %v542_v10 }
  0x6c   : > { %v567_v15 = vld [vmem:[%s7054_s29 + $0x248] sm:$0xff]  ;;  %v569_v17 = vld [vmem:[%s7054_s29 + $0x258] sm:$0xff]  ;;  %v7192_v21 = vpack.c.bf16 %v552_v13, %v544_v12  ;;  %v558_v24 = vld [vmem:[%s7054_s29 + $0x200] sm:$0xff] }
  0x6d   : > { %v7194_v22 = vpack.c.bf16 %v567_v15, %v559_v14  ;;  %v7196_v23 = vpack.c.bf16 %v569_v17, %v561_v16  ;;  %v566_v25 = vld [vmem:[%s7054_s29 + $0x240] sm:$0xff]  ;;  %v560_v26 = vld [vmem:[%s7054_s29 + $0x210] sm:$0xff]  ;;  %v575_v28 = vld [vmem:[%s7054_s29 + $0x288] sm:$0xff] }
  0x6e   : > { %v568_v27 = vld [vmem:[%s7054_s29 + $0x250] sm:$0xff]  ;;  %v583_v29 = vld [vmem:[%s7054_s29 + $0x2c8] sm:$0xff]  ;;  %v577_v30 = vld [vmem:[%s7054_s29 + $0x298] sm:$0xff] }
  0x6f   : > { %822 = vmatmul.mubr.bf16.vlgmr.msra.gmra.mxu0 %v7116_v34  ;;  %919 = vmatmul.mubr.bf16.vlgmr.msra.gmra.mxu1 %v7120_v37  ;;  %v7212_v31 = vld [vmem:[%s9973_s6 + $0x40] sm:$0xff]  ;;  %v585_v33 = vld [vmem:[%s7054_s29 + $0x2d8] sm:$0xff]  ;;  %v7225_v36 = vld [vmem:[%s9973_s6 + $0x48] sm:$0xff]  ;;  %v7236_v42 = vpack.c.bf16 %v568_v27, %v560_v26 }
  0x70   : > { %996 = vmatpush1.bf16.xpose.msra.mxu0 %v5917_v38  ;;  %1093 = vmatpush1.bf16.xpose.msra.mxu1 %v5919_v39  ;;  %v7217_v32 = vld [vmem:[%s9973_s6 + $0x60] sm:$0xff]  ;;  %v7230_v38 = vld [vmem:[%s9973_s6 + $0x68] sm:$0xff]  ;;  %v7232_v39 = vpack.c.bf16 %v566_v25, %v558_v24  ;;  %v7240_v45 = vpack.c.bf16 %v585_v33, %v577_v30  ;;  %v576_v48 = vld [vmem:[%s7054_s29 + $0x290] sm:$0xff] }
  0x71   : > { %829 = vmatprep.mubr.bf16.mxu0 %v7122_v40  ;;  %926 = vmatprep.mubr.bf16.mxu1 %v7130_v43  ;;  %v5931_v35 = vcombine.high %v7212_v31, %v7217_v32  ;;  %v5933_v41 = vcombine.high %v7225_v36, %v7230_v38  ;;  %v574_v46 = vld [vmem:[%s7054_s29 + $0x280] sm:$0xff]  ;;  %v584_v49 = vld [vmem:[%s7054_s29 + $0x2d0] sm:$0xff]  ;;  %v591_v50 = vld [vmem:[%s7054_s29 + $0x308] sm:$0xff] }
  0x72   : > { %997 = vmatprep.subr.bf16.mxu0 %v5910_v44  ;;  %1094 = vmatprep.subr.bf16.mxu1 %v5912_v47  ;;  %v7238_v44 = vpack.c.bf16 %v583_v29, %v575_v28  ;;  %v582_v47 = vld [vmem:[%s7054_s29 + $0x2c0] sm:$0xff]  ;;  %v599_v51 = vld [vmem:[%s7054_s29 + $0x348] sm:$0xff]  ;;  %v593_v52 = vld [vmem:[%s7054_s29 + $0x318] sm:$0xff]  ;;  %v7256_v55 = vpack.c.bf16 %v584_v49, %v576_v48 }
  0x73   : > { %v601_v53 = vld [vmem:[%s7054_s29 + $0x358] sm:$0xff]  ;;  %v7254_v54 = vpack.c.bf16 %v582_v47, %v574_v46  ;;  %v590_v62 = vld [vmem:[%s7054_s29 + $0x300] sm:$0xff]  ;;  %v592_v0 = vld [vmem:[%s7054_s29 + $0x310] sm:$0xff] }
  0x74   : > { %v598_v63 = vld [vmem:[%s7054_s29 + $0x340] sm:$0xff]  ;;  %v600_v1 = vld [vmem:[%s7054_s29 + $0x350] sm:$0xff]  ;;  %v607_v2 = vld [vmem:[%s7054_s29 + $0x388] sm:$0xff] }
  0x75   : > { %v615_v3 = vld [vmem:[%s7054_s29 + $0x3c8] sm:$0xff]  ;;  %v609_v4 = vld [vmem:[%s7054_s29 + $0x398] sm:$0xff]  ;;  %v7274_v10 = vpack.c.bf16 %v598_v63, %v590_v62  ;;  %v7276_v11 = vpack.c.bf16 %v600_v1, %v592_v0  ;;  %v606_v14 = vld [vmem:[%s7054_s29 + $0x380] sm:$0xff] }
  0x76   : > { %v617_v5 = vld [vmem:[%s7054_s29 + $0x3d8] sm:$0xff]  ;;  %v7278_v12 = vpack.c.bf16 %v615_v3, %v607_v2  ;;  %v614_v15 = vld [vmem:[%s7054_s29 + $0x3c0] sm:$0xff]  ;;  %v608_v16 = vld [vmem:[%s7054_s29 + $0x390] sm:$0xff] }
  0x77   : > { %830 = vmatmul.mubr.bf16.gmra.mxu0 %v7150_v56  ;;  %927 = vmatmul.mubr.bf16.gmra.mxu1 %v7152_v57  ;;  %v7280_v13 = vpack.c.bf16 %v617_v5, %v609_v4  ;;  %v616_v17 = vld [vmem:[%s7054_s29 + $0x3d0] sm:$0xff]  ;;  %v499_v24 = vld [vmem:[%s7054_s29 + $0x28] sm:$0xff]  ;;  %v501_v26 = vld [vmem:[%s7054_s29 + $0x38] sm:$0xff]  ;;  %v7294_v28 = vpack.c.bf16 %v614_v15, %v606_v14  ;;  %v5930_v4 = vcombine.low %v7212_v31, %v7217_v32 }
  0x78   : > { %837 = vmatprep.mubr.bf16.mxu0 %v7154_v58  ;;  %934 = vmatprep.mubr.bf16.mxu1 %v7156_v59  ;;  %v507_v25 = vld [vmem:[%s7054_s29 + $0x68] sm:$0xff]  ;;  %v509_v27 = vld [vmem:[%s7054_s29 + $0x78] sm:$0xff]  ;;  %v7296_v29 = vpack.c.bf16 %v616_v17, %v608_v16  ;;  %v500_v46 = vld [vmem:[%s7054_s29 + $0x30] sm:$0xff]  ;;  %v5932_v5 = vcombine.low %v7225_v36, %v7230_v38 }
  0x79   : > { %998 = vmatpush1.bf16.xpose.msra.mxu0 %v5909_v60  ;;  %1095 = vmatpush1.bf16.xpose.msra.mxu1 %v5911_v61  ;;  %v7258_v60 = vpack.c.bf16 %v599_v51, %v591_v50  ;;  %v7260_v61 = vpack.c.bf16 %v601_v53, %v593_v52  ;;  %v7298_v30 = vpack.c.bf16 %v507_v25, %v499_v24  ;;  %v508_v47 = vld [vmem:[%s7054_s29 + $0x70] sm:$0xff]  ;;  %v515_v48 = vld [vmem:[%s7054_s29 + $0xa8] sm:$0xff]  ;;  %v517_v50 = vld [vmem:[%s7054_s29 + $0xb8] sm:$0xff] }
  0x7a   : > { %1292 = vmatprep.subr.bf16.mxu0 %v5931_v35  ;;  %1389 = vmatprep.subr.bf16.mxu1 %v5933_v41  ;;  %v7300_v33 = vpack.c.bf16 %v509_v27, %v501_v26  ;;  %v498_v35 = vld [vmem:[%s7054_s29 + $0x20] sm:$0xff]  ;;  %v523_v49 = vld [vmem:[%s7054_s29 + $0xe8] sm:$0xff]  ;;  %v525_v51 = vld [vmem:[%s7054_s29 + $0xf8] sm:$0xff]  ;;  %v7322_v63 = vpack.c.bf16 %v508_v47, %v500_v46 }
  0x7b   : > { %v506_v41 = vld [vmem:[%s7054_s29 + $0x60] sm:$0xff]  ;;  %v7324_v0 = vpack.c.bf16 %v523_v49, %v515_v48  ;;  %v1178_v1 = vld [vmem:[%s9973_s6 + $0x8] sm:$0xff]  ;;  %v7332_v3 = vpack.c.bf16 %v525_v51, %v517_v50  ;;  %v516_v24 = vld [vmem:[%s7054_s29 + $0xb0] sm:$0xff] }
  0x7c   : > { %v7314_v52 = vpack.c.bf16 %v506_v41, %v498_v35  ;;  %v1177_v53 = vld [vmem:[%s9973_s6] sm:$0xff]  ;;  %v1182_v2 = vld [vmem:[%s9973_s6 + $0x28] sm:$0xff]  ;;  %v524_v25 = vld [vmem:[%s7054_s29 + $0xf0] sm:$0xff] }
  0x7d   : > { %v1181_v62 = vld [vmem:[%s9973_s6 + $0x20] sm:$0xff]  ;;  %v5925_v15 = vcombine.high %v1178_v1, %v1182_v2  ;;  %v531_v26 = vld [vmem:[%s7054_s29 + $0x128] sm:$0xff]  ;;  %v533_v32 = vld [vmem:[%s7054_s29 + $0x138] sm:$0xff]  ;;  %v7362_v41 = vpack.c.bf16 %v524_v25, %v516_v24  ;;  %v5924_v51 = vcombine.low %v1178_v1, %v1182_v2 }
  0x7e   : > { %v5923_v14 = vcombine.high %v1177_v53, %v1181_v62  ;;  %v514_v16 = vld [vmem:[%s7054_s29 + $0xa0] sm:$0xff]  ;;  %v539_v31 = vld [vmem:[%s7054_s29 + $0x168] sm:$0xff]  ;;  %v541_v27 = vld [vmem:[%s7054_s29 + $0x178] sm:$0xff]  ;;  %v5922_v50 = vcombine.low %v1177_v53, %v1181_v62 }
  0x7f   : > { %838 = vmatmul.mubr.bf16.gmra.mxu0 %v7170_v6  ;;  %935 = vmatmul.mubr.bf16.gmra.mxu1 %v7172_v7  ;;  %v522_v17 = vld [vmem:[%s7054_s29 + $0xe0] sm:$0xff]  ;;  %v7355_v38 = vld [vmem:[%s9973_s6 + $0x50] sm:$0xff]  ;;  %v7364_v46 = vpack.c.bf16 %v539_v31, %v531_v26  ;;  %v7369_v47 = vld [vmem:[%s9973_s6 + $0x58] sm:$0xff]  ;;  %v7376_v49 = vpack.c.bf16 %v541_v27, %v533_v32 }
  0x80   : > { %845 = vmatprep.mubr.bf16.mxu0 %v7174_v8  ;;  %942 = vmatprep.mubr.bf16.mxu1 %v7176_v9  ;;  %v7350_v36 = vpack.c.bf16 %v522_v17, %v514_v16  ;;  %v7360_v35 = vld [vmem:[%s9973_s6 + $0x70] sm:$0xff]  ;;  %v7374_v48 = vld [vmem:[%s9973_s6 + $0x78] sm:$0xff]  ;;  %v547_v62 = vld [vmem:[%s7054_s29 + $0x1a8] sm:$0xff] }
  0x81   : > { %v532_v16 = vld [vmem:[%s7054_s29 + $0x130] sm:$0xff]  ;;  %v555_v1 = vld [vmem:[%s7054_s29 + $0x1e8] sm:$0xff]  ;;  %v549_v2 = vld [vmem:[%s7054_s29 + $0x1b8] sm:$0xff] }
  0x82   : > { %v540_v53 = vld [vmem:[%s7054_s29 + $0x170] sm:$0xff]  ;;  %v557_v17 = vld [vmem:[%s7054_s29 + $0x1f8] sm:$0xff]  ;;  %v7398_v26 = vpack.c.bf16 %v555_v1, %v547_v62  ;;  %v546_v32 = vld [vmem:[%s7054_s29 + $0x1a0] sm:$0xff] }
  0x83   : > { %v7396_v25 = vpack.c.bf16 %v540_v53, %v532_v16  ;;  %v7400_v31 = vpack.c.bf16 %v557_v17, %v549_v2  ;;  %v554_v27 = vld [vmem:[%s7054_s29 + $0x1e0] sm:$0xff]  ;;  %v6857_v17 = vmov 0  }
  0x84   : > { %10083 = vst [vmem:[#allocation15_spill] sm:$0xff] %v7398_v26  ;;  %v7415_v16 = vpack.c.bf16 %v554_v27, %v546_v32  ;;  %v562_v2 = vld [vmem:[%s7054_s29 + $0x220] sm:$0xff]  ;;  %6314 = vset.pattern.permute.xlu0 %v6857_v17  ;;  %v564_v27 = vld [vmem:[%s7054_s29 + $0x230] sm:$0xff]  ;;  %6315 = vset.pattern.permute.xlu1 %v6857_v17 }
  0x85   : > { %10084 = vst [vmem:[#allocation16_spill] sm:$0xff] %v7400_v31  ;;  %v570_v32 = vld [vmem:[%s7054_s29 + $0x260] sm:$0xff]  ;;  %v2950_v17 = vld [vmem:[%s7431_s30 + $0x10] sm:$0xff] }
  0x86   : > { %10085 = vst [vmem:[#allocation17_spill] sm:$0xff] %v7415_v16 }
  0x87   : > { %846 = vmatmul.mubr.bf16.gmra.mxu0 %v7190_v20  ;;  %943 = vmatmul.mubr.bf16.gmra.mxu1 %v7192_v21 }
  0x88   : > { %853 = vmatprep.mubr.bf16.mxu0 %v7194_v22  ;;  %950 = vmatprep.mubr.bf16.mxu1 %v7196_v23 }
  0x8f   : > { %854 = vmatmul.mubr.bf16.gmra.mxu0 %v7232_v39  ;;  %951 = vmatmul.mubr.bf16.gmra.mxu1 %v7236_v42 }
  0x90   : > { %861 = vmatprep.mubr.bf16.mxu0 %v7238_v44  ;;  %958 = vmatprep.mubr.bf16.mxu1 %v7240_v45 }
  0x97   : > { %862 = vmatmul.mubr.bf16.gmra.mxu0 %v7254_v54  ;;  %959 = vmatmul.mubr.bf16.gmra.mxu1 %v7256_v55 }
  0x98   : > { %869 = vmatprep.mubr.bf16.mxu0 %v7258_v60  ;;  %966 = vmatprep.mubr.bf16.mxu1 %v7260_v61 }
  0x9f   : > { %870 = vmatmul.mubr.bf16.gmra.mxu0 %v7274_v10  ;;  %967 = vmatmul.mubr.bf16.gmra.mxu1 %v7276_v11 }
  0xa0   : > { %877 = vmatprep.mubr.bf16.mxu0 %v7278_v12  ;;  %974 = vmatprep.mubr.bf16.mxu1 %v7280_v13 }
  0xa7   : > { %878 = vmatmul.mubr.bf16.gmra.mxu0 %v7294_v28  ;;  %975 = vmatmul.mubr.bf16.gmra.mxu1 %v7296_v29 }
  0xa8   : > { %1015 = vmatprep.mubr.bf16.mxu0 %v7298_v30  ;;  %1112 = vmatprep.mubr.bf16.mxu1 %v7300_v33 }
  0xaf   : > { %1016 = vmatmul.mubr.bf16.vlgmr.msra.gmra.mxu0 %v7314_v52  ;;  %1113 = vmatmul.mubr.bf16.vlgmr.msra.gmra.mxu1 %v7322_v63 }
  0xb0   : > { %1023 = vmatprep.mubr.bf16.mxu0 %v7324_v0  ;;  %1120 = vmatprep.mubr.bf16.mxu1 %v7332_v3 }
  0xb1   : > { %1293 = vmatpush1.bf16.xpose.msra.mxu0 %v5930_v4  ;;  %1390 = vmatpush1.bf16.xpose.msra.mxu1 %v5932_v5  ;;  %v5935_v4 = vcombine.high %v7355_v38, %v7360_v35  ;;  %v5937_v5 = vcombine.high %v7369_v47, %v7374_v48 }
  0xb2   : > { %1294 = vmatprep.subr.bf16.mxu0 %v5923_v14  ;;  %1391 = vmatprep.subr.bf16.mxu1 %v5925_v15  ;;  %v530_v14 = vld [vmem:[%s7054_s29 + $0x120] sm:$0xff] }
  0xb3   : > { %v538_v15 = vld [vmem:[%s7054_s29 + $0x160] sm:$0xff] }
  0xb4   : > { %v7394_v24 = vpack.c.bf16 %v538_v15, %v530_v14  ;;  %v565_v14 = vld [vmem:[%s7054_s29 + $0x238] sm:$0xff] }
  0xb5   : > { %v573_v15 = vld [vmem:[%s7054_s29 + $0x278] sm:$0xff] }
  0xb6   : > { %v7421_v1 = vpack.c.bf16 %v573_v15, %v565_v14  ;;  %v581_v14 = vld [vmem:[%s7054_s29 + $0x2b8] sm:$0xff] }
  0xb7   : > { %1024 = vmatmul.mubr.bf16.gmra.mxu0 %v7350_v36  ;;  %1121 = vmatmul.mubr.bf16.gmra.mxu1 %v7362_v41  ;;  %v589_v15 = vld [vmem:[%s7054_s29 + $0x2f8] sm:$0xff] }
  0xb8   : > { %1031 = vmatprep.mubr.bf16.mxu0 %v7364_v46  ;;  %1128 = vmatprep.mubr.bf16.mxu1 %v7376_v49  ;;  %10088 = vst [vmem:[#allocation20_spill] sm:$0xff] %v7421_v1 }
  0xb9   : > { %1295 = vmatpush1.bf16.xpose.msra.mxu0 %v5922_v50  ;;  %1392 = vmatpush1.bf16.xpose.msra.mxu1 %v5924_v51  ;;  %v548_v50 = vld [vmem:[%s7054_s29 + $0x1b0] sm:$0xff] }
  0xba   : > { %1486 = vmatprep.subr.bf16.mxu0 %v5935_v4  ;;  %1583 = vmatprep.subr.bf16.mxu1 %v5937_v5  ;;  %v556_v51 = vld [vmem:[%s7054_s29 + $0x1f0] sm:$0xff]  ;;  %v563_v4 = vld [vmem:[%s7054_s29 + $0x228] sm:$0xff] }
  0xbb   : > { %v571_v5 = vld [vmem:[%s7054_s29 + $0x268] sm:$0xff]  ;;  %v7417_v53 = vpack.c.bf16 %v556_v51, %v548_v50  ;;  %v2948_v50 = vld [vmem:[%s7431_s30] sm:$0xff]  ;;  %v572_v51 = vld [vmem:[%s7054_s29 + $0x270] sm:$0xff] }
  0xbc   : > { %v7419_v62 = vpack.c.bf16 %v571_v5, %v563_v4  ;;  %v579_v4 = vld [vmem:[%s7054_s29 + $0x2a8] sm:$0xff]  ;;  %2967 = vperm.xlu0 %6314, %v2948_v50   ;;  %v588_v50 = vld [vmem:[%s7054_s29 + $0x2f0] sm:$0xff] }
  0xbd   : > { %10086 = vst [vmem:[#allocation18_spill] sm:$0xff] %v7417_v53  ;;  %v587_v5 = vld [vmem:[%s7054_s29 + $0x2e8] sm:$0xff] }
  0xbe   : > { %10087 = vst [vmem:[#allocation19_spill] sm:$0xff] %v7419_v62 }
  0xbf   : > { %1032 = vmatmul.mubr.bf16.gmra.mxu0 %v7394_v24  ;;  %1129 = vmatmul.mubr.bf16.gmra.mxu1 %v7396_v25 }
  0xc0   : > { %1039 = vmatprep.mubr.bf16.mxu0 %v7398_v26  ;;  %1136 = vmatprep.mubr.bf16.mxu1 %v7400_v31  ;;  %v2951_v31 = vld [vmem:[%s7431_s30 + $0x18] sm:$0xff]  ;;  %v7452_v26 = vpack.c.bf16 %v589_v15, %v581_v14  ;;  %v2952_v14 = vld [vmem:[%s7431_s30 + $0x20] sm:$0xff] }
  0xc1   : > { %2976 = vperm.xlu0 %6314, %v2951_v31   ;;  %v595_v31 = vld [vmem:[%s7054_s29 + $0x328] sm:$0xff] }
  0xc2   : > { %10092 = vst [vmem:[#allocation24_spill] sm:$0xff] %v7452_v26 }
  0xc7   : > { %1040 = vmatmul.mubr.bf16.gmra.mxu0 %v7415_v16  ;;  %1137 = vmatmul.mubr.bf16.gmra.mxu1 %v7417_v53  ;;  %v2949_v53 = vld [vmem:[%s7431_s30 + $0x8] sm:$0xff]  ;;  %v7447_v16 = vpack.c.bf16 %v572_v51, %v564_v27 }
  0xc8   : > { %1047 = vmatprep.mubr.bf16.mxu0 %v7419_v62  ;;  %1144 = vmatprep.mubr.bf16.mxu1 %v7421_v1  ;;  %v7445_v62 = vpack.c.bf16 %v570_v32, %v562_v2  ;;  %v7449_v1 = vpack.c.bf16 %v587_v5, %v579_v4  ;;  %v578_v2 = vld [vmem:[%s7054_s29 + $0x2a0] sm:$0xff]  ;;  %v580_v32 = vld [vmem:[%s7054_s29 + $0x2b0] sm:$0xff]  ;;  %v2953_v27 = vld [vmem:[%s7431_s30 + $0x28] sm:$0xff] }
  0xc9   : > { %2970 = vperm.xlu1 %6315, %v2949_v53   ;;  %10090 = vst [vmem:[#allocation22_spill] sm:$0xff] %v7447_v16  ;;  %v586_v53 = vld [vmem:[%s7054_s29 + $0x2e0] sm:$0xff]  ;;  %v603_v51 = vld [vmem:[%s7054_s29 + $0x368] sm:$0xff]  ;;  %2982 = vperm.xlu0 %6314, %v2953_v27   ;;  %v597_v4 = vld [vmem:[%s7054_s29 + $0x338] sm:$0xff] }
  0xca   : > { %10089 = vst [vmem:[#allocation21_spill] sm:$0xff] %v7445_v62  ;;  %10091 = vst [vmem:[#allocation23_spill] sm:$0xff] %v7449_v1  ;;  %v605_v5 = vld [vmem:[%s7054_s29 + $0x378] sm:$0xff]  ;;  %v7469_v15 = vpack.c.bf16 %v586_v53, %v578_v2  ;;  %v2954_v27 = vld [vmem:[%s7431_s30 + $0x30] sm:$0xff] }
  0xcb   : > { %v594_v2 = vld [vmem:[%s7054_s29 + $0x320] sm:$0xff] }
  0xcc   : > { %10093 = vst [vmem:[#allocation25_spill] sm:$0xff] %v7469_v15  ;;  %v602_v53 = vld [vmem:[%s7054_s29 + $0x360] sm:$0xff] }
  0xcd   : > { %2973 = vperm.xlu1 %6315, %v2950_v17   ;;  %v7471_v17 = vpack.c.bf16 %v588_v50, %v580_v32  ;;  %v596_v32 = vld [vmem:[%s7054_s29 + $0x330] sm:$0xff]  ;;  %v2957_v50 = vld [vmem:[%s7431_s30 + $0x48] sm:$0xff] }
  0xcf   : > { %1048 = vmatmul.mubr.bf16.gmra.mxu0 %v7445_v62  ;;  %1145 = vmatmul.mubr.bf16.gmra.mxu1 %v7447_v16  ;;  %10094 = vst [vmem:[#allocation26_spill] sm:$0xff] %v7471_v17  ;;  %v7476_v16 = vpack.c.bf16 %v605_v5, %v597_v4  ;;  %v613_v4 = vld [vmem:[%s7054_s29 + $0x3b8] sm:$0xff]  ;;  %v612_v62 = vld [vmem:[%s7054_s29 + $0x3b0] sm:$0xff] }
  0xd0   : > { %1055 = vmatprep.mubr.bf16.mxu0 %v7449_v1  ;;  %1152 = vmatprep.mubr.bf16.mxu1 %v7452_v26  ;;  %v7473_v1 = vpack.c.bf16 %v603_v51, %v595_v31  ;;  %v2955_v26 = vld [vmem:[%s7431_s30 + $0x38] sm:$0xff]  ;;  %v604_v31 = vld [vmem:[%s7054_s29 + $0x370] sm:$0xff]  ;;  %v619_v51 = vld [vmem:[%s7054_s29 + $0x3e8] sm:$0xff] }
  0xd1   : > { %2979 = vperm.xlu1 %6315, %v2952_v14   ;;  %10096 = vst [vmem:[#allocation28_spill] sm:$0xff] %v7476_v16  ;;  %2988 = vperm.xlu0 %6314, %v2955_v26   ;;  %v611_v26 = vld [vmem:[%s7054_s29 + $0x3a8] sm:$0xff]  ;;  %v621_v5 = vld [vmem:[%s7054_s29 + $0x3f8] sm:$0xff]  ;;  %v2956_v14 = vld [vmem:[%s7431_s30 + $0x40] sm:$0xff] }
  0xd2   : > { %10095 = vst [vmem:[#allocation27_spill] sm:$0xff] %v7473_v1 }
  0xd5   : > { %2985 = vperm.xlu1 %6315, %v2954_v27   ;;  %2994 = vperm.xlu0 %6314, %v2957_v50   ;;  %v7493_v27 = vpack.c.bf16 %v602_v53, %v594_v2  ;;  %v610_v50 = vld [vmem:[%s7054_s29 + $0x3a0] sm:$0xff]  ;;  %v620_v2 = vld [vmem:[%s7054_s29 + $0x3f0] sm:$0xff] }
  0xd7   : > { %1056 = vmatmul.mubr.bf16.gmra.mxu0 %v7469_v15  ;;  %1153 = vmatmul.mubr.bf16.gmra.mxu1 %v7471_v17  ;;  %v7497_v17 = vpack.c.bf16 %v619_v51, %v611_v26  ;;  %v7499_v15 = vpack.c.bf16 %v621_v5, %v613_v4  ;;  %v1183_v26 = vld [vmem:[%s9973_s6 + $0x30] sm:$0xff] }
  0xd8   : > { %1063 = vmatprep.mubr.bf16.mxu0 %v7473_v1  ;;  %1160 = vmatprep.mubr.bf16.mxu1 %v7476_v16  ;;  %v7495_v1 = vpack.c.bf16 %v604_v31, %v596_v32  ;;  %v618_v16 = vld [vmem:[%s7054_s29 + $0x3e0] sm:$0xff]  ;;  %v7511_v32 = vpack.c.bf16 %v620_v2, %v612_v62  ;;  %v1179_v31 = vld [vmem:[%s9973_s6 + $0x10] sm:$0xff]  ;;  %v1184_v62 = vld [vmem:[%s9973_s6 + $0x38] sm:$0xff] }
  0xd9   : > { %2991 = vperm.xlu1 %6315, %v2956_v14   ;;  %v7509_v53 = vpack.c.bf16 %v618_v16, %v610_v50  ;;  %v1180_v16 = vld [vmem:[%s9973_s6 + $0x18] sm:$0xff]  ;;  %v5927_v51 = vcombine.high %v1179_v31, %v1183_v26  ;;  %v5926_v5 = vcombine.low %v1179_v31, %v1183_v26 }
  0xda   : > { %v5929_v4 = vcombine.high %v1180_v16, %v1184_v62  ;;  %v5928_v14 = vcombine.low %v1180_v16, %v1184_v62  ;;  %v10099_v2 = vld [vmem:[#allocation17_spill] sm:$0xff]  ;;  %v10100_v31 = vld [vmem:[#allocation18_spill] sm:$0xff]  ;;  %v10102_v16 = vld [vmem:[#allocation20_spill] sm:$0xff] }
  0xdf   : > { %1064 = vmatmul.mubr.bf16.gmra.mxu0 %v7493_v27  ;;  %1161 = vmatmul.mubr.bf16.gmra.mxu1 %v7495_v1 }
  0xe0   : > { %1071 = vmatprep.mubr.bf16.mxu0 %v7497_v17  ;;  %1168 = vmatprep.mubr.bf16.mxu1 %v7499_v15 }
  0xe7   : > { %1072 = vmatmul.mubr.bf16.gmra.mxu0 %v7509_v53  ;;  %1169 = vmatmul.mubr.bf16.gmra.mxu1 %v7511_v32 }
  0xe8   : > { %1312 = vmatprep.mubr.bf16.mxu0 %v7092_v18  ;;  %1409 = vmatprep.mubr.bf16.mxu1 %v7094_v19  ;;  %v5934_v18 = vcombine.low %v7355_v38, %v7360_v35  ;;  %v5936_v19 = vcombine.low %v7369_v47, %v7374_v48  ;;  %v1693_v38 = vld [vmem:[%s9975_s8 + $0xc8] sm:$0xff] }
  0xe9   : > { %v10098_v35 = vld [vmem:[#allocation16_spill] sm:$0xff] }
  0xef   : > { %1313 = vmatmul.mubr.bf16.vlgmr.msra.gmra.mxu0 %v7116_v34  ;;  %1410 = vmatmul.mubr.bf16.vlgmr.msra.gmra.mxu1 %v7120_v37  ;;  %v1695_v34 = vld [vmem:[%s9975_s8 + $0xd8] sm:$0xff]  ;;  %v1692_v37 = vld [vmem:[%s9975_s8 + $0xc0] sm:$0xff] }
  0xf0   : > { %1320 = vmatprep.mubr.bf16.mxu0 %v7122_v40  ;;  %1417 = vmatprep.mubr.bf16.mxu1 %v7130_v43  ;;  %v1694_v43 = vld [vmem:[%s9975_s8 + $0xd0] sm:$0xff] }
  0xf1   : > { %1487 = vmatpush1.bf16.xpose.msra.mxu0 %v5934_v18  ;;  %1584 = vmatpush1.bf16.xpose.msra.mxu1 %v5936_v19 }
  0xf2   : > { %1488 = vmatprep.subr.bf16.mxu0 %v5927_v51  ;;  %1585 = vmatprep.subr.bf16.mxu1 %v5929_v4 }
  0xf7   : > { %1321 = vmatmul.mubr.bf16.gmra.mxu0 %v7150_v56  ;;  %1418 = vmatmul.mubr.bf16.gmra.mxu1 %v7152_v57  ;;  %v1685_v56 = vld [vmem:[%s9975_s8 + $0x88] sm:$0xff] }
  0xf8   : > { %1328 = vmatprep.mubr.bf16.mxu0 %v7154_v58  ;;  %1425 = vmatprep.mubr.bf16.mxu1 %v7156_v59  ;;  %v1687_v58 = vld [vmem:[%s9975_s8 + $0x98] sm:$0xff]  ;;  %v1684_v59 = vld [vmem:[%s9975_s8 + $0x80] sm:$0xff] }
  0xf9   : > { %1489 = vmatpush1.bf16.xpose.msra.mxu0 %v5926_v5  ;;  %1586 = vmatpush1.bf16.xpose.msra.mxu1 %v5928_v14  ;;  %v10103_v14 = vld [vmem:[#allocation21_spill] sm:$0xff] }
  0xfa   : > { %1815 = vmatprep.subr.mxu0 %v1693_v38  ;;  %1976 = vmatprep.subr.mxu1 %v1695_v34  ;;  %v10104_v34 = vld [vmem:[#allocation22_spill] sm:$0xff] }
  0xff   : > { %1329 = vmatmul.mubr.bf16.gmra.mxu0 %v7170_v6  ;;  %1426 = vmatmul.mubr.bf16.gmra.mxu1 %v7172_v7  ;;  %v1686_v7 = vld [vmem:[%s9975_s8 + $0x90] sm:$0xff] }
 0x100   : > { %1336 = vmatprep.mubr.bf16.mxu0 %v7174_v8  ;;  %1433 = vmatprep.mubr.bf16.mxu1 %v7176_v9  ;;  %v1677_v8 = vld [vmem:[%s9975_s8 + $0x48] sm:$0xff] }
 0x107   : > { %1337 = vmatmul.mubr.bf16.gmra.mxu0 %v7190_v20  ;;  %1434 = vmatmul.mubr.bf16.gmra.mxu1 %v7192_v21  ;;  %v1679_v20 = vld [vmem:[%s9975_s8 + $0x58] sm:$0xff]  ;;  %v1676_v21 = vld [vmem:[%s9975_s8 + $0x40] sm:$0xff] }
 0x108   : > { %1344 = vmatprep.mubr.bf16.mxu0 %v7194_v22  ;;  %1441 = vmatprep.mubr.bf16.mxu1 %v7196_v23  ;;  %v1678_v23 = vld [vmem:[%s9975_s8 + $0x50] sm:$0xff] }
 0x10f   : > { %1345 = vmatmul.mubr.bf16.gmra.mxu0 %v7232_v39  ;;  %1442 = vmatmul.mubr.bf16.gmra.mxu1 %v7236_v42  ;;  %v1669_v39 = vld [vmem:[%s9975_s8 + $0x8] sm:$0xff] }
 0x110   : > { %1352 = vmatprep.mubr.bf16.mxu0 %v7238_v44  ;;  %1449 = vmatprep.mubr.bf16.mxu1 %v7240_v45  ;;  %v1671_v44 = vld [vmem:[%s9975_s8 + $0x18] sm:$0xff] }
 0x117   : > { %1353 = vmatmul.mubr.bf16.gmra.mxu0 %v7254_v54  ;;  %1450 = vmatmul.mubr.bf16.gmra.mxu1 %v7256_v55  ;;  %v1668_v55 = vld [vmem:[%s9975_s8] sm:$0xff] }
 0x118   : > { %1360 = vmatprep.mubr.bf16.mxu0 %v7258_v60  ;;  %1457 = vmatprep.mubr.bf16.mxu1 %v7260_v61  ;;  %v1670_v61 = vld [vmem:[%s9975_s8 + $0x10] sm:$0xff] }
 0x11f   : > { %1361 = vmatmul.mubr.bf16.gmra.mxu0 %v7274_v10  ;;  %1458 = vmatmul.mubr.bf16.gmra.mxu1 %v7276_v11  ;;  %v1697_v10 = vld [vmem:[%s9975_s8 + $0xe8] sm:$0xff] }
 0x120   : > { %1368 = vmatprep.mubr.bf16.mxu0 %v7278_v12  ;;  %1465 = vmatprep.mubr.bf16.mxu1 %v7280_v13  ;;  %v1699_v12 = vld [vmem:[%s9975_s8 + $0xf8] sm:$0xff] }
 0x127   : > { %1369 = vmatmul.mubr.bf16.gmra.mxu0 %v7294_v28  ;;  %1466 = vmatmul.mubr.bf16.gmra.mxu1 %v7296_v29 }
 0x128   : > { %1506 = vmatprep.mubr.bf16.mxu0 %v7298_v30  ;;  %1603 = vmatprep.mubr.bf16.mxu1 %v7300_v33 }
 0x12f   : > { %v7574_v40 = vpop.f32.mrf.mxu0  ;;  %1507 = vmatmul.mubr.bf16.vlgmr.msra.gmra.mxu0 %v7314_v52  ;;  %v7583_v57 = vpop.f32.mrf.mxu1  ;;  %1604 = vmatmul.mubr.bf16.vlgmr.msra.gmra.mxu1 %v7322_v63 }
 0x130   : > { %1514 = vmatprep.mubr.bf16.mxu0 %v7324_v0  ;;  %1611 = vmatprep.mubr.bf16.mxu1 %v7332_v3  ;;  %v10097_v3 = vld [vmem:[#allocation15_spill] sm:$0xff] }
 0x131   : > { %v825_v6 = vpop.f32.mrf.mxu0  ;;  %1816 = vmatpush1.msra.mxu0 %v1692_v37  ;;  %v922_v9 = vpop.f32.mrf.mxu1  ;;  %1977 = vmatpush1.msra.mxu1 %v1694_v43  ;;  %v10105_v37 = vld [vmem:[#allocation23_spill] sm:$0xff] }
 0x132   : > { %1817 = vmatprep.subr.mxu0 %v1685_v56  ;;  %1978 = vmatprep.subr.mxu1 %v1687_v58  ;;  %v10106_v56 = vld [vmem:[#allocation24_spill] sm:$0xff] }
 0x133   : > { %v7606_v22 = vpop.f32.mrf.mxu0  ;;  %1818 = vmatpush1.msra.mxu0 %v1684_v59  ;;  %v7614_v42 = vpop.f32.mrf.mxu1  ;;  %1979 = vmatpush1.msra.mxu1 %v1686_v7 }
 0x134   : > { %1819 = vmatprep.subr.mxu0 %v1677_v8  ;;  %1980 = vmatprep.subr.mxu1 %v1679_v20  ;;  %v10107_v20 = vld [vmem:[#allocation25_spill] sm:$0xff] }
 0x135   : > { %v828_v45 = vpop.f32.mrf.mxu0  ;;  %1820 = vmatpush1.msra.mxu0 %v1676_v21  ;;  %v925_v54 = vpop.f32.mrf.mxu1  ;;  %1981 = vmatpush1.msra.mxu1 %v1678_v23  ;;  %v10108_v23 = vld [vmem:[#allocation26_spill] sm:$0xff] }
 0x136   : > { %1821 = vmatprep.subr.mxu0 %v1669_v39  ;;  %1982 = vmatprep.subr.mxu1 %v1671_v44  ;;  %v10109_v39 = vld [vmem:[#allocation27_spill] sm:$0xff]  ;;  %v10110_v45 = vld [vmem:[#allocation28_spill] sm:$0xff] }
 0x137   : > { %v7622_v60 = vpop.f32.mrf.mxu0  ;;  %1515 = vmatmul.mubr.bf16.gmra.mxu0 %v7350_v36  ;;  %v7631_v11 = vpop.f32.mrf.mxu1  ;;  %1612 = vmatmul.mubr.bf16.gmra.mxu1 %v7362_v41 }
 0x138   : > { %1522 = vmatprep.mubr.bf16.mxu0 %v7364_v46  ;;  %1619 = vmatprep.mubr.bf16.mxu1 %v7376_v49 }
 0x139   : > { %v833_v13 = vpop.f32.mrf.mxu0  ;;  %1822 = vmatpush1.msra.mxu0 %v1668_v55  ;;  %v930_v28 = vpop.f32.mrf.mxu1  ;;  %1983 = vmatpush1.msra.mxu1 %v1670_v61 }
 0x13a   : > { %2137 = vmatprep.subr.mxu0 %v1697_v10  ;;  %2298 = vmatprep.subr.mxu1 %v1699_v12 }
 0x13b   : > { %v7639_v29 = vpop.f32.mrf.mxu0  ;;  %v7641_v30 = vpop.f32.mrf.mxu1 }
 0x13d   : > { %v836_v33 = vpop.f32.mrf.mxu0  ;;  %v933_v52 = vpop.f32.mrf.mxu1 }
 0x13f   : > { %v7643_v63 = vpop.f32.mrf.mxu0  ;;  %1523 = vmatmul.mubr.bf16.gmra.mxu0 %v7394_v24  ;;  %v7646_v0 = vpop.f32.mrf.mxu1  ;;  %1620 = vmatmul.mubr.bf16.gmra.mxu1 %v7396_v25  ;;  %v10101_v25 = vld [vmem:[#allocation19_spill] sm:$0xff] }
 0x140   : > { %1530 = vmatprep.mubr.bf16.mxu0 %v10097_v3  ;;  %1627 = vmatprep.mubr.bf16.mxu1 %v10098_v35 }
 0x141   : > { %v841_v36 = vpop.f32.mrf.mxu0  ;;  %v938_v41 = vpop.f32.mrf.mxu1 }
 0x143   : > { %v7651_v46 = vpop.f32.mrf.mxu0  ;;  %v7653_v47 = vpop.f32.mrf.mxu1 }
 0x145   : > { %v844_v48 = vpop.f32.mrf.mxu0  ;;  %v941_v49 = vpop.f32.mrf.mxu1 }
 0x147   : > { %v7655_v50 = vpop.f32.mrf.mxu0  ;;  %1531 = vmatmul.mubr.bf16.gmra.mxu0 %v10099_v2  ;;  %v7658_v24 = vpop.f32.mrf.mxu1  ;;  %1628 = vmatmul.mubr.bf16.gmra.mxu1 %v10100_v31 }
 0x148   : > { %1538 = vmatprep.mubr.bf16.mxu0 %v10101_v25  ;;  %1635 = vmatprep.mubr.bf16.mxu1 %v10102_v16 }
 0x149   : > { %v849_v26 = vpop.f32.mrf.mxu0  ;;  %v946_v62 = vpop.f32.mrf.mxu1 }
 0x14b   : > { %v7663_v18 = vpop.f32.mrf.mxu0  ;;  %v7665_v19 = vpop.f32.mrf.mxu1 }
 0x14d   : > { %v852_v51 = vpop.f32.mrf.mxu0  ;;  %v949_v4 = vpop.f32.mrf.mxu1 }
 0x14f   : > { %v7667_v5 = vpop.f32.mrf.mxu0  ;;  %1539 = vmatmul.mubr.bf16.gmra.mxu0 %v10103_v14  ;;  %v7670_v38 = vpop.f32.mrf.mxu1  ;;  %1636 = vmatmul.mubr.bf16.gmra.mxu1 %v10104_v34 }
 0x150   : > { %1546 = vmatprep.mubr.bf16.mxu0 %v10105_v37  ;;  %1643 = vmatprep.mubr.bf16.mxu1 %v10106_v56  ;;  %v1698_v56 = vld [vmem:[%s9975_s8 + $0xf0] sm:$0xff] }
 0x151   : > { %v857_v43 = vpop.f32.mrf.mxu0  ;;  %v954_v58 = vpop.f32.mrf.mxu1 }
 0x152   : > { %v1696_v43 = vld [vmem:[%s9975_s8 + $0xe0] sm:$0xff] }
 0x153   : > { %v7675_v59 = vpop.f32.mrf.mxu0  ;;  %v7677_v6 = vpop.f32.mrf.mxu1 }
 0x155   : > { %v860_v7 = vpop.f32.mrf.mxu0  ;;  %v957_v8 = vpop.f32.mrf.mxu1 }
 0x156   : > { %v1689_v7 = vld [vmem:[%s9975_s8 + $0xa8] sm:$0xff] }
 0x157   : > { %v7679_v9 = vpop.f32.mrf.mxu0  ;;  %1547 = vmatmul.mubr.bf16.gmra.mxu0 %v10107_v20  ;;  %v7682_v21 = vpop.f32.mrf.mxu1  ;;  %1644 = vmatmul.mubr.bf16.gmra.mxu1 %v10108_v23 }
 0x158   : > { %1554 = vmatprep.mubr.bf16.mxu0 %v10109_v39  ;;  %1651 = vmatprep.mubr.bf16.mxu1 %v10110_v45 }
 0x159   : > { %v865_v44 = vpop.f32.mrf.mxu0  ;;  %v962_v54 = vpop.f32.mrf.mxu1 }
 0x15b   : > { %v7687_v55 = vpop.f32.mrf.mxu0  ;;  %v7689_v61 = vpop.f32.mrf.mxu1 }
 0x15d   : > { %v868_v10 = vpop.f32.mrf.mxu0  ;;  %v965_v12 = vpop.f32.mrf.mxu1 }
 0x15e   : > { %v1691_v10 = vld [vmem:[%s9975_s8 + $0xb8] sm:$0xff] }
 0x15f   : > { %v7691_v13 = vpop.f32.mrf.mxu0  ;;  %1555 = vmatmul.mubr.bf16.gmra.mxu0 %v7493_v27  ;;  %v7694_v28 = vpop.f32.mrf.mxu1  ;;  %1652 = vmatmul.mubr.bf16.gmra.mxu1 %v7495_v1  ;;  %v7706_v27 = vld [vmem:[%s9972_s5] ss:$0 sm:$0xff] }
 0x160   : > { %1562 = vmatprep.mubr.bf16.mxu0 %v7497_v17  ;;  %1659 = vmatprep.mubr.bf16.mxu1 %v7499_v15  ;;  %v10000_v15 = vmov 0.0   ;;  %v824_v49 = vadd.f32 %v7706_v27, %v7574_v40  ;;  %v835_v23 = vadd.f32 %v7706_v27, %v7639_v29 }
 0x161   : > { %v873_v33 = vpop.f32.mrf.mxu0  ;;  %v970_v52 = vpop.f32.mrf.mxu1 }
 0x162   : > { %v921_v26 = vadd.f32 %v7583_v57, %v824_v49  ;;  %v832_v57 = vadd.f32 %v7706_v27, %v7622_v60  ;;  %v1690_v52 = vld [vmem:[%s9975_s8 + $0xb0] sm:$0xff] }
 0x163   : > { %v7699_v3 = vpop.f32.mrf.mxu0  ;;  %v7701_v36 = vpop.f32.mrf.mxu1 }
 0x164   : > { %v929_v20 = vadd.f32 %v7631_v11, %v832_v57  ;;  %v1688_v11 = vld [vmem:[%s9975_s8 + $0xa0] sm:$0xff] }
 0x165   : > { %v876_v35 = vpop.f32.mrf.mxu0  ;;  %v973_v41 = vpop.f32.mrf.mxu1 }
 0x166   : > { %v932_v41 = vadd.f32 %v7641_v30, %v835_v23  ;;  %v1683_v30 = vld [vmem:[%s9975_s8 + $0x78] sm:$0xff] }
 0x167   : > { %v7708_v48 = vpop.f32.mrf.mxu0  ;;  %1563 = vmatmul.mubr.bf16.gmra.mxu0 %v7509_v53  ;;  %v7711_v1 = vpop.f32.mrf.mxu1  ;;  %1660 = vmatmul.mubr.bf16.gmra.mxu1 %v7511_v32  ;;  %v827_v32 = vadd.f32 %v7706_v27, %v7606_v22 }
 0x168   : > { %1855 = vmatprep.mubr.f32.mxu0 %v10000_v15  ;;  %2016 = vmatprep.mubr.f32.mxu1 %v10000_v15 }
 0x169   : > { %v881_v17 = vpop.f32.mrf.mxu0  ;;  %v978_v2 = vpop.f32.mrf.mxu1  ;;  %v924_v14 = vadd.f32 %v7614_v42, %v827_v32  ;;  %v1681_v32 = vld [vmem:[%s9975_s8 + $0x68] sm:$0xff] }
 0x16a   : > { %v840_v17 = vadd.f32 %v7706_v27, %v7643_v63 }
 0x16b   : > { %v7718_v31 = vpop.f32.mrf.mxu0  ;;  %v7720_v25 = vpop.f32.mrf.mxu1 }
 0x16d   : > { %v884_v53 = vpop.f32.mrf.mxu0  ;;  %v981_v16 = vpop.f32.mrf.mxu1 }
 0x16f   : > { %v1017_v62 = vpop.f32.mrf.mxu0  ;;  %v1114_v4 = vpop.f32.mrf.mxu1 }
 0x170   : > { %v1018_v51 = vadd.f32 %v1017_v62, %v921_v26 }
 0x171   : > { %v1019_v40 = vpop.f32.mrf.mxu0  ;;  %v1116_v22 = vpop.f32.mrf.mxu1 }
 0x172   : > { %v7734_v34 = vadd.f32 %v1114_v4, %v1018_v51  ;;  %v1680_v51 = vld [vmem:[%s9975_s8 + $0x60] sm:$0xff]  ;;  %v937_v40 = vadd.f32 %v7646_v0, %v840_v17  ;;  %v1673_v0 = vld [vmem:[%s9975_s8 + $0x28] sm:$0xff] }
 0x173   : > { %v1020_v37 = vpop.f32.mrf.mxu0  ;;  %v1117_v42 = vpop.f32.mrf.mxu1 }
 0x174   : > { %10111 = vst [vmem:[#allocation15_spill] sm:$0xff] %v7734_v34  ;;  %5629 = vst.msk [vmem:[%s7729_s3] sm:$0xff] %vm1742_vm0, %v7734_v34  ;;  %v1021_v58 = vadd.f32 %v1020_v37, %v924_v14  ;;  %5938 = vmatmul.mubr.msk.f32.vlgmr.msra.gmra.mxu0 %vm1742_vm0, %v7734_v34  ;;  %5954 = vmatmul.mubr.msk.f32.vlgmr.msra.gmra.mxu1 %vm1742_vm0, %v7734_v34  ;;  %v4140_v60 = vmul.f32 %v7734_v34, %v7734_v34 }
 0x175   : > { %v1022_v8 = vpop.f32.mrf.mxu0  ;;  %1861 = vmatprep.mubr.f32.mxu0 %v10000_v15  ;;  %2022 = vmatprep.mubr.f32.mxu1 %v10000_v15  ;;  %v1119_v44 = vpop.f32.mrf.mxu1  ;;  %v843_v14 = vadd.f32 %v7706_v27, %v7651_v46 }
 0x176   : > { %v7759_v39 = vadd.f32 %v1117_v42, %v1021_v58  ;;  %v4156_v45 = vsel %vm1742_vm0, %v4140_v60, 0.0  ;;  %2138 = vmatpush1.msra.mxu0 %v1696_v43  ;;  %2299 = vmatpush1.msra.mxu1 %v1698_v56  ;;  %v1682_v56 = vld [vmem:[%s9975_s8 + $0x70] sm:$0xff]  ;;  %v1675_v60 = vld [vmem:[%s9975_s8 + $0x38] sm:$0xff] }
 0x177   : > { %v1025_v54 = vpop.f32.mrf.mxu0  ;;  %4157 = vadd.xlane.f32.xlu0 %v4156_v45  ;;  %2139 = vmatprep.subr.mxu0 %v1689_v7  ;;  %v1122_v12 = vpop.f32.mrf.mxu1  ;;  %v940_v8 = vadd.f32 %v7653_v47, %v843_v14  ;;  %v1674_v47 = vld [vmem:[%s9975_s8 + $0x30] sm:$0xff] }
 0x178   : > { %10112 = vst [vmem:[#allocation16_spill] sm:$0xff] %v7759_v39  ;;  %5630 = vst.msk [vmem:[%s7729_s3 + $0x8] sm:$0xff] %vm1742_vm0, %v7759_v39  ;;  %v1026_v29 = vadd.f32 %v1025_v54, %v929_v20  ;;  %5939 = vmatmul.mubr.msk.f32.gmra.mxu0 %vm1742_vm0, %v7759_v39  ;;  %5955 = vmatmul.mubr.msk.f32.gmra.mxu1 %vm1742_vm0, %v7759_v39  ;;  %v4141_v33 = vmul.f32 %v7759_v39, %v7759_v39 }
 0x179   : > { %v1027_v35 = vpop.f32.mrf.mxu0  ;;  %1867 = vmatprep.mubr.f32.mxu0 %v10000_v15  ;;  %2028 = vmatprep.mubr.f32.mxu1 %v10000_v15  ;;  %v1124_v2 = vpop.f32.mrf.mxu1  ;;  %v848_v20 = vadd.f32 %v7706_v27, %v7655_v50 }
 0x17a   : > { %v7785_v49 = vadd.f32 %v1122_v12, %v1026_v29  ;;  %v4159_v53 = vsel %vm1742_vm0, %v4141_v33, 0.0  ;;  %2300 = vmatprep.subr.mxu1 %v1691_v10  ;;  %2140 = vmatpush1.msra.mxu0 %v1688_v11  ;;  %v1672_v10 = vld [vmem:[%s9975_s8 + $0x20] sm:$0xff]  ;;  %v7855_v12 = vld [vmem:[#allocation5 + $0x18] sm:$0xff]  ;;  %v851_v35 = vadd.f32 %v7706_v27, %v7663_v18 }
 0x17b   : > { %v1028_v26 = vpop.f32.mrf.mxu0  ;;  %4160 = vadd.xlane.f32.xlu0 %v4159_v53  ;;  %2301 = vmatpush1.msra.mxu1 %v1690_v52  ;;  %v1125_v16 = vpop.f32.mrf.mxu1  ;;  %v945_v52 = vadd.f32 %v7658_v24, %v848_v20 }
 0x17c   : > { %10113 = vst [vmem:[#allocation17_spill] sm:$0xff] %v7785_v49  ;;  %5631 = vst.msk [vmem:[%s7729_s3 + $0x10] sm:$0xff] %vm1742_vm0, %v7785_v49  ;;  %v1029_v63 = vadd.f32 %v1028_v26, %v932_v41  ;;  %5940 = vmatmul.mubr.msk.f32.gmra.mxu0 %vm1742_vm0, %v7785_v49  ;;  %5956 = vmatmul.mubr.msk.f32.gmra.mxu1 %vm1742_vm0, %v7785_v49  ;;  %v4142_v62 = vmul.f32 %v7785_v49, %v7785_v49 }
 0x17d   : > { %v1030_v4 = vpop.f32.mrf.mxu0  ;;  %1873 = vmatprep.mubr.f32.mxu0 %v10000_v15  ;;  %2034 = vmatprep.mubr.f32.mxu1 %v10000_v15  ;;  %v1127_v22 = vpop.f32.mrf.mxu1 }
 0x17e   : > { %v7811_v57 = vadd.f32 %v1125_v16, %v1029_v63  ;;  %v4162_v37 = vsel %vm1742_vm0, %v4142_v62, 0.0  ;;  %2141 = vmatprep.subr.mxu0 %v1681_v32  ;;  %2302 = vmatprep.subr.mxu1 %v1683_v30  ;;  %v948_v32 = vadd.f32 %v7665_v19, %v851_v35  ;;  %v856_v30 = vadd.f32 %v7706_v27, %v7667_v5 }
 0x17f   : > { %v1033_v43 = vpop.f32.mrf.mxu0  ;;  %4163 = vadd.xlane.f32.xlu1 %v4162_v37  ;;  %2142 = vmatpush1.msra.mxu0 %v1680_v51  ;;  %v1130_v58 = vpop.f32.mrf.mxu1 }
 0x180   : > { %10114 = vst [vmem:[#allocation18_spill] sm:$0xff] %v7811_v57  ;;  %5632 = vst.msk [vmem:[%s7729_s3 + $0x18] sm:$0xff] %vm1742_vm0, %v7811_v57  ;;  %v1034_v46 = vadd.f32 %v1033_v43, %v937_v40  ;;  %5941 = vmatmul.mubr.msk.f32.gmra.mxu0 %vm1742_vm0, %v7811_v57  ;;  %5957 = vmatmul.mubr.msk.f32.gmra.mxu1 %vm1742_vm0, %v7811_v57  ;;  %v4143_v42 = vmul.f32 %v7811_v57, %v7811_v57 }
 0x181   : > { %v1035_v7 = vpop.f32.mrf.mxu0  ;;  %1879 = vmatprep.mubr.f32.mxu0 %v10000_v15  ;;  %2040 = vmatprep.mubr.f32.mxu1 %v10000_v15  ;;  %v1132_v44 = vpop.f32.mrf.mxu1  ;;  %v953_v5 = vadd.f32 %v7670_v38, %v856_v30  ;;  %v859_v40 = vadd.f32 %v7706_v27, %v7675_v59  ;;  %v2958_v59 = vld [vmem:[%s7431_s30 + $0x50] sm:$0xff] }
 0x182   : > { %v7837_v23 = vadd.f32 %v1130_v58, %v1034_v46  ;;  %v4165_v45 = vsel %vm1742_vm0, %v4143_v42, 0.0  ;;  %2303 = vmatpush1.msra.mxu1 %v1682_v56  ;;  %2143 = vmatprep.subr.mxu0 %v1673_v0  ;;  %v864_v46 = vadd.f32 %v7706_v27, %v7679_v9  ;;  %v867_v44 = vadd.f32 %v7706_v27, %v7687_v55 }
 0x183   : > { %v1036_v54 = vpop.f32.mrf.mxu0  ;;  %4166 = vadd.xlane.f32.xlu1 %v4165_v45  ;;  %2304 = vmatprep.subr.mxu1 %v1675_v60  ;;  %v1133_v11 = vpop.f32.mrf.mxu1  ;;  %v956_v0 = vadd.f32 %v7677_v6, %v859_v40 }
 0x184   : > { %10115 = vst [vmem:[#allocation19_spill] sm:$0xff] %v7837_v23  ;;  %5633 = vst.msk [vmem:[%s7729_s3 + $0x20] sm:$0xff] %vm1742_vm0, %v7837_v23  ;;  %v1037_v50 = vadd.f32 %v1036_v54, %v940_v8  ;;  %5942 = vmatmul.mubr.msk.f32.gmra.mxu0 %vm1742_vm0, %v7837_v23  ;;  %5958 = vmatmul.mubr.msk.f32.gmra.mxu1 %vm1742_vm0, %v7837_v23  ;;  %v4144_v29 = vmul.f32 %v7837_v23, %v7837_v23 }
 0x185   : > { %v1038_v33 = vpop.f32.mrf.mxu0  ;;  %1885 = vmatprep.mubr.f32.mxu0 %v10000_v15  ;;  %2046 = vmatprep.mubr.f32.mxu1 %v10000_v15  ;;  %v1135_v17 = vpop.f32.mrf.mxu1  ;;  %v961_v20 = vadd.f32 %v7682_v21, %v864_v46  ;;  %v964_v55 = vadd.f32 %v7689_v61, %v867_v44 }
 0x186   : > { %v7862_v41 = vadd.f32 %v1133_v11, %v1037_v50  ;;  %v4168_v2 = vsel %vm1742_vm0, %v4144_v29, 0.0  ;;  %2144 = vmatpush1.msra.mxu0 %v1672_v10  ;;  %2305 = vmatpush1.msra.mxu1 %v1674_v47  ;;  %v872_v29 = vadd.f32 %v7706_v27, %v7691_v13 }
 0x187   : > { %v1041_v53 = vpop.f32.mrf.mxu0  ;;  %4169 = vadd.xlane.f32.xlu0 %v4168_v2  ;;  %6126 = vmatprep.subr.mxu0 %v7855_v12  ;;  %v1138_v24 = vpop.f32.mrf.mxu1 }
 0x188   : > { %10116 = vst [vmem:[#allocation20_spill] sm:$0xff] %v7862_v41  ;;  %5634 = vst.msk [vmem:[%s7729_s3 + $0x28] sm:$0xff] %vm1742_vm0, %v7862_v41  ;;  %v1042_v26 = vadd.f32 %v1041_v53, %v945_v52  ;;  %5943 = vmatmul.mubr.msk.f32.gmra.mxu0 %vm1742_vm0, %v7862_v41  ;;  %5959 = vmatmul.mubr.msk.f32.gmra.mxu1 %vm1742_vm0, %v7862_v41  ;;  %v969_v53 = vadd.f32 %v7694_v28, %v872_v29 }
 0x189   : > { %v1043_v18 = vpop.f32.mrf.mxu0  ;;  %1891 = vmatprep.mubr.f32.mxu0 %v10000_v15  ;;  %2052 = vmatprep.mubr.f32.mxu1 %v10000_v15  ;;  %v1140_v16 = vpop.f32.mrf.mxu1 }
 0x18a   : > { %v7878_v63 = vadd.f32 %v1138_v24, %v1042_v26  ;;  %6158 = vmatprep.subr.mxu1 %v10000_v15  ;;  %v875_v26 = vadd.f32 %v7706_v27, %v7699_v3 }
 0x18b   : > { %v1044_v62 = vpop.f32.mrf.mxu0  ;;  %v1141_v4 = vpop.f32.mrf.mxu1 }
 0x18c   : > { %10117 = vst [vmem:[#allocation21_spill] sm:$0xff] %v7878_v63  ;;  %5635 = vst.msk [vmem:[%s7729_s3 + $0x30] sm:$0xff] %vm1742_vm0, %v7878_v63  ;;  %v1045_v51 = vadd.f32 %v1044_v62, %v948_v32  ;;  %5944 = vmatmul.mubr.msk.f32.gmra.mxu0 %vm1742_vm0, %v7878_v63  ;;  %5960 = vmatmul.mubr.msk.f32.gmra.mxu1 %vm1742_vm0, %v7878_v63  ;;  %v972_v3 = vadd.f32 %v7701_v36, %v875_v26 }
 0x18d   : > { %v1046_v19 = vpop.f32.mrf.mxu0  ;;  %1897 = vmatprep.mubr.f32.mxu0 %v10000_v15  ;;  %2058 = vmatprep.mubr.f32.mxu1 %v10000_v15  ;;  %v1143_v22 = vpop.f32.mrf.mxu1 }
 0x18e   : > { %v7893_v14 = vadd.f32 %v1141_v4, %v1045_v51  ;;  %v880_v51 = vadd.f32 %v7706_v27, %v7708_v48 }
 0x18f   : > { %v1049_v37 = vpop.f32.mrf.mxu0  ;;  %v1146_v56 = vpop.f32.mrf.mxu1 }
 0x190   : > { %10118 = vst [vmem:[#allocation22_spill] sm:$0xff] %v7893_v14  ;;  %5636 = vst.msk [vmem:[%s7729_s3 + $0x38] sm:$0xff] %vm1742_vm0, %v7893_v14  ;;  %v1050_v43 = vadd.f32 %v1049_v37, %v953_v5  ;;  %5945 = vmatmul.mubr.msk.f32.gmra.mxu0 %vm1742_vm0, %v7893_v14  ;;  %5961 = vmatmul.mubr.msk.f32.gmra.mxu1 %vm1742_vm0, %v7893_v14  ;;  %v977_v37 = vadd.f32 %v7711_v1, %v880_v51 }
 0x191   : > { %v1051_v38 = vpop.f32.mrf.mxu0  ;;  %1903 = vmatprep.mubr.f32.mxu0 %v10000_v15  ;;  %2064 = vmatprep.mubr.f32.mxu1 %v10000_v15  ;;  %v1148_v42 = vpop.f32.mrf.mxu1 }
 0x192   : > { %v7908_v58 = vadd.f32 %v1146_v56, %v1050_v43  ;;  %v883_v43 = vadd.f32 %v7706_v27, %v7718_v31 }
 0x193   : > { %v1052_v60 = vpop.f32.mrf.mxu0  ;;  %v1149_v8 = vpop.f32.mrf.mxu1 }
 0x194   : > { %10119 = vst [vmem:[#allocation23_spill] sm:$0xff] %v7908_v58  ;;  %5637 = vst.msk [vmem:[%s7729_s3 + $0x40] sm:$0xff] %vm1742_vm0, %v7908_v58  ;;  %v1053_v7 = vadd.f32 %v1052_v60, %v956_v0  ;;  %2997 = vperm.xlu1 %6315, %v2958_v59   ;;  %5946 = vmatmul.mubr.msk.f32.gmra.mxu0 %vm1742_vm0, %v7908_v58  ;;  %v4148_v6 = vmul.f32 %v7908_v58, %v7908_v58 }
 0x195   : > { %5962 = vmatmul.mubr.msk.f32.gmra.mxu1 %vm1742_vm0, %v7908_v58  ;;  %v1054_v9 = vpop.f32.mrf.mxu0  ;;  %1909 = vmatprep.mubr.f32.mxu0 %v10000_v15  ;;  %v1151_v54 = vpop.f32.mrf.mxu1  ;;  %v980_v1 = vadd.f32 %v7720_v25, %v883_v43 }
 0x196   : > { %v7923_v45 = vadd.f32 %v1149_v8, %v1053_v7  ;;  %v4180_v10 = vsel %vm1742_vm0, %v4148_v6, 0.0  ;;  %2070 = vmatprep.mubr.f32.mxu1 %v10000_v15 }
 0x197   : > { %v1057_v47 = vpop.f32.mrf.mxu0  ;;  %4181 = vadd.xlane.f32.xlu0 %v4180_v10  ;;  %v1154_v11 = vpop.f32.mrf.mxu1 }
 0x198   : > { %10120 = vst [vmem:[#allocation24_spill] sm:$0xff] %v7923_v45  ;;  %5638 = vst.msk [vmem:[%s7729_s3 + $0x48] sm:$0xff] %vm1742_vm0, %v7923_v45  ;;  %v1058_v50 = vadd.f32 %v1057_v47, %v961_v20  ;;  %5947 = vmatmul.mubr.msk.f32.gmra.mxu0 %vm1742_vm0, %v7923_v45  ;;  %v8010_v20 = vld [vmem:[#allocation7] ss:$0 sm:$0xff] }
 0x199   : > { %5963 = vmatmul.mubr.msk.f32.gmra.mxu1 %vm1742_vm0, %v7923_v45  ;;  %v1059_v21 = vpop.f32.mrf.mxu0  ;;  %1915 = vmatprep.mubr.f32.mxu0 %v10000_v15  ;;  %v1156_v52 = vpop.f32.mrf.mxu1 }
 0x19a   : > { %v7938_v33 = vadd.f32 %v1154_v11, %v1058_v50  ;;  %2076 = vmatprep.mubr.f32.mxu1 %v10000_v15 }
 0x19b   : > { %v1060_v35 = vpop.f32.mrf.mxu0  ;;  %v1157_v2 = vpop.f32.mrf.mxu1 }
 0x19c   : > { %10121 = vst [vmem:[#allocation25_spill] sm:$0xff] %v7938_v33  ;;  %5639 = vst.msk [vmem:[%s7729_s3 + $0x50] sm:$0xff] %vm1742_vm0, %v7938_v33  ;;  %v1061_v17 = vadd.f32 %v1060_v35, %v964_v55  ;;  %5948 = vmatmul.mubr.msk.f32.gmra.mxu0 %vm1742_vm0, %v7938_v33  ;;  %v4150_v61 = vmul.f32 %v7938_v33, %v7938_v33  ;;  %v4145_v35 = vmul.f32 %v7862_v41, %v7862_v41 }
 0x19d   : > { %5964 = vmatmul.mubr.msk.f32.gmra.mxu1 %vm1742_vm0, %v7938_v33  ;;  %v1062_v13 = vpop.f32.mrf.mxu0  ;;  %1921 = vmatprep.mubr.f32.mxu0 %v10000_v15  ;;  %v1159_v18 = vpop.f32.mrf.mxu1 }
 0x19e   : > { %v7954_v24 = vadd.f32 %v1157_v2, %v1061_v17  ;;  %v4186_v32 = vsel %vm1742_vm0, %v4150_v61, 0.0  ;;  %2082 = vmatprep.mubr.f32.mxu1 %v10000_v15  ;;  %v3064_v61 = vld [vmem:[#allocation5 + $0x10] sm:$0xff] }
 0x19f   : > { %v1065_v30 = vpop.f32.mrf.mxu0  ;;  %4187 = vadd.xlane.f32.xlu0 %v4186_v32  ;;  %v1162_v62 = vpop.f32.mrf.mxu1  ;;  %v4171_v32 = vsel %vm1742_vm0, %v4145_v35, 0.0 }
 0x1a0   : > { %10122 = vst [vmem:[#allocation26_spill] sm:$0xff] %v7954_v24  ;;  %5640 = vst.msk [vmem:[%s7729_s3 + $0x58] sm:$0xff] %vm1742_vm0, %v7954_v24  ;;  %v1066_v16 = vadd.f32 %v1065_v30, %v969_v53  ;;  %5949 = vmatmul.mubr.msk.f32.gmra.mxu0 %vm1742_vm0, %v7954_v24  ;;  %v4146_v30 = vmul.f32 %v7878_v63, %v7878_v63 }
 0x1a1   : > { %5965 = vmatmul.mubr.msk.f32.gmra.mxu1 %vm1742_vm0, %v7954_v24  ;;  %v1067_v28 = vpop.f32.mrf.mxu0  ;;  %1927 = vmatprep.mubr.f32.mxu0 %v10000_v15  ;;  %v1164_v19 = vpop.f32.mrf.mxu1 }
 0x1a2   : > { %v7969_v4 = vadd.f32 %v1162_v62, %v1066_v16  ;;  %2088 = vmatprep.mubr.f32.mxu1 %v10000_v15  ;;  %v3063_v28 = vld [vmem:[#allocation5 + $0x8] sm:$0xff] }
 0x1a3   : > { %v1068_v5 = vpop.f32.mrf.mxu0  ;;  %v1165_v22 = vpop.f32.mrf.mxu1 }
 0x1a4   : > { %10123 = vst [vmem:[#allocation27_spill] sm:$0xff] %v7969_v4  ;;  %5641 = vst.msk [vmem:[%s7729_s3 + $0x60] sm:$0xff] %vm1742_vm0, %v7969_v4  ;;  %v1069_v40 = vadd.f32 %v1068_v5, %v972_v3  ;;  %5950 = vmatmul.mubr.msk.f32.gmra.mxu0 %vm1742_vm0, %v7969_v4  ;;  %v4152_v36 = vmul.f32 %v7969_v4, %v7969_v4  ;;  %v4174_v5 = vsel %vm1742_vm0, %v4146_v30, 0.0 }
 0x1a5   : > { %5966 = vmatmul.mubr.msk.f32.gmra.mxu1 %vm1742_vm0, %v7969_v4  ;;  %v1070_v48 = vpop.f32.mrf.mxu0  ;;  %1933 = vmatprep.mubr.f32.mxu0 %v10000_v15  ;;  %v1167_v38 = vpop.f32.mrf.mxu1 }
 0x1a6   : > { %v7985_v56 = vadd.f32 %v1165_v22, %v1069_v40  ;;  %v4192_v59 = vsel %vm1742_vm0, %v4152_v36, 0.0  ;;  %2094 = vmatprep.mubr.f32.mxu1 %v10000_v15  ;;  %v4147_v40 = vmul.f32 %v7893_v14, %v7893_v14  ;;  %v3062_v48 = vld [vmem:[#allocation5] sm:$0xff] }
 0x1a7   : > { %v1073_v0 = vpop.f32.mrf.mxu0  ;;  %4193 = vadd.xlane.f32.xlu0 %v4192_v59  ;;  %v1170_v42 = vpop.f32.mrf.mxu1 }
 0x1a8   : > { %10124 = vst [vmem:[#allocation28_spill] sm:$0xff] %v7985_v56  ;;  %5642 = vst.msk [vmem:[%s7729_s3 + $0x68] sm:$0xff] %vm1742_vm0, %v7985_v56  ;;  %v1074_v46 = vadd.f32 %v1073_v0, %v977_v37  ;;  %5951 = vmatmul.mubr.msk.f32.gmra.mxu0 %vm1742_vm0, %v7985_v56  ;;  %v4177_v0 = vsel %vm1742_vm0, %v4147_v40, 0.0  ;;  %v4153_v35 = vmul.f32 %v7985_v56, %v7985_v56 }
 0x1a9   : > { %5967 = vmatmul.mubr.msk.f32.gmra.mxu1 %vm1742_vm0, %v7985_v56  ;;  %v1075_v27 = vpop.f32.mrf.mxu0  ;;  %1939 = vmatprep.mubr.f32.mxu0 %v10000_v15  ;;  %v1172_v60 = vpop.f32.mrf.mxu1 }
 0x1aa   : > { %v7998_v31 = vadd.f32 %v1170_v42, %v1074_v46  ;;  %2100 = vmatprep.mubr.f32.mxu1 %v10000_v15  ;;  %v4149_v46 = vmul.f32 %v7923_v45, %v7923_v45  ;;  %v4195_v30 = vsel %vm1742_vm0, %v4153_v35, 0.0 }
 0x1ab   : > { %v1076_v7 = vpop.f32.mrf.mxu0  ;;  %v1173_v6 = vpop.f32.mrf.mxu1 }
 0x1ac   : > { %10125 = vst [vmem:[#allocation29_spill] sm:$0xff] %v7998_v31  ;;  %5643 = vst.msk [vmem:[%s7729_s3 + $0x70] sm:$0xff] %vm1742_vm0, %v7998_v31  ;;  %v1077_v8 = vadd.f32 %v1076_v7, %v980_v1  ;;  %5952 = vmatmul.mubr.msk.f32.gmra.mxu0 %vm1742_vm0, %v7998_v31  ;;  %v4154_v9 = vmul.f32 %v7998_v31, %v7998_v31 }
 0x1ad   : > { %5968 = vmatmul.mubr.msk.f32.gmra.mxu1 %vm1742_vm0, %v7998_v31  ;;  %v1078_v25 = vpop.f32.mrf.mxu0  ;;  %1945 = vmatprep.mubr.f32.mxu0 %v10000_v15  ;;  %v1175_v54 = vpop.f32.mrf.mxu1 }
 0x1ae   : > { %v8013_v44 = vadd.f32 %v1173_v6, %v1077_v8  ;;  %v4198_v10 = vsel %vm1742_vm0, %v4154_v9, 0.0  ;;  %2106 = vmatprep.mubr.f32.mxu1 %v10000_v15  ;;  %v2959_v8 = vld [vmem:[%s7431_s30 + $0x58] sm:$0xff]  ;;  %v4183_v9 = vsel %vm1742_vm0, %v4149_v46, 0.0  ;;  %v4151_v25 = vmul.f32 %v7954_v24, %v7954_v24 }
 0x1af   : > { %v1314_v47 = vpop.f32.mrf.mxu0  ;;  %4199 = vadd.xlane.f32.xlu0 %v4198_v10  ;;  %v1411_v11 = vpop.f32.mrf.mxu1 }
 0x1b0   : > { %10126 = vst [vmem:[#allocation30_spill] sm:$0xff] %v8013_v44  ;;  %5644 = vst.msk [vmem:[%s7729_s3 + $0x78] sm:$0xff] %vm1742_vm0, %v8013_v44  ;;  %v1315_v50 = vadd.f32 %v8010_v20, %v1314_v47  ;;  %5953 = vmatmul.mubr.msk.f32.gmra.mxu0 %vm1742_vm0, %v8013_v44 }
 0x1b1   : > { %5969 = vmatmul.mubr.msk.f32.gmra.mxu1 %vm1742_vm0, %v8013_v44  ;;  %v1316_v21 = vpop.f32.mrf.mxu0  ;;  %2177 = vmatprep.mubr.f32.mxu0 %v10000_v15  ;;  %v1413_v29 = vpop.f32.mrf.mxu1 }
 0x1b2   : > { %v8026_v55 = vadd.f32 %v1411_v11, %v1315_v50  ;;  %2338 = vmatprep.mubr.f32.mxu1 %v10000_v15  ;;  %v2960_v21 = vld [vmem:[%s7431_s30 + $0x60] sm:$0xff] }
 0x1b3   : > { %v1317_v52 = vpop.f32.mrf.mxu0  ;;  %v1414_v2 = vpop.f32.mrf.mxu1 }
 0x1b4   : > { %v1318_v17 = vadd.f32 %v8010_v20, %v1317_v52  ;;  %5970 = vmatmul.mubr.msk.f32.vlgmr.msra.gmra.mxu0 %vm1742_vm0, %v7734_v34  ;;  %v4189_v52 = vsel %vm1742_vm0, %v4151_v25, 0.0 }
 0x1b5   : > { %5986 = vmatmul.mubr.msk.f32.vlgmr.msra.gmra.mxu1 %vm1742_vm0, %v7734_v34  ;;  %v1319_v13 = vpop.f32.mrf.mxu0  ;;  %2183 = vmatprep.mubr.f32.mxu0 %v10000_v15  ;;  %v1416_v26 = vpop.f32.mrf.mxu1 }
 0x1b6   : > { %v8037_v53 = vadd.f32 %v1414_v2, %v1318_v17  ;;  %2344 = vmatprep.mubr.f32.mxu1 %v10000_v15  ;;  %6127 = vmatpush3.msra.mxu0 %v7855_v12 }
 0x1b7   : > { %v1322_v18 = vpop.f32.mrf.mxu0  ;;  %6128 = vmatprep.subr.mxu0 %v3064_v61  ;;  %v1419_v62 = vpop.f32.mrf.mxu1 }
 0x1b8   : > { %v1323_v16 = vadd.f32 %v8010_v20, %v1322_v18  ;;  %4172 = vadd.xlane.f32.xlu1 %v4171_v32  ;;  %5971 = vmatmul.mubr.msk.f32.gmra.mxu0 %vm1742_vm0, %v7759_v39  ;;  %v2961_v18 = vld [vmem:[%s7431_s30 + $0x68] sm:$0xff] }
 0x1b9   : > { %5987 = vmatmul.mubr.msk.f32.gmra.mxu1 %vm1742_vm0, %v7759_v39  ;;  %v1324_v3 = vpop.f32.mrf.mxu0  ;;  %2189 = vmatprep.mubr.f32.mxu0 %v10000_v15  ;;  %v1421_v51 = vpop.f32.mrf.mxu1 }
 0x1ba   : > { %v8050_v12 = vadd.f32 %v1419_v62, %v1323_v16  ;;  %2350 = vmatprep.mubr.f32.mxu1 %v10000_v15  ;;  %6129 = vmatpush3.msra.mxu0 %v3064_v61  ;;  %v4155_v16 = vmul.f32 %v8013_v44, %v8013_v44 }
 0x1bb   : > { %v1325_v19 = vpop.f32.mrf.mxu0  ;;  %6130 = vmatprep.subr.mxu0 %v3063_v28  ;;  %v1422_v36 = vpop.f32.mrf.mxu1 }
 0x1bc   : > { %v1326_v22 = vadd.f32 %v8010_v20, %v1325_v19  ;;  %4175 = vadd.xlane.f32.xlu1 %v4174_v5  ;;  %5972 = vmatmul.mubr.msk.f32.gmra.mxu0 %vm1742_vm0, %v7785_v49  ;;  %v2962_v5 = vld [vmem:[%s7431_s30 + $0x70] sm:$0xff] }
 0x1bd   : > { %5988 = vmatmul.mubr.msk.f32.gmra.mxu1 %vm1742_vm0, %v7785_v49  ;;  %v1327_v37 = vpop.f32.mrf.mxu0  ;;  %2195 = vmatprep.mubr.f32.mxu0 %v10000_v15  ;;  %v1424_v38 = vpop.f32.mrf.mxu1 }
 0x1be   : > { %v8062_v43 = vadd.f32 %v1422_v36, %v1326_v22  ;;  %2356 = vmatprep.mubr.f32.mxu1 %v10000_v15  ;;  %6131 = vmatpush3.msra.mxu0 %v3063_v28  ;;  %v4201_v22 = vsel %vm1742_vm0, %v4155_v16, 0.0  ;;  %v2963_v38 = vld [vmem:[%s7431_s30 + $0x78] sm:$0xff]  ;;  %v2971_v16 = vpop.permute.xlu1 %2970  ;;  %s6784_s30 = sshll.u32 %s6860_s26, 4  ;;  %s6785_s30 = int_to_ptr.vmem [resolvable:$false] %s6784_s30 }
 0x1bf   : > { %v1330_v59 = vpop.f32.mrf.mxu0  ;;  %6132 = vmatprep.subr.mxu0 %v3062_v48  ;;  %v1427_v27 = vpop.f32.mrf.mxu1  ;;  %s6786_s3 = scalar_lea.vmem %s6785_s30, 512  ;;  %p6787_p7 = scmp.lt.s32.totalorder %s9909_s25, %s6785_s30 }
 0x1c0   : > { %v1331_v42 = vadd.f32 %v8010_v20, %v1330_v59  ;;  %4178 = vadd.xlane.f32.xlu1 %v4177_v0  ;;  %5973 = vmatmul.mubr.msk.f32.gmra.mxu0 %vm1742_vm0, %v7811_v57  ;;  %v3387_v0 = vsel %vm1742_vm0, %v7734_v34, -inf  ;;  %p6788_p13 = scmp.lt.s32.totalorder %s6786_s3, %s6780_s15 }
 0x1c1   : > { %5989 = vmatmul.mubr.msk.f32.gmra.mxu1 %vm1742_vm0, %v7811_v57  ;;  %v1332_v1 = vpop.f32.mrf.mxu0  ;;  %2201 = vmatprep.mubr.f32.mxu0 %v10000_v15  ;;  %v1429_v7 = vpop.f32.mrf.mxu1 }
 0x1c2   : > { %v8074_v60 = vadd.f32 %v1427_v27, %v1331_v42  ;;  %2362 = vmatprep.mubr.f32.mxu1 %v10000_v15  ;;  %6133 = vmatpush3.msra.mxu0 %v3062_v48  ;;  %p6789_p0 = por %p6788_p13, %p6787_p7 }
 0x1c3   : > { %v1333_v6 = vpop.f32.mrf.mxu0  ;;  %6198 = vmatprep.subr.mxu0 %v10000_v15  ;;  %v1430_v10 = vpop.f32.mrf.mxu1 }
 0x1c4   : > { %v1334_v54 = vadd.f32 %v8010_v20, %v1333_v6  ;;  %4184 = vadd.xlane.f32.xlu1 %v4183_v9  ;;  %5974 = vmatmul.mubr.msk.f32.gmra.mxu0 %vm1742_vm0, %v7837_v23  ;;  %v3411_v6 = vsel %vm1742_vm0, %v7908_v58, -inf  ;;  %p6790_p5 = pnand %p6789_p0, %p6783_p12 }
 0x1c5   : > { %5990 = vmatmul.mubr.msk.f32.gmra.mxu1 %vm1742_vm0, %v7837_v23  ;;  %v1335_v47 = vpop.f32.mrf.mxu0  ;;  %3000 = vperm.xlu0 %6314, %v2959_v8   ;;  %v1432_v11 = vpop.f32.mrf.mxu1 }
 0x1c6   : > { %v8087_v50 = vadd.f32 %v1430_v10, %v1334_v54  ;;  %2207 = vmatprep.mubr.f32.mxu0 %v10000_v15  ;;  %2368 = vmatprep.mubr.f32.mxu1 %v10000_v15 }
 0x1c7   : > { %v1338_v29 = vpop.f32.mrf.mxu0  ;;  %v1435_v2 = vpop.f32.mrf.mxu1 }
 0x1c8   : > { %v1339_v17 = vadd.f32 %v8010_v20, %v1338_v29  ;;  %4190 = vadd.xlane.f32.xlu1 %v4189_v52  ;;  %5975 = vmatmul.mubr.msk.f32.gmra.mxu0 %vm1742_vm0, %v7862_v41 }
 0x1c9   : > { %5991 = vmatmul.mubr.msk.f32.gmra.mxu1 %vm1742_vm0, %v7862_v41  ;;  %v1340_v61 = vpop.f32.mrf.mxu0  ;;  %3003 = vperm.xlu0 %6314, %v2960_v21   ;;  %v1437_v26 = vpop.f32.mrf.mxu1  ;;  %v3414_v21 = vsel %vm1742_vm0, %v7923_v45, -inf }
 0x1ca   : > { %v8100_v13 = vadd.f32 %v1435_v2, %v1339_v17  ;;  %2213 = vmatprep.mubr.f32.mxu0 %v10000_v15  ;;  %2374 = vmatprep.mubr.f32.mxu1 %v10000_v15  ;;  %v3393_v26 = vsel %vm1742_vm0, %v7785_v49, -inf }
 0x1cb   : > { %v1341_v32 = vpop.f32.mrf.mxu0  ;;  %v1438_v28 = vpop.f32.mrf.mxu1 }
 0x1cc   : > { %v1342_v62 = vadd.f32 %v8010_v20, %v1341_v32  ;;  %4196 = vadd.xlane.f32.xlu1 %v4195_v30  ;;  %5976 = vmatmul.mubr.msk.f32.gmra.mxu0 %vm1742_vm0, %v7878_v63 }
 0x1cd   : > { %5992 = vmatmul.mubr.msk.f32.gmra.mxu1 %vm1742_vm0, %v7878_v63  ;;  %v1343_v3 = vpop.f32.mrf.mxu0  ;;  %3006 = vperm.xlu0 %6314, %v2961_v18   ;;  %v1440_v19 = vpop.f32.mrf.mxu1 }
 0x1ce   : > { %v8113_v51 = vadd.f32 %v1438_v28, %v1342_v62  ;;  %2219 = vmatprep.mubr.f32.mxu0 %v10000_v15  ;;  %2380 = vmatprep.mubr.f32.mxu1 %v10000_v15  ;;  %v3417_v19 = vsel %vm1742_vm0, %v7938_v33, -inf }
 0x1cf   : > { %v8118_v40 = vpop.f32.mrf.mxu0  ;;  %v8123_v36 = vpop.f32.mrf.mxu1 }
 0x1d0   : > { %4202 = vadd.xlane.f32.xlu1 %v4201_v22  ;;  %5977 = vmatmul.mubr.msk.f32.gmra.mxu0 %vm1742_vm0, %v7893_v14 }
 0x1d1   : > { %5993 = vmatmul.mubr.msk.f32.gmra.mxu1 %vm1742_vm0, %v7893_v14  ;;  %v1348_v48 = vpop.f32.mrf.mxu0  ;;  %3009 = vperm.xlu0 %6314, %v2962_v5   ;;  %v1445_v37 = vpop.f32.mrf.mxu1 }
 0x1d2   : > { %2225 = vmatprep.mubr.f32.mxu0 %v10000_v15  ;;  %2386 = vmatprep.mubr.f32.mxu1 %v10000_v15  ;;  %v2968_v5 = vpop.permute.xlu0 %2967  ;;  %v1702_v37 = vlaneseq }
 0x1d3   : > { %v1349_v59 = vpop.f32.mrf.mxu0  ;;  %v1446_v42 = vpop.f32.mrf.mxu1 }
 0x1d4   : > { %v1350_v46 = vadd.f32 %v8010_v20, %v1349_v59  ;;  %3388 = vmax.xlane.f32.xlu1 %v3387_v0  ;;  %5978 = vmatmul.mubr.msk.f32.gmra.mxu0 %vm1742_vm0, %v7908_v58 }
 0x1d5   : > { %5994 = vmatmul.mubr.msk.f32.gmra.mxu1 %vm1742_vm0, %v7908_v58  ;;  %v1351_v27 = vpop.f32.mrf.mxu0  ;;  %3012 = vperm.xlu0 %6314, %v2963_v38   ;;  %v1448_v7 = vpop.f32.mrf.mxu1 }
 0x1d6   : > { %v8137_v1 = vadd.f32 %v1446_v42, %v1350_v46  ;;  %2231 = vmatprep.mubr.f32.mxu0 %v10000_v15  ;;  %2392 = vmatprep.mubr.f32.mxu1 %v10000_v15  ;;  %v3420_v42 = vsel %vm1742_vm0, %v7954_v24, -inf  ;;  %v2974_v27 = vpop.permute.xlu1 %2973 }
 0x1d7   : > { %v1354_v8 = vpop.f32.mrf.mxu0  ;;  %v1451_v25 = vpop.f32.mrf.mxu1 }
 0x1d8   : > { %v1355_v9 = vadd.f32 %v8010_v20, %v1354_v8  ;;  %3412 = vmax.xlane.f32.xlu1 %v3411_v6  ;;  %5979 = vmatmul.mubr.msk.f32.gmra.mxu0 %vm1742_vm0, %v7923_v45  ;;  %v8191_v6 = vand.u32 127, %v1702_v37 }
 0x1d9   : > { %5995 = vmatmul.mubr.msk.f32.gmra.mxu1 %vm1742_vm0, %v7923_v45  ;;  %v1356_v54 = vpop.f32.mrf.mxu0  ;;  %2237 = vmatprep.mubr.f32.mxu0 %v10000_v15  ;;  %v1453_v47 = vpop.f32.mrf.mxu1 }
 0x1da   : > { %v8149_v10 = vadd.f32 %v1451_v25, %v1355_v9  ;;  %2398 = vmatprep.mubr.f32.mxu1 %v10000_v15  ;;  %10127 = vst [vmem:[#allocation31_spill] sm:$0xff] %v8191_v6  ;;  %v2977_v25 = vpop.permute.xlu0 %2976  ;;  %vm3014_vm1 = vcmp.eq.s32.totalorder %v2968_v5, %v8191_v6  ;;  %vm3015_vm2 = vcmp.eq.s32.totalorder %v2971_v16, %v8191_v6 }
 0x1db   : > { %v1357_v11 = vpop.f32.mrf.mxu0  ;;  %v1454_v52 = vpop.f32.mrf.mxu1  ;;  %vm3016_vm3 = vcmp.eq.s32.totalorder %v2974_v27, %v8191_v6  ;;  %v6003_v16 = vsel %vm3015_vm2, 1.0, %v10000_v15  ;;  %vm3017_vm6 = vcmp.eq.s32.totalorder %v2977_v25, %v8191_v6  ;;  %v3432_v25 = vsel %vm1742_vm0, %v8013_v44, -inf }
 0x1dc   : > { %v1358_v29 = vadd.f32 %v8010_v20, %v1357_v11  ;;  %3415 = vmax.xlane.f32.xlu1 %v3414_v21  ;;  %5980 = vmatmul.mubr.msk.f32.gmra.mxu0 %vm1742_vm0, %v7938_v33  ;;  %v3423_v21 = vsel %vm1742_vm0, %v7969_v4, -inf }
 0x1dd   : > { %5996 = vmatmul.mubr.msk.f32.gmra.mxu1 %vm1742_vm0, %v7938_v33  ;;  %v1359_v35 = vpop.f32.mrf.mxu0  ;;  %2243 = vmatprep.mubr.f32.mxu0 %v10000_v15  ;;  %v1456_v2 = vpop.f32.mrf.mxu1 }
 0x1de   : > { %v8160_v17 = vadd.f32 %v1454_v52, %v1358_v29  ;;  %2404 = vmatprep.mubr.f32.mxu1 %v10000_v15  ;;  %v2980_v2 = vpop.permute.xlu1 %2979 }
 0x1df   : > { %v1362_v61 = vpop.f32.mrf.mxu0  ;;  %v1459_v32 = vpop.f32.mrf.mxu1  ;;  %vm3018_vm5 = vcmp.eq.s32.totalorder %v2980_v2, %v8191_v6 }
 0x1e0   : > { %v1363_v18 = vadd.f32 %v8010_v20, %v1362_v61  ;;  %3394 = vmax.xlane.f32.xlu1 %v3393_v26  ;;  %5981 = vmatmul.mubr.msk.f32.gmra.mxu0 %vm1742_vm0, %v7954_v24 }
 0x1e1   : > { %5997 = vmatmul.mubr.msk.f32.gmra.mxu1 %vm1742_vm0, %v7954_v24  ;;  %v1364_v30 = vpop.f32.mrf.mxu0  ;;  %2249 = vmatprep.mubr.f32.mxu0 %v10000_v15  ;;  %v1461_v28 = vpop.f32.mrf.mxu1 }
 0x1e2   : > { %v8171_v62 = vadd.f32 %v1459_v32, %v1363_v18  ;;  %2410 = vmatprep.mubr.f32.mxu1 %v10000_v15  ;;  %v3426_v32 = vsel %vm1742_vm0, %v7985_v56, -inf  ;;  %v6002_v30 = vsel %vm3014_vm1, 1.0, %v10000_v15  ;;  %v2983_v28 = vpop.permute.xlu0 %2982 }
 0x1e3   : > { %v1365_v3 = vpop.f32.mrf.mxu0  ;;  %v1462_v48 = vpop.f32.mrf.mxu1  ;;  %vm3019_vm8 = vcmp.eq.s32.totalorder %v2983_v28, %v8191_v6 }
 0x1e4   : > { %v1366_v22 = vadd.f32 %v8010_v20, %v1365_v3  ;;  %3418 = vmax.xlane.f32.xlu1 %v3417_v19  ;;  %5982 = vmatmul.mubr.msk.f32.gmra.mxu0 %vm1742_vm0, %v7969_v4  ;;  %v6007_v28 = vsel %vm3019_vm8, 1.0, %v10000_v15  ;;  %vm5605_vm8 = vcmask 1045509  }
 0x1e5   : > { %5998 = vmatmul.mubr.msk.f32.gmra.mxu1 %vm1742_vm0, %v7969_v4  ;;  %v1367_v38 = vpop.f32.mrf.mxu0  ;;  %2255 = vmatprep.mubr.f32.mxu0 %v10000_v15  ;;  %v1464_v0 = vpop.f32.mrf.mxu1 }
 0x1e6   : > { %v8182_v59 = vadd.f32 %v1462_v48, %v1366_v22  ;;  %2416 = vmatprep.mubr.f32.mxu1 %v10000_v15  ;;  %v6004_v38 = vsel %vm3016_vm3, 1.0, %v10000_v15  ;;  %v3390_v0 = vsel %vm1742_vm0, %v7759_v39, -inf  ;;  %vm5468_vm3 = vcmask 64512  }
 0x1e7   : > { %v1370_v46 = vpop.f32.mrf.mxu0  ;;  %v1467_v8 = vpop.f32.mrf.mxu1 }
 0x1e8   : > { %v1371_v7 = vadd.f32 %v8010_v20, %v1370_v46  ;;  %3421 = vmax.xlane.f32.xlu1 %v3420_v42  ;;  %5983 = vmatmul.mubr.msk.f32.gmra.mxu0 %vm1742_vm0, %v7985_v56  ;;  %v2986_v46 = vpop.permute.xlu1 %2985 }
 0x1e9   : > { %5999 = vmatmul.mubr.msk.f32.gmra.mxu1 %vm1742_vm0, %v7985_v56  ;;  %v1372_v9 = vpop.f32.mrf.mxu0  ;;  %2261 = vmatprep.mubr.f32.mxu0 %v10000_v15  ;;  %v1469_v47 = vpop.f32.mrf.mxu1  ;;  %vm3020_vm7 = vcmp.eq.s32.totalorder %v2986_v46, %v8191_v6  ;;  %v3402_v46 = vsel %vm1742_vm0, %v7862_v41, -inf }
 0x1ea   : > { %v8196_v54 = vadd.f32 %v1467_v8, %v1371_v7  ;;  %2422 = vmatprep.mubr.f32.mxu1 %v10000_v15  ;;  %v2989_v9 = vpop.permute.xlu0 %2988 }
 0x1eb   : > { %v1373_v11 = vpop.f32.mrf.mxu0  ;;  %v1470_v52 = vpop.f32.mrf.mxu1  ;;  %vm3021_vm10 = vcmp.eq.s32.totalorder %v2989_v9, %v8191_v6 }
 0x1ec   : > { %v1374_v29 = vadd.f32 %v8010_v20, %v1373_v11  ;;  %3424 = vmax.xlane.f32.xlu1 %v3423_v21  ;;  %5984 = vmatmul.mubr.msk.f32.gmra.mxu0 %vm1742_vm0, %v7998_v31  ;;  %v6006_v21 = vsel %vm3018_vm5, 1.0, %v10000_v15  ;;  %vm5599_vm5 = vcmask 1042434  }
 0x1ed   : > { %6000 = vmatmul.mubr.msk.f32.gmra.mxu1 %vm1742_vm0, %v7998_v31  ;;  %v1375_v35 = vpop.f32.mrf.mxu0  ;;  %2267 = vmatprep.mubr.f32.mxu0 %v10000_v15  ;;  %v1472_v26 = vpop.f32.mrf.mxu1 }
 0x1ee   : > { %v8208_v61 = vadd.f32 %v1470_v52, %v1374_v29  ;;  %2428 = vmatprep.mubr.f32.mxu1 %v10000_v15  ;;  %v3396_v29 = vsel %vm1742_vm0, %v7811_v57, -inf  ;;  %v6005_v52 = vsel %vm3017_vm6, 1.0, %v10000_v15  ;;  %vm5601_vm6 = vcmask 1043459  }
 0x1ef   : > { %v1508_v18 = vpop.f32.mrf.mxu0  ;;  %v1605_v3 = vpop.f32.mrf.mxu1 }
 0x1f0   : > { %3427 = vmax.xlane.f32.xlu1 %v3426_v32  ;;  %5985 = vmatmul.mubr.msk.f32.gmra.mxu0 %vm1742_vm0, %v8013_v44  ;;  %v1509_v19 = vadd.f32 %v1508_v18, %v8026_v55  ;;  %v3429_v55 = vsel %vm1742_vm0, %v7998_v31, -inf  ;;  %v2992_v18 = vpop.permute.xlu1 %2991 }
 0x1f1   : > { %6001 = vmatmul.mubr.msk.f32.gmra.mxu1 %vm1742_vm0, %v8013_v44  ;;  %v1510_v5 = vpop.f32.mrf.mxu0  ;;  %6134 = vmatprep.mubr.msk.f32.mxu0 %vm1742_vm0, %v6002_v30  ;;  %v1607_v22 = vpop.f32.mrf.mxu1  ;;  %vm3022_vm9 = vcmp.eq.s32.totalorder %v2992_v18, %v8191_v6 }
 0x1f2   : > { %6160 = vmatprep.mubr.msk.f32.mxu1 %vm6859_vm4, %v10000_v15  ;;  %v8232_v27 = vadd.f32 %v1605_v3, %v1509_v19  ;;  %v6008_v3 = vsel %vm3020_vm7, 1.0, %v10000_v15  ;;  %v3399_v19 = vsel %vm1742_vm0, %v7837_v23, -inf  ;;  %v2995_v5 = vpop.permute.xlu0 %2994  ;;  %vm5603_vm7 = vcmask 1044484  }
 0x1f3   : > { %v1511_v48 = vpop.f32.mrf.mxu0  ;;  %v1608_v42 = vpop.f32.mrf.mxu1  ;;  %vm3023_vm11 = vcmp.eq.s32.totalorder %v2995_v5, %v8191_v6  ;;  %v3408_v5 = vsel %vm1742_vm0, %v7893_v14, -inf }
 0x1f4   : > { %3391 = vmax.xlane.f32.xlu0 %v3390_v0  ;;  %3430 = vmax.xlane.f32.xlu1 %v3429_v55  ;;  %10128 = vst [vmem:[#allocation32_spill] sm:$0xff] %v8232_v27  ;;  %v1512_v7 = vadd.f32 %v1511_v48, %v8037_v53  ;;  %v3579_v26 = vsel %vm1742_vm0, %v8232_v27, -inf  ;;  %v6010_v55 = vsel %vm3022_vm9, 1.0, %v10000_v15  ;;  %vm5607_vm9 = vcmask 1046534  }
 0x1f5   : > { %6135 = vmatmul.mubr.msk.f32.vlgmr.msra.gmra.mxu0 %vm1742_vm0, %v6003_v16  ;;  %v1513_v8 = vpop.f32.mrf.mxu0  ;;  %v1610_v47 = vpop.f32.mrf.mxu1 }
 0x1f6   : > { %6137 = vmatprep.mubr.msk.f32.mxu0 %vm1742_vm0, %v6004_v38  ;;  %v8245_v35 = vadd.f32 %v1608_v42, %v1512_v7  ;;  %v6009_v42 = vsel %vm3021_vm10, 1.0, %v10000_v15  ;;  %vm5609_vm10 = vcmask 1047559  }
 0x1f7   : > { %v1516_v11 = vpop.f32.mrf.mxu0  ;;  %v1613_v53 = vpop.f32.mrf.mxu1 }
 0x1f8   : > { %3397 = vmax.xlane.f32.xlu0 %v3396_v29  ;;  %3433 = vmax.xlane.f32.xlu1 %v3432_v25  ;;  %10129 = vst [vmem:[#allocation33_spill] sm:$0xff] %v8245_v35  ;;  %v3582_v48 = vsel %vm1742_vm0, %v8245_v35, -inf  ;;  %v1517_v9 = vadd.f32 %v1516_v11, %v8050_v12 }
 0x1f9   : > { %6138 = vmatmul.mubr.msk.f32.gmra.mxu0 %vm1742_vm0, %v6005_v52  ;;  %v1518_v2 = vpop.f32.mrf.mxu0  ;;  %v1615_v32 = vpop.f32.mrf.mxu1  ;;  %v3405_v52 = vsel %vm1742_vm0, %v7878_v63, -inf }
 0x1fa   : > { %6140 = vmatprep.mubr.msk.f32.mxu0 %vm1742_vm0, %v6006_v21  ;;  %v6011_v2 = vsel %vm3023_vm11, 1.0, %v10000_v15  ;;  %v8272_v32 = vadd.f32 %v1613_v53, %v1517_v9 }
 0x1fb   : > { %v1519_v30 = vpop.f32.mrf.mxu0  ;;  %v1616_v16 = vpop.f32.mrf.mxu1 }
 0x1fc   : > { %3400 = vmax.xlane.f32.xlu0 %v3399_v19  ;;  %3580 = vmax.xlane.f32.xlu1 %v3579_v26  ;;  %10130 = vst [vmem:[#allocation34_spill] sm:$0xff] %v8272_v32  ;;  %v1520_v12 = vadd.f32 %v1519_v30, %v8062_v43 }
 0x1fd   : > { %6141 = vmatmul.mubr.msk.f32.gmra.mxu0 %vm1742_vm0, %v6007_v28  ;;  %v1521_v22 = vpop.f32.mrf.mxu0  ;;  %v1618_v38 = vpop.f32.mrf.mxu1 }
 0x1fe   : > { %6143 = vmatprep.mubr.msk.f32.mxu0 %vm1742_vm0, %v6008_v3  ;;  %v1347_v22 = vadd.f32 %v8010_v20, %v8118_v40 }
 0x1ff   : > { %v1524_v0 = vpop.f32.mrf.mxu0  ;;  %v1621_v8 = vpop.f32.mrf.mxu1 }
 0x200   : > { %3403 = vmax.xlane.f32.xlu0 %v3402_v46  ;;  %v4158_v7 = vpop.xlane.xlu0 %4157  ;;  %3583 = vmax.xlane.f32.xlu1 %v3582_v48  ;;  %v1525_v48 = vadd.f32 %v1524_v0, %v8074_v60  ;;  %v3585_v46 = vsel %vm1742_vm0, %v8272_v32, -inf  ;;  %v1444_v9 = vadd.f32 %v8123_v36, %v1347_v22  ;;  %v6587_v32 = vld [vmem:[%s7054_s29 + $0xd8] sm:$0xff] }
 0x201   : > { %v4204_v47 = vmax.f32 %v4158_v7, 1e-16  ;;  %6144 = vmatmul.mubr.msk.f32.gmra.mxu0 %vm1742_vm0, %v6009_v42  ;;  %v1526_v21 = vpop.f32.mrf.mxu0  ;;  %v1623_v29 = vpop.f32.mrf.mxu1 }
 0x202   : > { %6146 = vmatprep.mubr.msk.f32.mxu0 %vm1742_vm0, %v6010_v55  ;;  %v8281_v55 = vadd.f32 %v1616_v16, %v1520_v12 }
 0x203   : > { %6316 = vrsqrt.f32 %v4204_v47  ;;  %v1527_v25 = vpop.f32.mrf.mxu0  ;;  %v1624_v18 = vpop.f32.mrf.mxu1  ;;  %v8286_v47 = vadd.f32 %v1621_v8, %v1525_v48 }
 0x204   : > { %3406 = vmax.xlane.f32.xlu0 %v3405_v52  ;;  %v4161_v26 = vpop.xlane.xlu0 %4160  ;;  %10131 = vst [vmem:[#allocation35_spill] sm:$0xff] %v8281_v55  ;;  %v1528_v40 = vadd.f32 %v1527_v25, %v8087_v50  ;;  %v3588_v21 = vsel %vm1742_vm0, %v8281_v55, -inf  ;;  %v6586_v55 = vld [vmem:[%s7054_s29 + $0xc8] sm:$0xff] }
 0x205   : > { %v4205_v11 = vmax.f32 %v4161_v26, 1e-16  ;;  %6147 = vmatmul.mubr.msk.f32.gmra.mxu0 %vm1742_vm0, %v6011_v2  ;;  %v1529_v3 = vpop.f32.mrf.mxu0  ;;  %v1626_v19 = vpop.f32.mrf.mxu1  ;;  %10132 = vst [vmem:[#allocation36_spill] sm:$0xff] %v8286_v47  ;;  %v3591_v8 = vsel %vm1742_vm0, %v8286_v47, -inf  ;;  %v10146_v47 = vmov 0.0  }
 0x207   : > { %6318 = vrsqrt.f32 %v4205_v11  ;;  %v1532_v28 = vpop.f32.mrf.mxu0  ;;  %v1629_v53 = vpop.f32.mrf.mxu1  ;;  %v8293_v11 = vadd.f32 %v1624_v18, %v1528_v40 }
 0x208   : > { %v4164_v38 = vpop.xlane.xlu1 %4163  ;;  %3409 = vmax.xlane.f32.xlu0 %v3408_v5  ;;  %v1533_v50 = vadd.f32 %v1532_v28, %v8100_v13 }
 0x209   : > { %v4206_v43 = vmax.f32 %v4164_v38, 1e-16  ;;  %v1534_v30 = vpop.f32.mrf.mxu0  ;;  %v1631_v42 = vpop.f32.mrf.mxu1  ;;  %10133 = vst [vmem:[#allocation37_spill] sm:$0xff] %v8293_v11 }
 0x20b   : > { %6320 = vrsqrt.f32 %v4206_v43  ;;  %v1535_v7 = vpop.f32.mrf.mxu0  ;;  %v1632_v60 = vpop.f32.mrf.mxu1 }
 0x20c   : > { %v4167_v20 = vpop.xlane.xlu1 %4166  ;;  %3586 = vmax.xlane.f32.xlu0 %v3585_v46  ;;  %v8306_v46 = vadd.f32 %v1629_v53, %v1533_v50  ;;  %v1536_v42 = vadd.f32 %v1535_v7, %v8113_v51 }
 0x20d   : > { %v4207_v0 = vmax.f32 %v4167_v20, 1e-16  ;;  %v1537_v16 = vpop.f32.mrf.mxu0  ;;  %v1634_v29 = vpop.f32.mrf.mxu1  ;;  %v3594_v20 = vsel %vm1742_vm0, %v8293_v11, -inf }
 0x20e   : > { %10135 = vst [vmem:[#allocation39_spill] sm:$0xff] %v8306_v46 }
 0x20f   : > { %6322 = vrsqrt.f32 %v4207_v0  ;;  %v1540_v52 = vpop.f32.mrf.mxu0  ;;  %v1637_v36 = vpop.f32.mrf.mxu1 }
 0x210   : > { %v6317_v2 = vpop.eup %6316  ;;  %v1541_v26 = vadd.f32 %v1540_v52, %v1444_v9  ;;  %3589 = vmax.xlane.f32.xlu0 %v3588_v21  ;;  %v4170_v12 = vpop.xlane.xlu0 %4169  ;;  %v8321_v21 = vadd.f32 %v1632_v60, %v1536_v42  ;;  %v3597_v52 = vsel %vm1742_vm0, %v8306_v46, -inf }
 0x211   : > { %v4208_v25 = vmax.f32 %v4170_v12, 1e-16  ;;  %v4236_v3 = vmul.f32 %v6317_v2, %v7734_v34  ;;  %v1542_v19 = vpop.f32.mrf.mxu0  ;;  %v2998_v5 = vpop.permute.xlu1 %2997 }
 0x212   : > { %v8297_v22 = vadd.f32 %v1637_v36, %v1541_v26  ;;  %v1639_v48 = vpop.f32.mrf.mxu1  ;;  %vm3024_vm12 = vcmp.eq.s32.totalorder %v2998_v5, %v8191_v6  ;;  %10137 = vst [vmem:[#allocation41_spill] sm:$0xff] %v8321_v21 }
 0x213   : > { %6324 = vrsqrt.f32 %v4208_v25  ;;  %6159 = vmatpush3.xpose.msk.msra.mxu1 %vm1742_vm0, %v4236_v3  ;;  %v1543_v38 = vpop.f32.mrf.mxu0  ;;  %v6012_v43 = vsel %vm3024_vm12, 1.0, %v10000_v15  ;;  %v3600_v25 = vsel %vm1742_vm0, %v8321_v21, -inf  ;;  %v6579_v21 = vld [vmem:[%s7054_s29 + $0x58] sm:$0xff] }
 0x214   : > { %10134 = vst [vmem:[#allocation38_spill] sm:$0xff] %v8297_v22  ;;  %v6319_v18 = vpop.eup %6318  ;;  %3592 = vmax.xlane.f32.xlu0 %v3591_v8  ;;  %v3603_v13 = vsel %vm1742_vm0, %v8297_v22, -inf  ;;  %6163 = vmatprep.subr.mxu1 %v10000_v15  ;;  %v1544_v28 = vadd.f32 %v1543_v38, %v8137_v1  ;;  %v1640_v30 = vpop.f32.mrf.mxu1 }
 0x215   : > { %3604 = vmax.xlane.f32.xlu1 %v3603_v13  ;;  %v4237_v9 = vmul.f32 %v6319_v18, %v7759_v39  ;;  %v1545_v40 = vpop.f32.mrf.mxu0  ;;  %6149 = vmatprep.mubr.msk.f32.mxu0 %vm1742_vm0, %v6012_v43 }
 0x216   : > { %6161 = vmatmul.mubr.msk.f32.vlgmr.msra.gmra.mxu1 %vm1742_vm0, %v4236_v3  ;;  %v8314_v0 = vadd.f32 %v1640_v30, %v1544_v28  ;;  %v1642_v16 = vpop.f32.mrf.mxu1 }
 0x217   : > { %6164 = vmatpush3.xpose.msk.msra.mxu1 %vm1742_vm0, %v4237_v9  ;;  %6165 = vmatprep.mubr.msk.f32.mxu1 %vm6859_vm4, %v10000_v15  ;;  %v1548_v51 = vpop.f32.mrf.mxu0 }
 0x218   : > { %10136 = vst [vmem:[#allocation40_spill] sm:$0xff] %v8314_v0  ;;  %v6321_v1 = vpop.eup %6320  ;;  %3595 = vmax.xlane.f32.xlu0 %v3594_v20  ;;  %6168 = vmatprep.subr.mxu1 %v10000_v15  ;;  %v1549_v53 = vadd.f32 %v1548_v51, %v8149_v10  ;;  %v1645_v7 = vpop.f32.mrf.mxu1 }
 0x219   : > { %v4238_v29 = vmul.f32 %v6321_v1, %v7785_v49  ;;  %v1550_v2 = vpop.f32.mrf.mxu0 }
 0x21a   : > { %6166 = vmatmul.mubr.msk.f32.vlgmr.msra.gmra.mxu1 %vm1742_vm0, %v4237_v9  ;;  %v8327_v26 = vadd.f32 %v1645_v7, %v1549_v53  ;;  %v1647_v12 = vpop.f32.mrf.mxu1 }
 0x21b   : > { %6169 = vmatpush3.xpose.msk.msra.mxu1 %vm1742_vm0, %v4238_v29  ;;  %6170 = vmatprep.mubr.msk.f32.mxu1 %vm6859_vm4, %v10000_v15  ;;  %v1551_v10 = vpop.f32.mrf.mxu0 }
 0x21c   : > { %10138 = vst [vmem:[#allocation42_spill] sm:$0xff] %v8327_v26  ;;  %v6323_v36 = vpop.eup %6322  ;;  %3598 = vmax.xlane.f32.xlu0 %v3597_v52  ;;  %6173 = vmatprep.subr.mxu1 %v10000_v15  ;;  %v1552_v60 = vadd.f32 %v1551_v10, %v8160_v17  ;;  %v1648_v8 = vpop.f32.mrf.mxu1 }
 0x21d   : > { %v4239_v50 = vmul.f32 %v6323_v36, %v7811_v57  ;;  %v1553_v3 = vpop.f32.mrf.mxu0 }
 0x21e   : > { %6171 = vmatmul.mubr.msk.f32.vlgmr.msra.gmra.mxu1 %vm1742_vm0, %v4238_v29  ;;  %v8338_v19 = vadd.f32 %v1648_v8, %v1552_v60  ;;  %v1650_v5 = vpop.f32.mrf.mxu1 }
 0x21f   : > { %6174 = vmatpush3.xpose.msk.msra.mxu1 %vm1742_vm0, %v4239_v50  ;;  %6175 = vmatprep.mubr.msk.f32.mxu1 %vm6859_vm4, %v10000_v15  ;;  %v1556_v48 = vpop.f32.mrf.mxu0 }
 0x220   : > { %10139 = vst [vmem:[#allocation43_spill] sm:$0xff] %v8338_v19  ;;  %v6325_v38 = vpop.eup %6324  ;;  %3601 = vmax.xlane.f32.xlu0 %v3600_v25  ;;  %v4182_v17 = vpop.xlane.xlu0 %4181  ;;  %6178 = vmatprep.subr.mxu1 %v10000_v15  ;;  %v1557_v43 = vadd.f32 %v1556_v48, %v8171_v62 }
 0x221   : > { %v1653_v18 = vpop.f32.mrf.mxu1  ;;  %v4212_v13 = vmax.f32 %v4182_v17, 1e-16  ;;  %v4240_v28 = vmul.f32 %v6325_v38, %v7837_v23  ;;  %v1558_v30 = vpop.f32.mrf.mxu0 }
 0x222   : > { %6176 = vmatmul.mubr.msk.f32.vlgmr.msra.gmra.mxu1 %vm1742_vm0, %v4239_v50  ;;  %v8347_v42 = vadd.f32 %v1653_v18, %v1557_v43 }
 0x223   : > { %v1655_v9 = vpop.f32.mrf.mxu1  ;;  %6326 = vrsqrt.f32 %v4212_v13  ;;  %6179 = vmatpush3.xpose.msk.msra.mxu1 %vm1742_vm0, %v4240_v28  ;;  %6180 = vmatprep.mubr.msk.f32.mxu1 %vm6859_vm4, %v10000_v15  ;;  %v1559_v20 = vpop.f32.mrf.mxu0 }
 0x224   : > { %10140 = vst [vmem:[#allocation44_spill] sm:$0xff] %v8347_v42  ;;  %v1560_v40 = vadd.f32 %v1559_v20, %v8182_v59  ;;  %6183 = vmatprep.subr.mxu1 %v10000_v15  ;;  %v8361_v59 = vshrl.u32 %v1702_v37, 7  ;;  %v8373_v37 = vld [vmem:[%s9976_s9] sm:$0xff] }
 0x225   : > { %v1656_v62 = vpop.f32.mrf.mxu1  ;;  %v1561_v16 = vpop.f32.mrf.mxu0 }
 0x226   : > { %6181 = vmatmul.mubr.msk.f32.vlgmr.msra.gmra.mxu1 %vm1742_vm0, %v4240_v28  ;;  %v8355_v51 = vadd.f32 %v1656_v62, %v1560_v40  ;;  %10142 = vst [vmem:[#allocation46_spill] sm:$0xff] %v8361_v59  ;;  %v1704_v3 = vsub.s32 0, %v8361_v59  ;;  %v1712_v5 = vsub.s32 2, %v8361_v59  ;;  %v1708_v38 = vsub.s32 1, %v8361_v59 }
 0x227   : > { %v1658_v1 = vpop.f32.mrf.mxu1  ;;  %v1564_v53 = vpop.f32.mrf.mxu0  ;;  %6185 = vmatprep.mubr.msk.f32.mxu1 %vm6859_vm4, %v10000_v15  ;;  %v1716_v17 = vsub.s32 3, %v8361_v59 }
 0x228   : > { %10141 = vst [vmem:[#allocation45_spill] sm:$0xff] %v8355_v51  ;;  %v1565_v7 = vadd.f32 %v1564_v53, %v8196_v54  ;;  %v4188_v52 = vpop.xlane.xlu0 %4187  ;;  %v8381_v18 = vrot.slane %v8373_v37, %v1704_v3  ;;  %v8384_v13 = vrot.slane %v8373_v37, %v1712_v5  ;;  %v8389_v30 = vrot.slane %v8373_v37, %v1708_v38  ;;  %v6575_v5 = vld [vmem:[%s7054_s29 + $0x18] sm:$0xff] }
 0x229   : > { %v1661_v29 = vpop.f32.mrf.mxu1  ;;  %v1566_v2 = vpop.f32.mrf.mxu0  ;;  %v4214_v60 = vmax.f32 %v4188_v52, 1e-16  ;;  %v8392_v9 = vrot.slane %v8373_v37, %v1716_v17 }
 0x22a   : > { %v8363_v12 = vadd.f32 %v1661_v29, %v1565_v7  ;;  %v6572_v29 = vld [vmem:[%s7054_s29] sm:$0xff] }
 0x22b   : > { %v1663_v10 = vpop.f32.mrf.mxu1  ;;  %v1567_v36 = vpop.f32.mrf.mxu0  ;;  %6328 = vrsqrt.f32 %v4214_v60 }
 0x22c   : > { %10143 = vst [vmem:[#allocation47_spill] sm:$0xff] %v8363_v12  ;;  %v1568_v8 = vadd.f32 %v1567_v36, %v8208_v61  ;;  %v6573_v36 = vld [vmem:[%s7054_s29 + $0x10] sm:$0xff] }
 0x22d   : > { %v1664_v50 = vpop.f32.mrf.mxu1  ;;  %v1569_v25 = vpop.f32.mrf.mxu0 }
 0x22e   : > { %v8368_v54 = vadd.f32 %v1664_v50, %v1568_v8  ;;  %v6574_v50 = vld [vmem:[%s7054_s29 + $0x8] sm:$0xff] }
 0x22f   : > { %v1666_v48 = vpop.f32.mrf.mxu1 }
 0x230   : > { %10144 = vst [vmem:[#allocation48_spill] sm:$0xff] %v8368_v54  ;;  %v6327_v43 = vpop.eup %6326  ;;  %v4194_v28 = vpop.xlane.xlu0 %4193  ;;  %v6598_v54 = vld [vmem:[%s7054_s29 + $0x188] sm:$0xff] }
 0x231   : > { %v8378_v61 = vmul.f32 %v6327_v43, %v7908_v58  ;;  %v4216_v7 = vmax.f32 %v4194_v28, 1e-16 }
 0x233   : > { %6199 = vmatpush3.xpose.msk.msra.mxu0 %vm1742_vm0, %v8378_v61  ;;  %6330 = vrsqrt.f32 %v4216_v7 }
 0x234   : > { %v1857_v20 = vpop.f32.mrf.mxu0  ;;  %v2018_v40 = vpop.f32.mrf.mxu1  ;;  %6208 = vmatprep.subr.mxu0 %v10000_v15  ;;  %v6578_v15 = vld [vmem:[%s7054_s29 + $0x48] sm:$0xff] }
 0x235   : > { %v1858_v62 = vadd.f32 %v1857_v20, %v8381_v18  ;;  %v2019_v16 = vadd.f32 %v2018_v40, %v8384_v13 }
 0x236   : > { %v1859_v1 = vpop.f32.mrf.mxu0  ;;  %v2020_v53 = vpop.f32.mrf.mxu1 }
 0x237   : > { %v2435_v52 = vsub.f32 %v1858_v62, %v6572_v29  ;;  %v1860_v2 = vadd.f32 %v1859_v1, %v8389_v30  ;;  %v2021_v10 = vadd.f32 %v2020_v53, %v8392_v9  ;;  %v2437_v60 = vsub.f32 %v2019_v16, %v6573_v36  ;;  %v6576_v53 = vld [vmem:[%s7054_s29 + $0x40] sm:$0xff] }
 0x238   : > { %v1863_v8 = vpop.f32.mrf.mxu0  ;;  %v2024_v3 = vpop.f32.mrf.mxu1 }
 0x239   : > { %v2436_v25 = vsub.f32 %v1860_v2, %v6574_v50  ;;  %v2438_v48 = vsub.f32 %v2021_v10, %v6575_v5  ;;  %v4200_v38 = vpop.xlane.xlu0 %4199  ;;  %v1864_v17 = vadd.f32 %v1863_v8, %v8381_v18  ;;  %v2025_v43 = vadd.f32 %v2024_v3, %v8384_v13  ;;  %v6577_v2 = vld [vmem:[%s7054_s29 + $0x50] sm:$0xff]  ;;  %v6329_v8 = vpop.eup %6328 }
 0x23a   : > { %v1865_v28 = vpop.f32.mrf.mxu0  ;;  %v2563_v20 = vmul.f32 %v2435_v52, %v2435_v52  ;;  %v2026_v16 = vpop.f32.mrf.mxu1  ;;  %v2565_v1 = vmul.f32 %v2437_v60, %v2437_v60  ;;  %v4218_v5 = vmax.f32 %v4200_v38, 1e-16 }
 0x23b   : > { %v2564_v40 = vmul.f32 %v2436_v25, %v2436_v25  ;;  %v1866_v62 = vadd.f32 %v1865_v28, %v8389_v30  ;;  %v2443_v29 = vsub.f32 %v1864_v17, %v6576_v53  ;;  %v2445_v36 = vsub.f32 %v2025_v43, %v6577_v2  ;;  %v6580_v2 = vld [vmem:[%s7054_s29 + $0x80] sm:$0xff] }
 0x23c   : > { %v2027_v10 = vadd.f32 %v2026_v16, %v8392_v9  ;;  %v1869_v50 = vpop.f32.mrf.mxu0  ;;  %v2030_v25 = vpop.f32.mrf.mxu1  ;;  %v2566_v28 = vmul.f32 %v2438_v48, %v2438_v48  ;;  %6332 = vrsqrt.f32 %v4218_v5 }
 0x23d   : > { %v2691_v3 = vadd.f32 %v2564_v40, %v2563_v20  ;;  %v2444_v7 = vsub.f32 %v1866_v62, %v6578_v15  ;;  %v1870_v52 = vadd.f32 %v1869_v50, %v8381_v18  ;;  %v2571_v60 = vmul.f32 %v2443_v29, %v2443_v29  ;;  %v6581_v40 = vld [vmem:[%s7054_s29 + $0x90] sm:$0xff] }
 0x23e   : > { %v2446_v46 = vsub.f32 %v2027_v10, %v6579_v21  ;;  %v2031_v17 = vadd.f32 %v2030_v25, %v8384_v13  ;;  %v1871_v43 = vpop.f32.mrf.mxu0  ;;  %v2032_v20 = vpop.f32.mrf.mxu1  ;;  %v2573_v15 = vmul.f32 %v2445_v36, %v2445_v36  ;;  %v8418_v21 = vmul.f32 %v6329_v8, %v7938_v33  ;;  %v6583_v36 = vld [vmem:[%s7054_s29 + $0x98] sm:$0xff] }
 0x23f   : > { %v2692_v53 = vadd.f32 %v2691_v3, %v2565_v1  ;;  %v2572_v16 = vmul.f32 %v2444_v7, %v2444_v7  ;;  %v2451_v22 = vsub.f32 %v1870_v52, %v6580_v2  ;;  %v1872_v38 = vadd.f32 %v1871_v43, %v8389_v30  ;;  %v6582_v7 = vld [vmem:[%s7054_s29 + $0x88] sm:$0xff] }
 0x240   : > { %v2453_v62 = vsub.f32 %v2031_v17, %v6581_v40  ;;  %v2033_v48 = vadd.f32 %v2032_v20, %v8392_v9  ;;  %v3001_v29 = vpop.permute.xlu0 %3000  ;;  %v1875_v50 = vpop.f32.mrf.mxu0  ;;  %v2574_v3 = vmul.f32 %v2446_v46, %v2446_v46 }
 0x241   : > { %v8420_v10 = vadd.f32 %v2692_v53, %v2566_v28  ;;  %v2700_v1 = vadd.f32 %v2572_v16, %v2571_v60  ;;  %v2452_v52 = vsub.f32 %v1872_v38, %v6582_v7  ;;  %v2036_v25 = vpop.f32.mrf.mxu1  ;;  %v4173_v43 = vpop.xlane.xlu1 %4172  ;;  %v2579_v2 = vmul.f32 %v2451_v22, %v2451_v22  ;;  %v6584_v16 = vld [vmem:[%s7054_s29 + $0xc0] sm:$0xff] }
 0x242   : > { %v2454_v11 = vsub.f32 %v2033_v48, %v6583_v36  ;;  %vm3025_vm13 = vcmp.eq.s32.totalorder %v3001_v29, %v8191_v6  ;;  %v1876_v17 = vadd.f32 %v1875_v50, %v8381_v18  ;;  %v1877_v20 = vpop.f32.mrf.mxu0  ;;  %v2037_v60 = vadd.f32 %v2036_v25, %v8384_v13 }
 0x243   : > { %10145 = vst [vmem:[#allocation49_spill] sm:$0xff] %v8420_v10  ;;  %v2701_v40 = vadd.f32 %v2700_v1, %v2573_v15  ;;  %v2580_v8 = vmul.f32 %v2452_v52, %v2452_v52  ;;  %v6013_v28 = vsel %vm3025_vm13, 1.0, %v10146_v47  ;;  %v2038_v46 = vpop.f32.mrf.mxu1  ;;  %v2581_v53 = vmul.f32 %v2453_v62, %v2453_v62  ;;  %v6585_v62 = vld [vmem:[%s7054_s29 + $0xd0] sm:$0xff] }
 0x244   : > { %v2459_v22 = vsub.f32 %v1876_v17, %v6584_v16  ;;  %v1878_v38 = vadd.f32 %v1877_v20, %v8389_v30  ;;  %6150 = vmatmul.mubr.msk.f32.gmra.mxu0 %vm1742_vm0, %v6013_v28  ;;  %v3004_v48 = vpop.permute.xlu0 %3003  ;;  %v1881_v29 = vpop.f32.mrf.mxu0  ;;  %v4209_v1 = vmax.f32 %v4173_v43, 1e-16  ;;  %v2039_v7 = vadd.f32 %v2038_v46, %v8392_v9 }
 0x245   : > { %v8431_v15 = vadd.f32 %v2701_v40, %v2574_v3  ;;  %v2709_v50 = vadd.f32 %v2580_v8, %v2579_v2  ;;  %v2042_v52 = vpop.f32.mrf.mxu1  ;;  %v4176_v25 = vpop.xlane.xlu1 %4175  ;;  %v2582_v5 = vmul.f32 %v2454_v11, %v2454_v11  ;;  %v2461_v36 = vsub.f32 %v2037_v60, %v6585_v62 }
 0x246   : > { %v2460_v17 = vsub.f32 %v1878_v38, %v6586_v55  ;;  %vm3026_vm14 = vcmp.eq.s32.totalorder %v3004_v48, %v8191_v6  ;;  %v1883_v20 = vpop.f32.mrf.mxu0  ;;  %v2587_v16 = vmul.f32 %v2459_v22, %v2459_v22  ;;  %v2462_v35 = vsub.f32 %v2039_v7, %v6587_v32  ;;  %v8439_v43 = vpop.eup %6330  ;;  %v6588_v7 = vld [vmem:[%s7054_s29 + $0x100] sm:$0xff] }
 0x247   : > { %10147 = vst [vmem:[#allocation50_spill] sm:$0xff] %v8431_v15  ;;  %v2710_v28 = vadd.f32 %v2709_v50, %v2581_v53  ;;  %v6014_v3 = vsel %vm3026_vm14, 1.0, %v10146_v47  ;;  %v2044_v2 = vpop.f32.mrf.mxu1  ;;  %v1882_v11 = vadd.f32 %v1881_v29, %v8381_v18  ;;  %v2043_v8 = vadd.f32 %v2042_v52, %v8384_v13  ;;  %v6591_v15 = vld [vmem:[%s7054_s29 + $0x118] sm:$0xff] }
 0x248   : > { %v2588_v40 = vmul.f32 %v2460_v17, %v2460_v17  ;;  %v4210_v55 = vmax.f32 %v4176_v25, 1e-16  ;;  %6152 = vmatprep.mubr.msk.f32.mxu0 %vm1742_vm0, %v6014_v3  ;;  %v3007_v60 = vpop.permute.xlu0 %3006  ;;  %v1887_v46 = vpop.f32.mrf.mxu0  ;;  %6334 = vrsqrt.f32 %v4209_v1  ;;  %v1884_v53 = vadd.f32 %v1883_v20, %v8389_v30  ;;  %v6589_v25 = vld [vmem:[%s7054_s29 + $0x110] sm:$0xff]  ;;  %v6590_v3 = vld [vmem:[%s7054_s29 + $0x108] sm:$0xff] }
 0x249   : > { %v8444_v32 = vadd.f32 %v2710_v28, %v2582_v5  ;;  %v2045_v22 = vadd.f32 %v2044_v2, %v8392_v9  ;;  %v2048_v38 = vpop.f32.mrf.mxu1  ;;  %v4179_v48 = vpop.xlane.xlu1 %4178  ;;  %v2589_v29 = vmul.f32 %v2461_v36, %v2461_v36  ;;  %v2467_v52 = vsub.f32 %v1882_v11, %v6588_v7  ;;  %v6592_v7 = vld [vmem:[%s7054_s29 + $0x140] sm:$0xff] }
 0x24a   : > { %v2718_v50 = vadd.f32 %v2588_v40, %v2587_v16  ;;  %v2469_v62 = vsub.f32 %v2043_v8, %v6589_v25  ;;  %v1889_v17 = vpop.f32.mrf.mxu0  ;;  %v2468_v27 = vsub.f32 %v1884_v53, %v6590_v3  ;;  %vm3027_vm15 = vcmp.eq.s32.totalorder %v3007_v60, %v8191_v6 }
 0x24b   : > { %10148 = vst [vmem:[#allocation51_spill] sm:$0xff] %v8444_v32  ;;  %v2470_v5 = vsub.f32 %v2045_v22, %v6591_v15  ;;  %v1888_v1 = vadd.f32 %v1887_v46, %v8381_v18  ;;  %v2050_v20 = vpop.f32.mrf.mxu1  ;;  %v2590_v28 = vmul.f32 %v2462_v35, %v2462_v35  ;;  %6336 = vrsqrt.f32 %v4210_v55 }
 0x24c   : > { %v2719_v2 = vadd.f32 %v2718_v50, %v2589_v29  ;;  %v6015_v36 = vsel %vm3027_vm15, 1.0, %v10146_v47  ;;  %v3010_v16 = vpop.permute.xlu0 %3009  ;;  %v1893_v40 = vpop.f32.mrf.mxu0  ;;  %v2595_v11 = vmul.f32 %v2467_v52, %v2467_v52  ;;  %v2596_v8 = vmul.f32 %v2468_v27, %v2468_v27 }
 0x24d   : > { %v2475_v25 = vsub.f32 %v1888_v1, %v6592_v7  ;;  %v2049_v53 = vadd.f32 %v2048_v38, %v8384_v13  ;;  %6153 = vmatmul.mubr.msk.f32.gmra.mxu0 %vm1742_vm0, %v6015_v36  ;;  %v2054_v15 = vpop.f32.mrf.mxu1  ;;  %v4185_v60 = vpop.xlane.xlu1 %4184  ;;  %v4211_v35 = vmax.f32 %v4179_v48, 1e-16  ;;  %v1890_v55 = vadd.f32 %v1889_v17, %v8389_v30  ;;  %v6593_v1 = vld [vmem:[%s7054_s29 + $0x150] sm:$0xff]  ;;  %v6594_v7 = vld [vmem:[%s7054_s29 + $0x148] sm:$0xff] }
 0x24e   : > { %v8458_v46 = vadd.f32 %v2719_v2, %v2590_v28  ;;  %v2051_v22 = vadd.f32 %v2050_v20, %v8392_v9  ;;  %v1895_v29 = vpop.f32.mrf.mxu0  ;;  %v2597_v27 = vmul.f32 %v2469_v62, %v2469_v62  ;;  %v2727_v50 = vadd.f32 %v2596_v8, %v2595_v11  ;;  %v8466_v17 = vpop.eup %6332  ;;  %v6595_v62 = vld [vmem:[%s7054_s29 + $0x158] sm:$0xff] }
 0x24f   : > { %v2598_v52 = vmul.f32 %v2470_v5, %v2470_v5  ;;  %vm3028_vm1 = vcmp.eq.s32.totalorder %v3010_v16, %v8191_v6  ;;  %v2056_v38 = vpop.f32.mrf.mxu1  ;;  %v2603_v3 = vmul.f32 %v2475_v25, %v2475_v25  ;;  %v2477_v36 = vsub.f32 %v2049_v53, %v6593_v1 }
 0x250   : > { %10149 = vst [vmem:[#allocation52_spill] sm:$0xff] %v8458_v46  ;;  %v2476_v32 = vsub.f32 %v1890_v55, %v6594_v7  ;;  %v6016_v28 = vsel %vm3028_vm1, 1.0, %v10146_v47  ;;  %v3013_v48 = vpop.permute.xlu0 %3012  ;;  %v1899_v2 = vpop.f32.mrf.mxu0  ;;  %v2728_v20 = vadd.f32 %v2727_v50, %v2597_v27  ;;  %v2478_v11 = vsub.f32 %v2051_v22, %v6595_v62  ;;  %v6596_v22 = vld [vmem:[%s7054_s29 + $0x180] sm:$0xff] }
 0x251   : > { %v1894_v5 = vadd.f32 %v1893_v40, %v8381_v18  ;;  %v2055_v16 = vadd.f32 %v2054_v15, %v8384_v13  ;;  %6155 = vmatprep.mubr.msk.f32.mxu0 %vm1742_vm0, %v6016_v28  ;;  %v2060_v8 = vpop.f32.mrf.mxu1  ;;  %v8472_v25 = vpop.xlane.xlu1 %4190  ;;  %6338 = vrsqrt.f32 %v4211_v35  ;;  %v4213_v55 = vmax.f32 %v4185_v60, 1e-16  ;;  %v6597_v40 = vld [vmem:[%s7054_s29 + $0x190] sm:$0xff] }
 0x252   : > { %v2604_v53 = vmul.f32 %v2476_v32, %v2476_v32  ;;  %v1896_v1 = vadd.f32 %v1895_v29, %v8389_v30  ;;  %v1901_v7 = vpop.f32.mrf.mxu0  ;;  %v8475_v27 = vadd.f32 %v2728_v20, %v2598_v52  ;;  %v2057_v15 = vadd.f32 %v2056_v38, %v8392_v9  ;;  %v6599_v29 = vld [vmem:[%s7054_s29 + $0x198] sm:$0xff] }
 0x253   : > { %v2483_v50 = vsub.f32 %v1894_v5, %v6596_v22  ;;  %v2485_v62 = vsub.f32 %v2055_v16, %v6597_v40  ;;  %v2062_v28 = vpop.f32.mrf.mxu1  ;;  %v2605_v46 = vmul.f32 %v2477_v36, %v2477_v36  ;;  %vm3029_vm2 = vcmp.eq.s32.totalorder %v3013_v48, %v8191_v6 }
 0x254   : > { %10150 = vst [vmem:[#allocation53_spill] sm:$0xff] %v8475_v27  ;;  %v2736_v10 = vadd.f32 %v2604_v53, %v2603_v3  ;;  %v2484_v12 = vsub.f32 %v1896_v1, %v6598_v54  ;;  %v1905_v32 = vpop.f32.mrf.mxu0  ;;  %v2606_v60 = vmul.f32 %v2478_v11, %v2478_v11  ;;  %v2486_v51 = vsub.f32 %v2057_v15, %v6599_v29 }
 0x255   : > { %v2611_v35 = vmul.f32 %v2483_v50, %v2483_v50  ;;  %v6017_v52 = vsel %vm3029_vm2, 1.0, %v10146_v47  ;;  %v2066_v20 = vpop.f32.mrf.mxu1  ;;  %v8484_v5 = vpop.xlane.xlu1 %4196  ;;  %v1900_v3 = vadd.f32 %v1899_v2, %v8381_v18  ;;  %v2061_v54 = vadd.f32 %v2060_v8, %v8384_v13  ;;  %v6601_v8 = vld [vmem:[%s7054_s29 + $0x1d0] sm:$0xff] }
 0x256   : > { %v6335_v16 = vpop.eup %6334  ;;  %v2737_v38 = vadd.f32 %v2736_v10, %v2605_v46  ;;  %v2612_v36 = vmul.f32 %v2484_v12, %v2484_v12  ;;  %6156 = vmatmul.mubr.msk.f32.gmra.mxu0 %vm1742_vm0, %v6017_v52  ;;  %v1907_v48 = vpop.f32.mrf.mxu0  ;;  %v2613_v11 = vmul.f32 %v2485_v62, %v2485_v62  ;;  %6340 = vrsqrt.f32 %v4213_v55  ;;  %v6600_v46 = vld [vmem:[%s7054_s29 + $0x1c0] sm:$0xff]  ;;  %v6602_v55 = vld [vmem:[%s7054_s29 + $0x1c8] sm:$0xff] }
 0x257   : > { %v1902_v53 = vadd.f32 %v1901_v7, %v8389_v30  ;;  %v2063_v1 = vadd.f32 %v2062_v28, %v8392_v9  ;;  %v2068_v22 = vpop.f32.mrf.mxu1  ;;  %6200 = vmatprep.mubr.msk.f32.mxu0 %vm6859_vm4, %v10146_v47  ;;  %v2491_v2 = vsub.f32 %v1900_v3, %v6600_v46  ;;  %v2493_v50 = vsub.f32 %v2061_v54, %v6601_v8  ;;  %v6603_v7 = vld [vmem:[%s7054_s29 + $0x1d8] sm:$0xff] }
 0x258   : > { %v8493_v12 = vadd.f32 %v2737_v38, %v2606_v60  ;;  %v2745_v10 = vadd.f32 %v2612_v36, %v2611_v35  ;;  %v1911_v40 = vpop.f32.mrf.mxu0  ;;  %v6337_v15 = vpop.eup %6336  ;;  %v2614_v62 = vmul.f32 %v2486_v51, %v2486_v51  ;;  %v1906_v28 = vadd.f32 %v1905_v32, %v8381_v18 }
 0x259   : > { %v2492_v29 = vsub.f32 %v1902_v53, %v6602_v55  ;;  %v2494_v52 = vsub.f32 %v2063_v1, %v6603_v7  ;;  %v2072_v6 = vpop.f32.mrf.mxu1  ;;  %v8500_v27 = vpop.xlane.xlu1 %4202  ;;  %v2619_v35 = vmul.f32 %v2491_v2, %v2491_v2  ;;  %v4215_v38 = vmax.f32 %v8472_v25, 1e-16  ;;  %v6604_v53 = vld [vmem:[%s7054_s29 + $0x200] sm:$0xff] }
 0x25a   : > { %v2746_v60 = vadd.f32 %v2745_v10, %v2613_v11  ;;  %v2067_v36 = vadd.f32 %v2066_v20, %v8384_v13  ;;  %6201 = vmatmul.mubr.msk.f32.vlgmr.msra.gmra.mxu0 %vm1742_vm0, %v8378_v61  ;;  %v1913_v51 = vpop.f32.mrf.mxu0  ;;  %v2621_v3 = vmul.f32 %v2493_v50, %v2493_v50  ;;  %v2499_v1 = vsub.f32 %v1906_v28, %v6604_v53  ;;  %v6605_v10 = vld [vmem:[%s7054_s29 + $0x210] sm:$0xff] }
 0x25b   : > { %v2620_v54 = vmul.f32 %v2492_v29, %v2492_v29  ;;  %v4241_v32 = vmul.f32 %v6335_v16, %v7862_v41  ;;  %6209 = vmatpush3.xpose.msk.msra.mxu0 %vm1742_vm0, %v8418_v21  ;;  %v2074_v46 = vpop.f32.mrf.mxu1  ;;  %v4217_v20 = vmax.f32 %v8484_v5, 1e-16  ;;  %v1908_v61 = vadd.f32 %v1907_v48, %v8389_v30  ;;  %6210 = vmatprep.mubr.msk.f32.mxu0 %vm6859_vm4, %v10146_v47  ;;  %v6606_v29 = vld [vmem:[%s7054_s29 + $0x208] sm:$0xff] }
 0x25c   : > { %v8510_v11 = vadd.f32 %v2746_v60, %v2614_v62  ;;  %v2501_v25 = vsub.f32 %v2067_v36, %v6605_v10  ;;  %6218 = vmatprep.subr.mxu0 %v10146_v47  ;;  %v1917_v2 = vpop.f32.mrf.mxu0  ;;  %v2622_v8 = vmul.f32 %v2494_v52, %v2494_v52  ;;  %v2069_v50 = vadd.f32 %v2068_v22, %v8392_v9  ;;  %v6607_v22 = vld [vmem:[%s7054_s29 + $0x218] sm:$0xff] }
 0x25d   : > { %v2754_v16 = vadd.f32 %v2620_v54, %v2619_v35  ;;  %6184 = vmatpush3.xpose.msk.msra.mxu1 %vm1742_vm0, %v4241_v32  ;;  %v1912_v62 = vadd.f32 %v1911_v40, %v8381_v18  ;;  %v2078_v55 = vpop.f32.mrf.mxu1  ;;  %v3389_v5 = vpop.xlane.xlu1 %3388  ;;  %6342 = vrsqrt.f32 %v4215_v38  ;;  %v2627_v48 = vmul.f32 %v2499_v1, %v2499_v1  ;;  %v6608_v40 = vld [vmem:[%s7054_s29 + $0x240] sm:$0xff] }
 0x25e   : > { %v2500_v7 = vsub.f32 %v1908_v61, %v6606_v29  ;;  %6188 = vmatprep.subr.mxu1 %v10146_v47  ;;  %v2073_v28 = vadd.f32 %v2072_v6, %v8384_v13  ;;  %6211 = vmatmul.mubr.msk.f32.vlgmr.msra.gmra.mxu0 %vm1742_vm0, %v8418_v21  ;;  %v1919_v52 = vpop.f32.mrf.mxu0  ;;  %v6339_v60 = vpop.eup %6338  ;;  %v2502_v36 = vsub.f32 %v2069_v50, %v6607_v22  ;;  %6344 = vrsqrt.f32 %v4217_v20 }
 0x25f   : > { %v2755_v35 = vadd.f32 %v2754_v16, %v2621_v3  ;;  %v2507_v54 = vsub.f32 %v1912_v62, %v6608_v40  ;;  %v4242_v38 = vmul.f32 %v6337_v15, %v7878_v63  ;;  %v2080_v53 = vpop.f32.mrf.mxu1  ;;  %6220 = vmatprep.mubr.msk.f32.mxu0 %vm6859_vm4, %v10146_v47  ;;  %v2629_v1 = vmul.f32 %v2501_v25, %v2501_v25  ;;  %v6609_v16 = vld [vmem:[%s7054_s29 + $0x250] sm:$0xff] }
 0x260   : > { %v2628_v6 = vmul.f32 %v2500_v7, %v2500_v7  ;;  %6186 = vmatmul.mubr.msk.f32.vlgmr.msra.gmra.mxu1 %vm1742_vm0, %v4241_v32  ;;  %v1914_v21 = vadd.f32 %v1913_v51, %v8389_v30  ;;  %v1923_v3 = vpop.f32.mrf.mxu0  ;;  %v2630_v61 = vmul.f32 %v2502_v36, %v2502_v36  ;;  %v2509_v50 = vsub.f32 %v2073_v28, %v6609_v16  ;;  %v6610_v7 = vld [vmem:[%s7054_s29 + $0x248] sm:$0xff] }
 0x261   : > { %v8533_v10 = vadd.f32 %v2755_v35, %v2622_v8  ;;  %6189 = vmatpush3.xpose.msk.msra.mxu1 %vm1742_vm0, %v4242_v38  ;;  %v2075_v15 = vadd.f32 %v2074_v46, %v8392_v9  ;;  %v2084_v62 = vpop.f32.mrf.mxu1  ;;  %v2635_v29 = vmul.f32 %v2507_v54, %v2507_v54  ;;  %v4219_v20 = vmax.f32 %v8500_v27, 1e-16  ;;  %6190 = vmatprep.mubr.msk.f32.mxu1 %vm6859_vm4, %v10146_v47  ;;  %v6611_v8 = vld [vmem:[%s7054_s29 + $0x258] sm:$0xff]  ;;  %v8548_v27 = vpop.xlane.xlu1 %3412 }
 0x262   : > { %v2763_v25 = vadd.f32 %v2628_v6, %v2627_v48  ;;  %v2508_v32 = vsub.f32 %v1914_v21, %v6610_v7  ;;  %6193 = vmatprep.subr.mxu1 %v10146_v47  ;;  %v1925_v51 = vpop.f32.mrf.mxu0  ;;  %v4248_v35 = vmul.f32 %v8439_v43, %v7969_v4  ;;  %v1918_v46 = vadd.f32 %v1917_v2, %v8381_v18  ;;  %v6612_v2 = vld [vmem:[%s7054_s29 + $0x280] sm:$0xff] }
 0x263   : > { %v2510_v28 = vsub.f32 %v2075_v15, %v6611_v8  ;;  %v2079_v48 = vadd.f32 %v2078_v55, %v8384_v13  ;;  %v2086_v22 = vpop.f32.mrf.mxu1  ;;  %v6341_v36 = vpop.eup %6340  ;;  %v4243_v6 = vmul.f32 %v6339_v60, %v7893_v14  ;;  %v8553_v21 = vsub.f32 %v7734_v34, %v3389_v5  ;;  %v6613_v15 = vld [vmem:[%s7054_s29 + $0x290] sm:$0xff] }
 0x264   : > { %v2764_v40 = vadd.f32 %v2763_v25, %v2629_v1  ;;  %v2636_v54 = vmul.f32 %v2508_v32, %v2508_v32  ;;  %6191 = vmatmul.mubr.msk.f32.vlgmr.msra.gmra.mxu1 %vm1742_vm0, %v4242_v38  ;;  %v1929_v16 = vpop.f32.mrf.mxu0  ;;  %v2637_v43 = vmul.f32 %v2509_v50, %v2509_v50  ;;  %6219 = vmatpush3.xpose.msk.msra.mxu0 %vm1742_vm0, %v4248_v35  ;;  %6346 = vrsqrt.f32 %v4219_v20 }
 0x265   : > { %10151 = vst [vmem:[#allocation54_spill] sm:$0xff] %v8553_v21  ;;  %v2515_v55 = vsub.f32 %v1918_v46, %v6612_v2  ;;  %v2517_v7 = vsub.f32 %v2079_v48, %v6613_v15  ;;  %v1920_v8 = vadd.f32 %v1919_v52, %v8389_v30  ;;  %v2090_v1 = vpop.f32.mrf.mxu1  ;;  %6194 = vmatpush3.xpose.msk.msra.mxu1 %vm1742_vm0, %v4243_v6  ;;  %v3451_v32 = vmul.f32 1.442695, %v8553_v21  ;;  %v6614_v46 = vld [vmem:[%s7054_s29 + $0x288] sm:$0xff]  ;;  %v6620_v21 = vld [vmem:[%s7054_s29 + $0x300] sm:$0xff] }
 0x266   : > { %v8559_v25 = vadd.f32 %v2764_v40, %v2630_v61  ;;  %v2772_v38 = vadd.f32 %v2636_v54, %v2635_v29  ;;  %v2081_v5 = vadd.f32 %v2080_v53, %v8392_v9  ;;  %6195 = vmatprep.mubr.msk.f32.mxu1 %vm6859_vm4, %v10146_v47  ;;  %v8565_v60 = vpop.f32.mrf.mxu0  ;;  %v2638_v50 = vmul.f32 %v2510_v28, %v2510_v28  ;;  %v6615_v53 = vld [vmem:[%s7054_s29 + $0x298] sm:$0xff] }
 0x267   : > { %v2516_v52 = vsub.f32 %v1920_v8, %v6614_v46  ;;  %6228 = vmatprep.subr.mxu0 %v10146_v47  ;;  %6203 = vmatprep.subr.mxu1 %v10146_v47  ;;  %v8571_v61 = vpop.f32.mrf.mxu1  ;;  %v2643_v48 = vmul.f32 %v2515_v55, %v2515_v55  ;;  %v4250_v20 = vmul.f32 %v8466_v17, %v7998_v31  ;;  %v8581_v55 = vpop.xlane.xlu1 %3415  ;;  %6348 = vpow2.f32 %v3451_v32 }
 0x268   : > { %10152 = vst [vmem:[#allocation55_spill] sm:$0xff] %v8559_v25  ;;  %v2773_v29 = vadd.f32 %v2772_v38, %v2637_v43  ;;  %v2518_v40 = vsub.f32 %v2081_v5, %v6615_v53  ;;  %6221 = vmatmul.mubr.msk.f32.vlgmr.msra.gmra.mxu0 %vm1742_vm0, %v4248_v35  ;;  %v1935_v28 = vpop.f32.mrf.mxu0  ;;  %6196 = vmatmul.mubr.msk.f32.vlgmr.msra.gmra.mxu1 %vm1742_vm0, %v4243_v6 }
 0x269   : > { %v2644_v54 = vmul.f32 %v2516_v52, %v2516_v52  ;;  %v1924_v2 = vadd.f32 %v1923_v3, %v8381_v18  ;;  %v2085_v15 = vadd.f32 %v2084_v62, %v8384_v13  ;;  %v4245_v43 = vmul.f32 %v6341_v36, %v7923_v45  ;;  %v2096_v8 = vpop.f32.mrf.mxu1  ;;  %6229 = vmatpush3.xpose.msk.msra.mxu0 %vm1742_vm0, %v4250_v20  ;;  %v6616_v3 = vld [vmem:[%s7054_s29 + $0x2c0] sm:$0xff]  ;;  %v6617_v62 = vld [vmem:[%s7054_s29 + $0x2d0] sm:$0xff] }
 0x26a   : > { %v8583_v35 = vadd.f32 %v2773_v29, %v2638_v50  ;;  %v2645_v38 = vmul.f32 %v2517_v7, %v2517_v7  ;;  %v1926_v17 = vadd.f32 %v1925_v51, %v8389_v30  ;;  %v8587_v5 = vpop.f32.mrf.mxu0  ;;  %v6343_v6 = vpop.eup %6342  ;;  %v2087_v53 = vadd.f32 %v2086_v22, %v8392_v9  ;;  %v6618_v7 = vld [vmem:[%s7054_s29 + $0x2c8] sm:$0xff]  ;;  %6205 = vmatprep.mubr.msk.f32.mxu1 %vm6859_vm4, %v10146_v47 }
 0x26b   : > { %v2781_v46 = vadd.f32 %v2644_v54, %v2643_v48  ;;  %v2523_v52 = vsub.f32 %v1924_v2, %v6616_v3  ;;  %v2525_v36 = vsub.f32 %v2085_v15, %v6617_v62  ;;  %6204 = vmatpush3.xpose.msk.msra.mxu1 %vm1742_vm0, %v4245_v43  ;;  %v8593_v50 = vpop.f32.mrf.mxu1  ;;  %6230 = vmatprep.mubr.msk.f32.mxu0 %vm6859_vm4, %v10146_v47  ;;  %v6345_v2 = vpop.eup %6344  ;;  %v6619_v3 = vld [vmem:[%s7054_s29 + $0x2d8] sm:$0xff] }
 0x26c   : > { %10153 = vst [vmem:[#allocation56_spill] sm:$0xff] %v8583_v35  ;;  %v2524_v29 = vsub.f32 %v1926_v17, %v6618_v7  ;;  %v1930_v51 = vadd.f32 %v1929_v16, %v8381_v18  ;;  %v2091_v48 = vadd.f32 %v2090_v1, %v8384_v13  ;;  %v8602_v54 = vpop.f32.mrf.mxu0  ;;  %v2646_v22 = vmul.f32 %v2518_v40, %v2518_v40 }
 0x26d   : > { %v2782_v15 = vadd.f32 %v2781_v46, %v2645_v38  ;;  %v2526_v32 = vsub.f32 %v2087_v53, %v6619_v3  ;;  %6213 = vmatprep.subr.mxu1 %v10146_v47  ;;  %v2102_v17 = vpop.f32.mrf.mxu1  ;;  %v2651_v62 = vmul.f32 %v2523_v52, %v2523_v52  ;;  %6231 = vmatmul.mubr.msk.f32.vlgmr.msra.gmra.mxu0 %vm1742_vm0, %v4250_v20  ;;  %v3395_v38 = vpop.xlane.xlu1 %3394  ;;  %v6622_v3 = vld [vmem:[%s7054_s29 + $0x308] sm:$0xff] }
 0x26e   : > { %v2652_v7 = vmul.f32 %v2524_v29, %v2524_v29  ;;  %6206 = vmatmul.mubr.msk.f32.vlgmr.msra.gmra.mxu1 %vm1742_vm0, %v4245_v43  ;;  %v8608_v16 = vpop.f32.mrf.mxu0  ;;  %v2531_v34 = vsub.f32 %v1930_v51, %v6620_v21  ;;  %v4247_v40 = vmul.f32 %v6343_v6, %v7954_v24  ;;  %v2653_v52 = vmul.f32 %v2525_v36, %v2525_v36  ;;  %v6621_v43 = vld [vmem:[%s7054_s29 + $0x310] sm:$0xff] }
 0x26f   : > { %v8610_v1 = vadd.f32 %v2782_v15, %v2646_v22  ;;  %6215 = vmatprep.mubr.msk.f32.mxu1 %vm6859_vm4, %v10146_v47  ;;  %v8616_v46 = vpop.f32.mrf.mxu1  ;;  %v2533_v29 = vsub.f32 %v2091_v48, %v6621_v43  ;;  %v1932_v20 = vadd.f32 %v8565_v60, %v8389_v30  ;;  %v2654_v21 = vmul.f32 %v2526_v32, %v2526_v32  ;;  %v6623_v43 = vld [vmem:[%s7054_s29 + $0x318] sm:$0xff] }
 0x270   : > { %v2790_v53 = vadd.f32 %v2652_v7, %v2651_v62  ;;  %v8621_v22 = vpop.f32.mrf.mxu0  ;;  %6214 = vmatpush3.xpose.msk.msra.mxu1 %vm1742_vm0, %v4247_v40  ;;  %v2093_v6 = vadd.f32 %v8571_v61, %v8392_v9  ;;  %v1936_v51 = vadd.f32 %v1935_v28, %v8381_v18  ;;  %v2097_v36 = vadd.f32 %v2096_v8, %v8384_v13 }
 0x271   : > { %10154 = vst [vmem:[#allocation57_spill] sm:$0xff] %v8610_v1  ;;  %v8628_v15 = vpop.f32.mrf.mxu1  ;;  %v2532_v62 = vsub.f32 %v1932_v20, %v6622_v3  ;;  %6223 = vmatprep.subr.mxu1 %v10146_v47  ;;  %v4249_v60 = vmul.f32 %v6345_v2, %v7985_v56  ;;  %v8634_v32 = vsub.f32 %v7785_v49, %v3395_v38  ;;  %v6624_v1 = vld [vmem:[%s7054_s29 + $0x340] sm:$0xff] }
 0x272   : > { %v2791_v48 = vadd.f32 %v2790_v53, %v2653_v52  ;;  %v8636_v7 = vpop.f32.mrf.mxu0  ;;  %v2659_v61 = vmul.f32 %v2531_v34, %v2531_v34  ;;  %v2534_v28 = vsub.f32 %v2093_v6, %v6623_v43  ;;  %v2539_v8 = vsub.f32 %v1936_v51, %v6624_v1  ;;  %v6347_v52 = vpop.eup %6346  ;;  %v6625_v6 = vld [vmem:[%s7054_s29 + $0x350] sm:$0xff] }
 0x273   : > { %10155 = vst [vmem:[#allocation58_spill] sm:$0xff] %v8634_v32  ;;  %v8640_v35 = vpop.f32.mrf.mxu1  ;;  %v2661_v20 = vmul.f32 %v2533_v29, %v2533_v29  ;;  %v2660_v3 = vmul.f32 %v2532_v62, %v2532_v62  ;;  %6216 = vmatmul.mubr.msk.f32.vlgmr.msra.gmra.mxu1 %vm1742_vm0, %v4247_v40  ;;  %v1938_v2 = vadd.f32 %v8587_v5, %v8389_v30  ;;  %v3455_v1 = vmul.f32 1.442695, %v8634_v32  ;;  %v6626_v40 = vld [vmem:[%s7054_s29 + $0x348] sm:$0xff]  ;;  %v6628_v32 = vld [vmem:[%s7054_s29 + $0x380] sm:$0xff] }
 0x274   : > { %v8642_v53 = vadd.f32 %v2791_v48, %v2654_v21  ;;  %v8647_v38 = vpop.f32.mrf.mxu0  ;;  %v2662_v34 = vmul.f32 %v2534_v28, %v2534_v28  ;;  %v2541_v43 = vsub.f32 %v2097_v36, %v6625_v6  ;;  %6224 = vmatpush3.xpose.msk.msra.mxu1 %vm1742_vm0, %v4249_v60  ;;  %v2099_v21 = vadd.f32 %v8593_v50, %v8392_v9  ;;  %v6627_v28 = vld [vmem:[%s7054_s29 + $0x358] sm:$0xff] }
 0x275   : > { %v8654_v29 = vpop.f32.mrf.mxu1  ;;  %v2799_v51 = vadd.f32 %v2660_v3, %v2659_v61  ;;  %v2540_v48 = vsub.f32 %v1938_v2, %v6626_v40  ;;  %6225 = vmatprep.mubr.msk.f32.mxu1 %vm6859_vm4, %v10146_v47  ;;  %6233 = vmatprep.subr.mxu1 %v10146_v47  ;;  %v1942_v5 = vadd.f32 %v8602_v54, %v8381_v18  ;;  %6350 = vpow2.f32 %v3455_v1 }
 0x276   : > { %10156 = vst [vmem:[#allocation59_spill] sm:$0xff] %v8642_v53  ;;  %v8662_v36 = vpop.f32.mrf.mxu0  ;;  %v2667_v62 = vmul.f32 %v2539_v8, %v2539_v8  ;;  %v2542_v6 = vsub.f32 %v2099_v21, %v6627_v28  ;;  %v2103_v50 = vadd.f32 %v2102_v17, %v8384_v13  ;;  %v4251_v61 = vmul.f32 %v6347_v52, %v8013_v44  ;;  %v6349_v21 = vpop.eup %6348  ;;  %v6631_v53 = vld [vmem:[%s7054_s29 + $0x398] sm:$0xff] }
 0x277   : > { %v8667_v3 = vpop.f32.mrf.mxu1  ;;  %v2800_v2 = vadd.f32 %v2799_v51, %v2661_v20  ;;  %v2668_v40 = vmul.f32 %v2540_v48, %v2540_v48  ;;  %6226 = vmatmul.mubr.msk.f32.vlgmr.msra.gmra.mxu1 %vm1742_vm0, %v4249_v60  ;;  %v2547_v49 = vsub.f32 %v1942_v5, %v6628_v32  ;;  %v1944_v54 = vadd.f32 %v8608_v16, %v8389_v30  ;;  %v6629_v16 = vld [vmem:[%s7054_s29 + $0x390] sm:$0xff]  ;;  %v6630_v48 = vld [vmem:[%s7054_s29 + $0x388] sm:$0xff] }
 0x278   : > { %v8673_v8 = vpop.f32.mrf.mxu0  ;;  %v2669_v17 = vmul.f32 %v2541_v43, %v2541_v43  ;;  %6234 = vmatpush3.xpose.msk.msra.mxu1 %vm1742_vm0, %v4251_v61  ;;  %v2105_v52 = vadd.f32 %v8616_v46, %v8392_v9  ;;  %6235 = vmatprep.mubr.msk.f32.mxu1 %vm6859_vm4, %v10146_v47  ;;  %v2549_v51 = vsub.f32 %v2103_v50, %v6629_v16  ;;  %v3483_v50 = vsel %vm1742_vm0, %v6349_v21, 0.0 }
 0x279   : > { %v8680_v60 = vpop.f32.mrf.mxu1  ;;  %v8682_v32 = vadd.f32 %v2800_v2, %v2662_v34  ;;  %v2808_v20 = vadd.f32 %v2668_v40, %v2667_v62  ;;  %v2548_v5 = vsub.f32 %v1944_v54, %v6630_v48  ;;  %v2670_v1 = vmul.f32 %v2542_v6, %v2542_v6  ;;  %3484 = vadd.xlane.f32.xlu0 %v3483_v50  ;;  %v6633_v54 = vld [vmem:[%s7054_s29 + $0x3d0] sm:$0xff] }
 0x27a   : > { %v8686_v43 = vpop.f32.mrf.mxu0  ;;  %v2675_v28 = vmul.f32 %v2547_v49, %v2547_v49  ;;  %v2550_v25 = vsub.f32 %v2105_v52, %v6631_v53  ;;  %v1948_v46 = vadd.f32 %v8621_v22, %v8381_v18  ;;  %v2109_v62 = vadd.f32 %v8628_v15, %v8384_v13  ;;  %v6632_v49 = vld [vmem:[%s7054_s29 + $0x3c0] sm:$0xff] }
 0x27b   : > { %10157 = vst [vmem:[#allocation60_spill] sm:$0xff] %v8682_v32  ;;  %v8691_v47 = vpop.f32.mrf.mxu1  ;;  %v2809_v44 = vadd.f32 %v2808_v20, %v2669_v17  ;;  %v2676_v34 = vmul.f32 %v2548_v5, %v2548_v5  ;;  %6236 = vmatmul.mubr.msk.f32.vlgmr.msra.gmra.mxu1 %vm1742_vm0, %v4251_v61  ;;  %v1950_v18 = vadd.f32 %v8636_v7, %v8389_v30  ;;  %v6634_v17 = vld [vmem:[%s7054_s29 + $0x3c8] sm:$0xff]  ;;  %v6635_v5 = vld [vmem:[%s7054_s29 + $0x3d8] sm:$0xff]  ;;  %vm5597_vm4 = vcmask 1041409  }
 0x27c   : > { %v8697_v6 = vpop.f32.mrf.mxu0  ;;  %v2555_v53 = vsub.f32 %v1948_v46, %v6632_v49  ;;  %v2677_v61 = vmul.f32 %v2549_v51, %v2549_v51  ;;  %v2111_v13 = vadd.f32 %v8640_v35, %v8392_v9  ;;  %v2557_v21 = vsub.f32 %v2109_v62, %v6633_v54 }
 0x27d   : > { %v8702_v22 = vpop.f32.mrf.mxu1  ;;  %v8704_v2 = vadd.f32 %v2809_v44, %v2670_v1  ;;  %v2817_v40 = vadd.f32 %v2676_v34, %v2675_v28  ;;  %v2556_v52 = vsub.f32 %v1950_v18, %v6634_v17  ;;  %v2678_v16 = vmul.f32 %v2550_v25, %v2550_v25  ;;  %v3392_v9 = vpop.xlane.xlu0 %3391 }
 0x27e   : > { %v8708_v15 = vpop.f32.mrf.mxu0  ;;  %v2683_v48 = vmul.f32 %v2555_v53, %v2555_v53  ;;  %v2558_v51 = vsub.f32 %v2111_v13, %v6635_v5  ;;  %v2685_v46 = vmul.f32 %v2557_v21, %v2557_v21  ;;  %v1720_v5 = vsub.s32 4, %v8361_v59 }
 0x27f   : > { %10158 = vst [vmem:[#allocation61_spill] sm:$0xff] %v8704_v2  ;;  %v8712_v20 = vpop.f32.mrf.mxu1  ;;  %v2818_v30 = vadd.f32 %v2817_v40, %v2677_v61  ;;  %v2684_v44 = vmul.f32 %v2556_v52, %v2556_v52 }
 0x280   : > { %v8714_v7 = vpop.f32.mrf.mxu0  ;;  %v2686_v25 = vmul.f32 %v2558_v51, %v2558_v51 }
 0x281   : > { %v8717_v1 = vpop.f32.mrf.mxu1  ;;  %v8719_v28 = vadd.f32 %v2818_v30, %v2678_v16  ;;  %v2826_v34 = vadd.f32 %v2684_v44, %v2683_v48  ;;  %v3398_v54 = vpop.xlane.xlu0 %3397  ;;  %v8737_v48 = vsub.f32 %v7759_v39, %v3392_v9 }
 0x282   : > { %v8721_v35 = vpop.f32.mrf.mxu0  ;;  %v6351_v53 = vpop.eup %6350  ;;  %v8758_v2 = vsub.f32 %v7811_v57, %v3398_v54 }
 0x283   : > { %10159 = vst [vmem:[#allocation62_spill] sm:$0xff] %v8719_v28  ;;  %v8723_v62 = vpop.f32.mrf.mxu1  ;;  %v2827_v49 = vadd.f32 %v2826_v34, %v2685_v46  ;;  %v3419_v16 = vpop.xlane.xlu1 %3418  ;;  %v3489_v21 = vsel %vm1742_vm0, %v6351_v53, 0.0  ;;  %10161 = vst [vmem:[#allocation64_spill] sm:$0xff] %v8737_v48  ;;  %v1728_v46 = vsub.s32 6, %v8361_v59  ;;  %v3453_v9 = vmul.f32 1.442695, %v8737_v48 }
 0x284   : > { %v2203_v50 = vpop.f32.mrf.mxu0  ;;  %3490 = vadd.xlane.f32.xlu0 %v3489_v21  ;;  %v8755_v28 = vrot.slane %v8373_v37, %v1720_v5  ;;  %10165 = vst [vmem:[#allocation68_spill] sm:$0xff] %v8758_v2 }
 0x285   : > { %v8725_v18 = vpop.f32.mrf.mxu1  ;;  %v8727_v40 = vadd.f32 %v2827_v49, %v2686_v25  ;;  %v1724_v25 = vsub.s32 5, %v8361_v59  ;;  %v1732_v49 = vsub.s32 7, %v8361_v59  ;;  %v3401_v53 = vpop.xlane.xlu0 %3400  ;;  %v8764_v59 = vsub.f32 %v7908_v58, %v8548_v27 }
 0x286   : > { %v2205_v61 = vpop.f32.mrf.mxu0  ;;  %v2204_v57 = vadd.f32 %v2203_v50, %v8755_v28  ;;  %v8785_v27 = vsub.f32 %v7938_v33, %v3419_v16  ;;  %6352 = vpow2.f32 %v3453_v9  ;;  %v8803_v16 = vsel %vm1742_vm0, %v8338_v19, -inf }
 0x287   : > { %10160 = vst [vmem:[#allocation63_spill] sm:$0xff] %v8727_v40  ;;  %v8729_v13 = vpop.f32.mrf.mxu1  ;;  %v3422_v39 = vpop.xlane.xlu1 %3421  ;;  %10166 = vst [vmem:[#allocation69_spill] sm:$0xff] %v8764_v59  ;;  %v8776_v5 = vrot.slane %v8373_v37, %v1724_v25  ;;  %v8779_v54 = vrot.slane %v8373_v37, %v1732_v49  ;;  %v8795_v25 = vsel %vm1742_vm0, %v8327_v26, -inf  ;;  %v6636_v49 = vld [vmem:[%s7054_s29 + $0x120] sm:$0xff]  ;;  %v8807_v9 = vsel %vm1742_vm0, %v8347_v42, -inf }
 0x288   : > { %v2209_v17 = vpop.f32.mrf.mxu0  ;;  %10169 = vst [vmem:[#allocation72_spill] sm:$0xff] %v8785_v27  ;;  %v2471_v50 = vsub.f32 %v2204_v57, %v6636_v49  ;;  %v3467_v33 = vmul.f32 1.442695, %v8764_v59  ;;  %v8811_v26 = vsub.f32 %v7954_v24, %v3422_v39  ;;  %v2180_v19 = vadd.f32 %v8647_v38, %v8755_v28  ;;  %v10175_v59 = vld [vmem:[#allocation45_spill] sm:$0xff]  ;;  %v6637_v24 = vld [vmem:[%s7054_s29 + $0x128] sm:$0xff] }
 0x289   : > { %v8731_v52 = vpop.f32.mrf.mxu1  ;;  %v2206_v57 = vadd.f32 %v2205_v61, %v8776_v5  ;;  %v8826_v39 = vsel %vm1742_vm0, %v10175_v59, -inf  ;;  %v10178_v38 = vld [vmem:[#allocation47_spill] sm:$0xff] }
 0x28a   : > { %v8734_v30 = vpop.f32.mrf.mxu0  ;;  %10171 = vst [vmem:[#allocation74_spill] sm:$0xff] %v8811_v26  ;;  %v2599_v42 = vmul.f32 %v2471_v50, %v2471_v50  ;;  %10176 = vst [vmem:[#allocation78_spill] sm:$0xff] %v8826_v39  ;;  %v8836_v50 = vsel %vm1742_vm0, %v10178_v38, -inf  ;;  %v6638_v38 = vld [vmem:[%s7054_s29 + $0x20] sm:$0xff] }
 0x28b   : > { %v8739_v44 = vpop.f32.mrf.mxu1  ;;  %10179 = vst [vmem:[#allocation80_spill] sm:$0xff] %v8836_v50 }
 0x28c   : > { %10162 = vst [vmem:[#allocation65_spill] sm:$0xff] %v8739_v44  ;;  %v8742_v51 = vpop.f32.mrf.mxu0 }
 0x28d   : > { %v8745_v34 = vpop.f32.mrf.mxu1 }
 0x28e   : > { %10163 = vst [vmem:[#allocation66_spill] sm:$0xff] %v8745_v34  ;;  %v8749_v40 = vpop.f32.mrf.mxu0  ;;  %v8767_v34 = vrot.slane %v8373_v37, %v1728_v46  ;;  %v3457_v37 = vmul.f32 1.442695, %v8758_v2  ;;  %v8814_v2 = vsub.f32 %v7837_v23, %v3401_v53  ;;  %v3471_v53 = vmul.f32 1.442695, %v8785_v27 }
 0x28f   : > { %v8752_v21 = vpop.f32.mrf.mxu1  ;;  %v2210_v27 = vadd.f32 %v2209_v17, %v8755_v28 }
 0x290   : > { %10164 = vst [vmem:[#allocation67_spill] sm:$0xff] %v8752_v21  ;;  %v8760_v32 = vpop.f32.mrf.mxu0  ;;  %v8773_v21 = vsub.f32 %v7923_v45, %v8581_v55  ;;  %v8791_v55 = vsel %vm1742_vm0, %v8314_v0, -inf  ;;  %v3404_v45 = vpop.xlane.xlu0 %3403  ;;  %10172 = vst [vmem:[#allocation75_spill] sm:$0xff] %v8814_v2  ;;  %v2341_v61 = vadd.f32 %v8654_v29, %v8767_v34  ;;  %6354 = vpow2.f32 %v3457_v37  ;;  %v6639_v37 = vld [vmem:[%s7054_s29 + $0x160] sm:$0xff] }
 0x291   : > { %v8769_v48 = vpop.f32.mrf.mxu1  ;;  %v3459_v59 = vmul.f32 1.442695, %v8814_v2  ;;  %6356 = vpow2.f32 %v3467_v33  ;;  %v3473_v29 = vmul.f32 1.442695, %v8811_v26  ;;  %v2479_v50 = vsub.f32 %v2210_v27, %v6639_v37  ;;  %v10182_v2 = vld [vmem:[#allocation48_spill] sm:$0xff] }
 0x292   : > { %10167 = vst [vmem:[#allocation70_spill] sm:$0xff] %v8769_v48  ;;  %10168 = vst [vmem:[#allocation71_spill] sm:$0xff] %v8773_v21  ;;  %v8782_v44 = vpop.f32.mrf.mxu0  ;;  %v3469_v0 = vmul.f32 1.442695, %v8773_v21  ;;  %v2472_v21 = vsub.f32 %v2206_v57, %v6637_v24  ;;  %v8845_v57 = vsub.f32 %v7862_v41, %v3404_v45  ;;  %v8853_v17 = vsel %vm1742_vm0, %v10182_v2, -inf }
 0x293   : > { %v8787_v46 = vpop.f32.mrf.mxu1  ;;  %v2212_v45 = vadd.f32 %v8734_v30, %v8776_v5  ;;  %v2607_v37 = vmul.f32 %v2479_v50, %v2479_v50  ;;  %v2216_v26 = vadd.f32 %v8742_v51, %v8755_v28  ;;  %v6641_v30 = vld [vmem:[%s7054_s29 + $0x168] sm:$0xff]  ;;  %v6642_v50 = vld [vmem:[%s7054_s29 + $0x1a0] sm:$0xff] }
 0x294   : > { %10170 = vst [vmem:[#allocation73_spill] sm:$0xff] %v8787_v46  ;;  %v8799_v58 = vpop.f32.mrf.mxu0  ;;  %v3425_v46 = vpop.xlane.xlu1 %3424  ;;  %v2600_v24 = vmul.f32 %v2472_v21, %v2472_v21  ;;  %6358 = vpow2.f32 %v3469_v0 }
 0x295   : > { %v8817_v49 = vpop.f32.mrf.mxu1  ;;  %6360 = vpow2.f32 %v3471_v53  ;;  %v8856_v33 = vsub.f32 %v7969_v4, %v3425_v46  ;;  %v2182_v46 = vadd.f32 %v8662_v36, %v8776_v5 }
 0x296   : > { %10173 = vst [vmem:[#allocation76_spill] sm:$0xff] %v8817_v49  ;;  %v8822_v48 = vpop.f32.mrf.mxu0  ;;  %6362 = vpow2.f32 %v3459_v59  ;;  %v2739_v59 = vadd.f32 %v8493_v12, %v2607_v37  ;;  %v2222_v37 = vadd.f32 %v8760_v32, %v8755_v28  ;;  %v6646_v32 = vld [vmem:[%s7054_s29 + $0x1e0] sm:$0xff] }
 0x297   : > { %10174 = vst [vmem:[#allocation77_spill] sm:$0xff] %v8822_v48  ;;  %v8832_v23 = vpop.f32.mrf.mxu1  ;;  %v10180_v48 = vld [vmem:[#allocation53_spill] sm:$0xff]  ;;  %10183 = vst [vmem:[#allocation81_spill] sm:$0xff] %v8856_v33  ;;  %6364 = vpow2.f32 %v3473_v29  ;;  %v3475_v29 = vmul.f32 1.442695, %v8856_v33 }
 0x298   : > { %10177 = vst [vmem:[#allocation79_spill] sm:$0xff] %v8832_v23  ;;  %v2730_v49 = vadd.f32 %v10180_v48, %v2599_v42  ;;  %v8841_v39 = vpop.f32.mrf.mxu0  ;;  %10181 = vst [vmem:[#allocation53_spill] sm:$0xff] %v8845_v57  ;;  %v2439_v23 = vsub.f32 %v2180_v19, %v6638_v38  ;;  %v3407_v42 = vpop.xlane.xlu0 %3406  ;;  %v6640_v19 = vld [vmem:[%s7054_s29 + $0x30] sm:$0xff] }
 0x299   : > { %v8862_v0 = vpop.f32.mrf.mxu1  ;;  %v2441_v27 = vsub.f32 %v2341_v61, %v6640_v19  ;;  %v3428_v38 = vpop.xlane.xlu1 %3427  ;;  %v2186_v61 = vadd.f32 %v8673_v8, %v8755_v28  ;;  %v2487_v19 = vsub.f32 %v2216_v26, %v6642_v50  ;;  %v8881_v36 = vsub.f32 %v7878_v63, %v3407_v42  ;;  %v6643_v42 = vld [vmem:[%s7054_s29 + $0x28] sm:$0xff] }
 0x29a   : > { %v8849_v48 = vpop.f32.mrf.mxu0  ;;  %v8858_v21 = vadd.f32 %v2730_v49, %v2600_v24  ;;  %v3461_v49 = vmul.f32 1.442695, %v8845_v57  ;;  %v2480_v24 = vsub.f32 %v2212_v45, %v6641_v30  ;;  %v2567_v4 = vmul.f32 %v2439_v23, %v2439_v23  ;;  %v6353_v8 = vpop.eup %6352 }
 0x29b   : > { %10185 = vst [vmem:[#allocation83_spill] sm:$0xff] %v8881_v36  ;;  %v2218_v23 = vadd.f32 %v8749_v40, %v8776_v5  ;;  %v8885_v45 = vpop.f32.mrf.mxu1  ;;  %v8887_v30 = vmul.f32 %v2441_v27, %v2441_v27  ;;  %v2343_v26 = vadd.f32 %v8667_v3, %v8779_v54  ;;  %v2615_v12 = vmul.f32 %v2487_v19, %v2487_v19  ;;  %v6644_v40 = vld [vmem:[%s7054_s29 + $0x1a8] sm:$0xff]  ;;  %v6645_v27 = vld [vmem:[%s7054_s29 + $0x60] sm:$0xff] }
 0x29c   : > { %10184 = vst [vmem:[#allocation82_spill] sm:$0xff] %v8858_v21  ;;  %v8867_v53 = vpop.f32.mrf.mxu0  ;;  %v2608_v2 = vmul.f32 %v2480_v24, %v2480_v24  ;;  %10186 = vst [vmem:[#allocation84_spill] sm:$0xff] %v8885_v45  ;;  %v3410_v24 = vpop.xlane.xlu0 %3409  ;;  %v2440_v50 = vsub.f32 %v2182_v46, %v6643_v42  ;;  %6366 = vpow2.f32 %v3461_v49  ;;  %v2447_v41 = vsub.f32 %v2186_v61, %v6645_v27  ;;  %v6647_v42 = vld [vmem:[%s7054_s29 + $0x38] sm:$0xff] }
 0x29d   : > { %v2488_v57 = vsub.f32 %v2218_v23, %v6644_v40  ;;  %v8900_v45 = vpop.xlane.xlu1 %3430  ;;  %v2748_v3 = vadd.f32 %v8510_v11, %v2615_v12  ;;  %v3463_v19 = vmul.f32 1.442695, %v8881_v36  ;;  %v2495_v21 = vsub.f32 %v2222_v37, %v6646_v32  ;;  %v8911_v23 = vpop.f32.mrf.mxu1  ;;  %v10189_v37 = vld [vmem:[#allocation49_spill] sm:$0xff]  ;;  %v6648_v32 = vld [vmem:[%s7054_s29 + $0x1e8] sm:$0xff] }
 0x29e   : > { %v8877_v51 = vpop.f32.mrf.mxu0  ;;  %v8894_v33 = vadd.f32 %v2739_v59, %v2608_v2  ;;  %v2188_v46 = vadd.f32 %v8686_v43, %v8776_v5  ;;  %v8908_v49 = vsub.f32 %v7893_v14, %v3410_v24  ;;  %v3486_v59 = vsel %vm1742_vm0, %v6353_v8, 0.0  ;;  %10188 = vst [vmem:[#allocation86_spill] sm:$0xff] %v8911_v23 }
 0x29f   : > { %v2616_v2 = vmul.f32 %v2488_v57, %v2488_v57  ;;  %v2347_v61 = vadd.f32 %v8680_v60, %v8767_v34  ;;  %v2192_v11 = vadd.f32 %v8697_v6, %v8755_v28  ;;  %v2623_v12 = vmul.f32 %v2495_v21, %v2495_v21  ;;  %3487 = vadd.xlane.f32.xlu1 %v3486_v59  ;;  %v6355_v57 = vpop.eup %6354 }
 0x2a0   : > { %v8897_v63 = vpop.f32.mrf.mxu0  ;;  %10187 = vst [vmem:[#allocation85_spill] sm:$0xff] %v8908_v49  ;;  %v2224_v43 = vadd.f32 %v8782_v44, %v8776_v5  ;;  %v2694_v24 = vadd.f32 %v10189_v37, %v2567_v4  ;;  %v2442_v8 = vsub.f32 %v2343_v26, %v6647_v42  ;;  %v8922_v40 = vsub.f32 %v7985_v56, %v3428_v38  ;;  %v8928_v6 = vpop.eup %6356  ;;  %v6649_v26 = vld [vmem:[%s7054_s29 + $0x68] sm:$0xff] }
 0x2a1   : > { %v8924_v27 = vadd.f32 %v2748_v3, %v2616_v2  ;;  %v2198_v21 = vadd.f32 %v8714_v7, %v8755_v28  ;;  %6368 = vpow2.f32 %v3463_v19  ;;  %v2757_v44 = vadd.f32 %v8533_v10, %v2623_v12  ;;  %v8934_v59 = vpop.eup %6358  ;;  %v8938_v37 = vpop.f32.mrf.mxu1  ;;  %v6650_v7 = vld [vmem:[%s7054_s29 + $0xa0] sm:$0xff] }
 0x2a2   : > { %10190 = vst [vmem:[#allocation49_spill] sm:$0xff] %v8922_v40  ;;  %v8926_v60 = vpop.f32.mrf.mxu0  ;;  %v2496_v4 = vsub.f32 %v2224_v43, %v6648_v32  ;;  %6370 = vpow2.f32 %v3475_v29  ;;  %v2575_v38 = vmul.f32 %v2447_v41, %v2447_v41  ;;  %v2448_v3 = vsub.f32 %v2188_v46, %v6649_v26  ;;  %10191 = vst [vmem:[#allocation87_spill] sm:$0xff] %v8938_v37  ;;  %v8940_v42 = vpop.eup %6360  ;;  %v6651_v46 = vld [vmem:[%s7054_s29 + $0x70] sm:$0xff]  ;;  %v6666_v37 = vld [vmem:[%s7054_s29 + $0x320] sm:$0xff] }
 0x2a3   : > { %v3465_v2 = vmul.f32 1.442695, %v8908_v49  ;;  %v2568_v36 = vmul.f32 %v2440_v50, %v2440_v50  ;;  %v2455_v19 = vsub.f32 %v2192_v11, %v6650_v7  ;;  %v3434_v10 = vpop.xlane.xlu1 %3433  ;;  %3607 = vmax.xlane.f32.xlu1 %v8791_v55  ;;  %v3492_v29 = vsel %vm1742_vm0, %v6355_v57, 0.0  ;;  %v6363_v43 = vpop.eup %6362 }
 0x2a4   : > { %v2624_v12 = vmul.f32 %v2496_v4, %v2496_v4  ;;  %v8945_v41 = vmul.f32 %v2442_v8, %v2442_v8  ;;  %v2449_v32 = vsub.f32 %v2347_v61, %v6651_v46  ;;  %v2349_v26 = vadd.f32 %v8691_v47, %v8779_v54  ;;  %3493 = vadd.xlane.f32.xlu0 %v3492_v29  ;;  %v8952_v11 = vpop.f32.mrf.mxu0  ;;  %v8954_v7 = vpop.eup %6364  ;;  %v6652_v8 = vld [vmem:[%s7054_s29 + $0xe0] sm:$0xff] }
 0x2a5   : > { %v2194_v50 = vadd.f32 %v8708_v15, %v8776_v5  ;;  %v3477_v55 = vmul.f32 1.442695, %v8922_v40  ;;  %v2353_v57 = vadd.f32 %v8702_v22, %v8767_v34  ;;  %v2463_v4 = vsub.f32 %v2198_v21, %v6652_v8  ;;  %v10193_v47 = vld [vmem:[#allocation50_spill] sm:$0xff]  ;;  %v8965_v29 = vpop.f32.mrf.mxu1 }
 0x2a6   : > { %v8960_v61 = vadd.f32 %v2757_v44, %v2624_v12  ;;  %v2703_v46 = vadd.f32 %v10193_v47, %v2575_v38  ;;  %v2576_v49 = vmul.f32 %v2448_v3, %v2448_v3  ;;  %v2200_v15 = vadd.f32 %v8721_v35, %v8776_v5  ;;  %10194 = vst [vmem:[#allocation50_spill] sm:$0xff] %v8965_v29  ;;  %v6653_v38 = vld [vmem:[%s7054_s29 + $0x78] sm:$0xff] }
 0x2a7   : > { %6372 = vpow2.f32 %v3465_v2  ;;  %v2583_v56 = vmul.f32 %v2455_v19, %v2455_v19  ;;  %v8969_v40 = vsub.f32 %v7998_v31, %v8900_v45  ;;  %v2355_v22 = vadd.f32 %v8712_v20, %v8779_v54  ;;  %3610 = vmax.xlane.f32.xlu1 %v8795_v25  ;;  %v6654_v2 = vld [vmem:[%s7054_s29 + $0xa8] sm:$0xff]  ;;  %v8983_v45 = vpop.f32.mrf.mxu0 }
 0x2a8   : > { %10192 = vst [vmem:[#allocation88_spill] sm:$0xff] %v8960_v61  ;;  %v3495_v21 = vsel %vm1742_vm0, %v6363_v43, 0.0  ;;  %v8975_v44 = vadd.f32 %v2694_v24, %v2568_v36  ;;  %v8977_v35 = vmul.f32 %v2449_v32, %v2449_v32  ;;  %v8980_v3 = vsub.f32 %v2349_v26, %v6653_v38  ;;  %v10198_v36 = vld [vmem:[#allocation30_spill] sm:$0xff]  ;;  %v3581_v43 = vpop.xlane.xlu1 %3580  ;;  %v6655_v32 = vld [vmem:[%s7054_s29 + $0xb0] sm:$0xff]  ;;  %v6656_v26 = vld [vmem:[%s7054_s29 + $0xe8] sm:$0xff] }
 0x2a9   : > { %10195 = vst [vmem:[#allocation89_spill] sm:$0xff] %v8969_v40  ;;  %v2456_v19 = vsub.f32 %v2194_v50, %v6654_v2  ;;  %3496 = vadd.xlane.f32.xlu0 %v3495_v21  ;;  %v6367_v12 = vpop.eup %6366  ;;  %6374 = vpow2.f32 %v3477_v55  ;;  %v2591_v20 = vmul.f32 %v2463_v4, %v2463_v4  ;;  %v2359_v25 = vadd.f32 %v8717_v1, %v8767_v34  ;;  %v8996_v21 = vpop.xlane.xlu0 %3586 }
 0x2aa   : > { %10196 = vst [vmem:[#allocation90_spill] sm:$0xff] %v8977_v35  ;;  %10197 = vst [vmem:[#allocation91_spill] sm:$0xff] %v8980_v3  ;;  %v8988_v24 = vsub.f32 %v10198_v36, %v3434_v10  ;;  %v2457_v8 = vsub.f32 %v2353_v57, %v6655_v32  ;;  %v2464_v47 = vsub.f32 %v2200_v15, %v6656_v26  ;;  %v8998_v4 = vpop.f32.mrf.mxu1  ;;  %v10202_v10 = vld [vmem:[#allocation51_spill] sm:$0xff]  ;;  %v3479_v2 = vmul.f32 1.442695, %v8969_v40  ;;  %v6657_v57 = vld [vmem:[%s7054_s29 + $0xb8] sm:$0xff] }
 0x2ab   : > { %v2361_v50 = vadd.f32 %v8723_v62, %v8779_v54  ;;  %v2365_v55 = vadd.f32 %v8725_v18, %v8767_v34  ;;  %10200 = vst [vmem:[#allocation93_spill] sm:$0xff] %v8998_v4  ;;  %v9000_v1 = vadd.f32 %v2703_v46, %v2576_v49  ;;  %v2712_v38 = vadd.f32 %v10202_v10, %v2583_v56  ;;  %v10203_v32 = vld [vmem:[#allocation32_spill] sm:$0xff]  ;;  %v9012_v46 = vpop.f32.mrf.mxu0 }
 0x2ac   : > { %10199 = vst [vmem:[#allocation92_spill] sm:$0xff] %v8988_v24  ;;  %v2458_v15 = vsub.f32 %v2355_v22, %v6657_v57  ;;  %3613 = vmax.xlane.f32.xlu1 %v8803_v16  ;;  %v2584_v62 = vmul.f32 %v2456_v19, %v2456_v19  ;;  %v9007_v26 = vsub.f32 %v10203_v32, %v3581_v43  ;;  %v3498_v49 = vsel %vm1742_vm0, %v6367_v12, 0.0  ;;  %v10205_v56 = vld [vmem:[#allocation52_spill] sm:$0xff]  ;;  %v6659_v57 = vld [vmem:[%s7054_s29 + $0xf8] sm:$0xff]  ;;  %v9023_v4 = vpop.f32.mrf.mxu1 }
 0x2ad   : > { %10201 = vst [vmem:[#allocation94_spill] sm:$0xff] %v9000_v1  ;;  %v2367_v18 = vadd.f32 %v8729_v13, %v8779_v54  ;;  %v2721_v10 = vadd.f32 %v10205_v56, %v2591_v20  ;;  %v6658_v40 = vld [vmem:[%s7054_s29 + $0xf0] sm:$0xff]  ;;  %v3481_v22 = vmul.f32 1.442695, %v8988_v24  ;;  %v2371_v16 = vadd.f32 %v8731_v52, %v8767_v34  ;;  %3499 = vadd.xlane.f32.xlu0 %v3498_v49  ;;  %v6661_v56 = vld [vmem:[%s7054_s29 + $0x138] sm:$0xff] }
 0x2ae   : > { %10204 = vst [vmem:[#allocation51_spill] sm:$0xff] %v9007_v26  ;;  %v2465_v31 = vsub.f32 %v2359_v25, %v6658_v40  ;;  %v6369_v19 = vpop.eup %6368  ;;  %v2592_v43 = vmul.f32 %v2464_v47, %v2464_v47  ;;  %v2466_v32 = vsub.f32 %v2361_v50, %v6659_v57  ;;  %v6660_v13 = vld [vmem:[%s7054_s29 + $0x130] sm:$0xff]  ;;  %v9027_v40 = vmul.f32 %v2457_v8, %v2457_v8  ;;  %v3584_v25 = vpop.xlane.xlu1 %3583  ;;  %v10207_v47 = vld [vmem:[#allocation66_spill] sm:$0xff] }
 0x2af   : > { %v2473_v36 = vsub.f32 %v2365_v55, %v6660_v13  ;;  %v10206_v12 = vld [vmem:[#allocation65_spill] sm:$0xff]  ;;  %v9025_v20 = vpop.eup %6370  ;;  %6376 = vpow2.f32 %v3479_v2  ;;  %v9029_v52 = vmul.f32 %v2458_v15, %v2458_v15  ;;  %v2377_v49 = vadd.f32 %v10207_v47, %v8767_v34  ;;  %v10208_v13 = vld [vmem:[#allocation67_spill] sm:$0xff]  ;;  %v9042_v2 = vpop.f32.mrf.mxu0 }
 0x2b0   : > { %v2373_v14 = vadd.f32 %v10206_v12, %v8779_v54  ;;  %3616 = vmax.xlane.f32.xlu1 %v8807_v9  ;;  %v9034_v50 = vadd.f32 %v2712_v38, %v2584_v62  ;;  %v3643_v55 = vmul.f32 1.442695, %v9007_v26  ;;  %v2474_v57 = vsub.f32 %v2367_v18, %v6661_v56  ;;  %v9040_v12 = vpop.xlane.xlu0 %3589  ;;  %v6662_v47 = vld [vmem:[%s7054_s29 + $0x170] sm:$0xff]  ;;  %v6663_v56 = vld [vmem:[%s7054_s29 + $0x178] sm:$0xff]  ;;  %v9055_v26 = vpop.f32.mrf.mxu1 }
 0x2b1   : > { %v2379_v8 = vadd.f32 %v10208_v13, %v8779_v54  ;;  %v9044_v15 = vmul.f32 %v2465_v31, %v2465_v31  ;;  %6378 = vpow2.f32 %v3481_v22  ;;  %v2481_v9 = vsub.f32 %v2371_v16, %v6662_v47  ;;  %v10209_v31 = vld [vmem:[#allocation33_spill] sm:$0xff] }
 0x2b2   : > { %v3501_v38 = vsel %vm1742_vm0, %v6369_v19, 0.0  ;;  %v9048_v62 = vadd.f32 %v2721_v10, %v2592_v43  ;;  %v9050_v24 = vmul.f32 %v2466_v32, %v2466_v32  ;;  %v9052_v18 = vmul.f32 %v2473_v36, %v2473_v36  ;;  %v6664_v16 = vld [vmem:[%s7054_s29 + $0x1b0] sm:$0xff]  ;;  %v10211_v36 = vld [vmem:[#allocation78_spill] sm:$0xff] }
 0x2b3   : > { %v2482_v13 = vsub.f32 %v2373_v14, %v6663_v56  ;;  %3502 = vadd.xlane.f32.xlu0 %v3501_v38  ;;  %v9058_v22 = vsub.f32 %v10209_v31, %v3584_v25  ;;  %v2489_v47 = vsub.f32 %v2377_v49, %v6664_v16  ;;  %v2228_v10 = vadd.f32 %v8799_v58, %v8755_v28  ;;  %v6665_v43 = vld [vmem:[%s7054_s29 + $0x1b8] sm:$0xff]  ;;  %v2263_v25 = vpop.f32.mrf.mxu0  ;;  %v10215_v16 = vld [vmem:[#allocation76_spill] sm:$0xff] }
 0x2b4   : > { %v6373_v29 = vpop.eup %6372  ;;  %v2252_v19 = vadd.f32 %v8952_v11, %v8755_v28  ;;  %3619 = vmax.xlane.f32.xlu1 %v10211_v36  ;;  %6380 = vpow2.f32 %v3643_v55  ;;  %v9066_v14 = vmul.f32 %v2474_v57, %v2474_v57  ;;  %v2490_v32 = vsub.f32 %v2379_v8, %v6665_v43  ;;  %v10213_v38 = vld [vmem:[#allocation70_spill] sm:$0xff]  ;;  %v10214_v49 = vld [vmem:[#allocation73_spill] sm:$0xff] }
 0x2b5   : > { %10210 = vst [vmem:[#allocation32_spill] sm:$0xff] %v9058_v22  ;;  %v2383_v56 = vadd.f32 %v10213_v38, %v8767_v34  ;;  %v9071_v31 = vmul.f32 %v2481_v9, %v2481_v9  ;;  %v2385_v58 = vadd.f32 %v10214_v49, %v8779_v54  ;;  %v2389_v11 = vadd.f32 %v10215_v16, %v8767_v34  ;;  %v10217_v8 = vld [vmem:[#allocation34_spill] sm:$0xff]  ;;  %v3593_v9 = vpop.xlane.xlu0 %3592  ;;  %v9089_v16 = vpop.f32.mrf.mxu1 }
 0x2b6   : > { %10212 = vst [vmem:[#allocation52_spill] sm:$0xff] %v9066_v14  ;;  %v2535_v36 = vsub.f32 %v2252_v19, %v6666_v37  ;;  %v9078_v55 = vpop.eup %6374  ;;  %v9080_v57 = vmul.f32 %v2482_v13, %v2482_v13  ;;  %v9084_v43 = vsub.f32 %v10217_v8, %v8996_v21  ;;  %v3504_v38 = vsel %vm1742_vm0, %v6373_v29, 0.0  ;;  %v6667_v13 = vld [vmem:[%s7054_s29 + $0x220] sm:$0xff]  ;;  %v10219_v21 = vld [vmem:[#allocation80_spill] sm:$0xff]  ;;  %v2265_v35 = vpop.f32.mrf.mxu0 }
 0x2b7   : > { %v2254_v49 = vadd.f32 %v8983_v45, %v8776_v5  ;;  %v3645_v37 = vmul.f32 1.442695, %v9058_v22  ;;  %v9092_v19 = vmul.f32 %v2489_v47, %v2489_v47  ;;  %v2503_v23 = vsub.f32 %v2228_v10, %v6667_v13  ;;  %3505 = vadd.xlane.f32.xlu0 %v3504_v38  ;;  %v6668_v29 = vld [vmem:[%s7054_s29 + $0x1f0] sm:$0xff]  ;;  %v6669_v45 = vld [vmem:[%s7054_s29 + $0x328] sm:$0xff]  ;;  %v6670_v47 = vld [vmem:[%s7054_s29 + $0x1f8] sm:$0xff] }
 0x2b8   : > { %10216 = vst [vmem:[#allocation65_spill] sm:$0xff] %v9080_v57  ;;  %10218 = vst [vmem:[#allocation66_spill] sm:$0xff] %v9084_v43  ;;  %v2663_v3 = vmul.f32 %v2535_v36, %v2535_v36  ;;  %3622 = vmax.xlane.f32.xlu1 %v10219_v21  ;;  %v9096_v8 = vmul.f32 %v2490_v32, %v2490_v32  ;;  %v9099_v57 = vsub.f32 %v2383_v56, %v6668_v29  ;;  %v6671_v10 = vld [vmem:[%s7054_s29 + $0x230] sm:$0xff]  ;;  %v6681_v14 = vld [vmem:[%s7054_s29 + $0x3e8] sm:$0xff] }
 0x2b9   : > { %v2536_v1 = vsub.f32 %v2254_v49, %v6669_v45  ;;  %v2258_v22 = vadd.f32 %v9012_v46, %v8755_v28  ;;  %v9105_v61 = vsub.f32 %v2385_v58, %v6670_v47  ;;  %v9108_v36 = vsub.f32 %v2389_v11, %v6671_v10  ;;  %v10221_v38 = vld [vmem:[#allocation77_spill] sm:$0xff]  ;;  %v10222_v32 = vld [vmem:[#allocation60_spill] sm:$0xff]  ;;  %v9117_v45 = vpop.f32.mrf.mxu1  ;;  %v2269_v47 = vpop.f32.mrf.mxu0 }
 0x2ba   : > { %10220 = vst [vmem:[#allocation67_spill] sm:$0xff] %v9096_v8  ;;  %v2230_v13 = vadd.f32 %v10221_v38, %v8776_v5  ;;  %v2802_v21 = vadd.f32 %v10222_v32, %v2663_v3  ;;  %v3647_v56 = vmul.f32 1.442695, %v9084_v43  ;;  %v6672_v8 = vld [vmem:[%s7054_s29 + $0x360] sm:$0xff]  ;;  %v3507_v46 = vsel %vm1742_vm0, %v8928_v6, 0.0  ;;  %v6673_v10 = vld [vmem:[%s7054_s29 + $0x228] sm:$0xff] }
 0x2bb   : > { %v2664_v29 = vmul.f32 %v2536_v1, %v2536_v1  ;;  %v2543_v49 = vsub.f32 %v2258_v22, %v6672_v8  ;;  %6382 = vpow2.f32 %v3645_v37  ;;  %v2631_v58 = vmul.f32 %v2503_v23, %v2503_v23  ;;  %3508 = vadd.xlane.f32.xlu0 %v3507_v46  ;;  %v10223_v22 = vld [vmem:[#allocation35_spill] sm:$0xff]  ;;  %v9130_v8 = vpop.xlane.xlu0 %3595  ;;  %v10227_v32 = vld [vmem:[#allocation36_spill] sm:$0xff] }
 0x2bc   : > { %v2234_v11 = vadd.f32 %v8841_v39, %v8755_v28  ;;  %v2260_v3 = vadd.f32 %v9042_v2, %v8776_v5  ;;  %3625 = vmax.xlane.f32.xlu1 %v8853_v17  ;;  %v9124_v1 = vpop.eup %6376  ;;  %v9128_v6 = vsub.f32 %v10223_v22, %v9040_v12  ;;  %v2264_v39 = vadd.f32 %v2263_v25, %v8755_v28  ;;  %v10226_v17 = vld [vmem:[#allocation79_spill] sm:$0xff]  ;;  %v9148_v25 = vpop.f32.mrf.mxu1 }
 0x2bd   : > { %v9132_v23 = vadd.f32 %v2802_v21, %v2664_v29  ;;  %v2671_v37 = vmul.f32 %v2543_v49, %v2543_v49  ;;  %v2504_v2 = vsub.f32 %v2230_v13, %v6673_v10  ;;  %v9138_v38 = vadd.f32 %v10226_v17, %v8779_v54  ;;  %v6674_v12 = vld [vmem:[%s7054_s29 + $0x368] sm:$0xff]  ;;  %v10230_v21 = vld [vmem:[#allocation61_spill] sm:$0xff]  ;;  %v6675_v49 = vld [vmem:[%s7054_s29 + $0x3a0] sm:$0xff] }
 0x2be   : > { %10224 = vst [vmem:[#allocation33_spill] sm:$0xff] %v9128_v6  ;;  %v9141_v46 = vsub.f32 %v10227_v32, %v3593_v9  ;;  %v2544_v22 = vsub.f32 %v2260_v3, %v6674_v12  ;;  %v9144_v43 = vpop.eup %6378  ;;  %6384 = vpow2.f32 %v3647_v56  ;;  %v2696_v13 = vadd.f32 %v8975_v44, %v8887_v30  ;;  %v6676_v10 = vld [vmem:[%s7054_s29 + $0x260] sm:$0xff] }
 0x2bf   : > { %10225 = vst [vmem:[#allocation78_spill] sm:$0xff] %v9132_v23  ;;  %10229 = vst [vmem:[#allocation73_spill] sm:$0xff] %v9144_v43  ;;  %v2811_v29 = vadd.f32 %v10230_v21, %v2671_v37  ;;  %v2551_v23 = vsub.f32 %v2264_v39, %v6675_v49  ;;  %v2511_v17 = vsub.f32 %v2234_v11, %v6676_v10  ;;  %v3649_v56 = vmul.f32 1.442695, %v9128_v6  ;;  %v2271_v21 = vpop.f32.mrf.mxu0  ;;  %v6677_v11 = vld [vmem:[%s7054_s29 + $0x3a8] sm:$0xff]  ;;  %v10232_v10 = vld [vmem:[#allocation62_spill] sm:$0xff] }
 0x2c0   : > { %10228 = vst [vmem:[#allocation70_spill] sm:$0xff] %v9141_v46  ;;  %v2236_v9 = vadd.f32 %v8849_v48, %v8776_v5  ;;  %v2672_v32 = vmul.f32 %v2544_v22, %v2544_v22  ;;  %v2266_v3 = vadd.f32 %v2265_v35, %v8776_v5  ;;  %v2697_v39 = vadd.f32 %v2696_v13, %v8945_v41  ;;  %v3599_v22 = vpop.xlane.xlu0 %3598  ;;  %v2426_v41 = vpop.f32.mrf.mxu1 }
 0x2c1   : > { %v2679_v37 = vmul.f32 %v2551_v23, %v2551_v23  ;;  %v2270_v12 = vadd.f32 %v2269_v47, %v8755_v28  ;;  %v9159_v49 = vpop.eup %6380  ;;  %v2240_v30 = vadd.f32 %v8867_v53, %v8755_v28  ;;  %v3651_v44 = vmul.f32 1.442695, %v9141_v46  ;;  %v6678_v47 = vld [vmem:[%s7054_s29 + $0x3e0] sm:$0xff] }
 0x2c2   : > { %v9164_v48 = vadd.f32 %v2811_v29, %v2672_v32  ;;  %v2552_v35 = vsub.f32 %v2266_v3, %v6677_v11  ;;  %2698 = vadd.xlane.f32.xlu0 %v2697_v39  ;;  %v3510_v6 = vsel %vm1742_vm0, %v8934_v59, 0.0  ;;  %v2714_v53 = vadd.f32 %v9034_v50, %v9027_v40  ;;  %v10233_v29 = vld [vmem:[#allocation55_spill] sm:$0xff] }
 0x2c3   : > { %v2820_v23 = vadd.f32 %v10232_v10, %v2679_v37  ;;  %v2559_v13 = vsub.f32 %v2270_v12, %v6678_v47  ;;  %v2766_v32 = vadd.f32 %v10233_v29, %v2631_v58  ;;  %v2632_v46 = vmul.f32 %v2504_v2, %v2504_v2  ;;  %3511 = vadd.xlane.f32.xlu1 %v3510_v6  ;;  %v6679_v39 = vld [vmem:[%s7054_s29 + $0x268] sm:$0xff]  ;;  %v6680_v47 = vld [vmem:[%s7054_s29 + $0x2a0] sm:$0xff]  ;;  %v2430_v6 = vpop.f32.mrf.mxu1 }
 0x2c4   : > { %10231 = vst [vmem:[#allocation76_spill] sm:$0xff] %v9164_v48  ;;  %v2680_v43 = vmul.f32 %v2552_v35, %v2552_v35  ;;  %v2272_v3 = vadd.f32 %v2271_v21, %v8776_v5  ;;  %v2639_v37 = vmul.f32 %v2511_v17, %v2511_v17  ;;  %v2512_v11 = vsub.f32 %v2236_v9, %v6679_v39  ;;  %v10234_v50 = vld [vmem:[#allocation63_spill] sm:$0xff]  ;;  %v3605_v9 = vpop.xlane.xlu1 %3604 }
 0x2c5   : > { %v2687_v10 = vmul.f32 %v2559_v13, %v2559_v13  ;;  %v2715_v12 = vadd.f32 %v2714_v53, %v9029_v52  ;;  %6386 = vpow2.f32 %v3649_v56  ;;  %v2519_v59 = vsub.f32 %v2240_v30, %v6680_v47  ;;  %v10237_v53 = vld [vmem:[#allocation38_spill] sm:$0xff] }
 0x2c6   : > { %v9178_v48 = vadd.f32 %v2820_v23, %v2680_v43  ;;  %v2560_v40 = vsub.f32 %v2272_v3, %v6681_v14  ;;  %6388 = vpow2.f32 %v3651_v44  ;;  %v3513_v2 = vsel %vm1742_vm0, %v8940_v42, 0.0  ;;  %v10236_v23 = vld [vmem:[#allocation37_spill] sm:$0xff] }
 0x2c7   : > { %v2829_v58 = vadd.f32 %v10234_v50, %v2687_v10  ;;  %2716 = vadd.xlane.f32.xlu0 %v2715_v12  ;;  %v2723_v17 = vadd.f32 %v9048_v62, %v9044_v15  ;;  %v9188_v52 = vmul.f32 %v9099_v57, %v9099_v57  ;;  %v9192_v43 = vmul.f32 %v9105_v61, %v9105_v61  ;;  %v6682_v15 = vld [vmem:[%s7054_s29 + $0x238] sm:$0xff]  ;;  %v3602_v61 = vpop.xlane.xlu0 %3601  ;;  %v6683_v50 = vld [vmem:[%s7054_s29 + $0x330] sm:$0xff] }
 0x2c8   : > { %v9196_v14 = vmul.f32 %v9108_v36, %v9108_v36  ;;  %v2688_v56 = vmul.f32 %v2560_v40, %v2560_v40  ;;  %3514 = vadd.xlane.f32.xlu1 %v3513_v2  ;;  %v9198_v21 = vpop.eup %6382  ;;  %v9200_v42 = vadd.f32 %v2766_v32, %v2632_v46  ;;  %v9204_v62 = vsub.f32 %v9138_v38, %v6682_v15  ;;  %v10235_v36 = vld [vmem:[#allocation56_spill] sm:$0xff]  ;;  %v10239_v10 = vld [vmem:[#allocation41_spill] sm:$0xff] }
 0x2c9   : > { %v9208_v57 = vadd.f32 %v8862_v0, %v8767_v34  ;;  %v2724_v30 = vadd.f32 %v2723_v17, %v9050_v24  ;;  %v9212_v44 = vadd.f32 %v10235_v36, %v2639_v37  ;;  %v9214_v35 = vmul.f32 %v2512_v11, %v2512_v11  ;;  %v10238_v0 = vld [vmem:[#allocation39_spill] sm:$0xff]  ;;  %v2432_v24 = vpop.f32.mrf.mxu1  ;;  %v6685_v2 = vld [vmem:[%s7054_s29 + $0x370] sm:$0xff] }
 0x2ca   : > { %v9218_v46 = vsub.f32 %v10236_v23, %v9130_v8  ;;  %v9220_v13 = vadd.f32 %v2829_v58, %v2688_v56  ;;  %v9222_v38 = vmul.f32 %v2519_v59, %v2519_v59  ;;  %v9225_v29 = vsub.f32 %v10237_v53, %v3605_v9  ;;  %v6687_v56 = vld [vmem:[%s7054_s29 + $0x3b0] sm:$0xff]  ;;  %v6690_v23 = vld [vmem:[%s7054_s29 + $0x2a8] sm:$0xff] }
 0x2cb   : > { %v9228_v32 = vsub.f32 %v10238_v0, %v3599_v22  ;;  %2725 = vadd.xlane.f32.xlu0 %v2724_v30  ;;  %v3516_v3 = vsel %vm1742_vm0, %v8954_v7, 0.0  ;;  %v6385_v37 = vpop.eup %6384  ;;  %v2413_v8 = vadd.f32 %v9023_v4, %v8767_v34  ;;  %v2415_v39 = vadd.f32 %v9055_v26, %v8779_v54  ;;  %v6689_v36 = vld [vmem:[%s7054_s29 + $0x3f0] sm:$0xff]  ;;  %v6691_v0 = vld [vmem:[%s7054_s29 + $0x3f8] sm:$0xff] }
 0x2cc   : > { %v2419_v11 = vadd.f32 %v9089_v16, %v8767_v34  ;;  %v9239_v12 = vsub.f32 %v10239_v10, %v3602_v61  ;;  %3517 = vadd.xlane.f32.xlu1 %v3516_v3  ;;  %v2421_v22 = vadd.f32 %v9117_v45, %v8779_v54  ;;  %v2425_v7 = vadd.f32 %v9148_v25, %v8767_v34  ;;  %v6688_v61 = vld [vmem:[%s7054_s29 + $0x3b8] sm:$0xff] }
 0x2cd   : > { %v2427_v4 = vadd.f32 %v2426_v41, %v8779_v54  ;;  %v2431_v26 = vadd.f32 %v2430_v6, %v8767_v34  ;;  %v2242_v16 = vadd.f32 %v8877_v51, %v8776_v5  ;;  %v3653_v47 = vmul.f32 1.442695, %v9218_v46  ;;  %v6684_v6 = vld [vmem:[%s7054_s29 + $0x338] sm:$0xff] }
 0x2ce   : > { %v2433_v59 = vadd.f32 %v2432_v24, %v8779_v54  ;;  %v3675_v40 = vsel %vm1742_vm0, %v9159_v49, 0.0  ;;  %v9254_v45 = vmul.f32 1.442695, %v9225_v29  ;;  %v2246_v25 = vadd.f32 %v8897_v63, %v8755_v28  ;;  %v6686_v63 = vld [vmem:[%s7054_s29 + $0x378] sm:$0xff] }
 0x2cf   : > { %v3655_v41 = vmul.f32 1.442695, %v9228_v32  ;;  %3676 = vadd.xlane.f32.xlu0 %v3675_v40  ;;  %v3519_v51 = vsel %vm1742_vm0, %v9025_v20, 0.0  ;;  %v2537_v58 = vsub.f32 %v2413_v8, %v6683_v50  ;;  %v2538_v49 = vsub.f32 %v2415_v39, %v6684_v6 }
 0x2d0   : > { %v2545_v17 = vsub.f32 %v2419_v11, %v6685_v2  ;;  %v3657_v9 = vmul.f32 1.442695, %v9239_v12  ;;  %3520 = vadd.xlane.f32.xlu1 %v3519_v51  ;;  %v2546_v28 = vsub.f32 %v2421_v22, %v6686_v63  ;;  %v2553_v15 = vsub.f32 %v2425_v7, %v6687_v56  ;;  %v6692_v11 = vld [vmem:[%s7054_s29 + $0x2e0] sm:$0xff] }
 0x2d1   : > { %v2554_v30 = vsub.f32 %v2427_v4, %v6688_v61  ;;  %v2561_v20 = vsub.f32 %v2431_v26, %v6689_v36  ;;  %v9270_v53 = vsub.f32 %v2242_v16, %v6690_v23  ;;  %6390 = vpow2.f32 %v3653_v47  ;;  %v10243_v56 = vld [vmem:[#allocation78_spill] sm:$0xff]  ;;  %v10244_v61 = vld [vmem:[#allocation76_spill] sm:$0xff] }
 0x2d2   : > { %v2562_v24 = vsub.f32 %v2433_v59, %v6691_v0  ;;  %v3681_v3 = vsel %vm1742_vm0, %v6385_v37, 0.0  ;;  %v6387_v39 = vpop.eup %6386  ;;  %v2527_v10 = vsub.f32 %v2246_v25, %v6692_v11  ;;  %v2248_v22 = vadd.f32 %v8926_v60, %v8776_v5  ;;  %v10245_v36 = vld [vmem:[#allocation90_spill] sm:$0xff]  ;;  %v10251_v11 = vld [vmem:[#allocation84_spill] sm:$0xff] }
 0x2d3   : > { %6392 = vpow2.f32 %v3655_v41  ;;  %3682 = vadd.xlane.f32.xlu0 %v3681_v3  ;;  %v3522_v7 = vsel %vm1742_vm0, %v9078_v55, 0.0  ;;  %v6389_v4 = vpop.eup %6388  ;;  %v2665_v26 = vmul.f32 %v2537_v58, %v2537_v58  ;;  %v2666_v16 = vmul.f32 %v2538_v49, %v2538_v49  ;;  %v10240_v55 = vld [vmem:[#allocation82_spill] sm:$0xff] }
 0x2d4   : > { %v2673_v47 = vmul.f32 %v2545_v17, %v2545_v17  ;;  %6394 = vpow2.f32 %v3657_v9  ;;  %3523 = vadd.xlane.f32.xlu1 %v3522_v7  ;;  %v2674_v59 = vmul.f32 %v2546_v28, %v2546_v28  ;;  %v2681_v40 = vmul.f32 %v2553_v15, %v2553_v15  ;;  %v10242_v28 = vld [vmem:[#allocation88_spill] sm:$0xff] }
 0x2d5   : > { %v2682_v51 = vmul.f32 %v2554_v30, %v2554_v30  ;;  %v2689_v50 = vmul.f32 %v2561_v20, %v2561_v20  ;;  %v2690_v25 = vmul.f32 %v2562_v24, %v2562_v24  ;;  %v3684_v6 = vsel %vm1742_vm0, %v6387_v39, 0.0 }
 0x2d6   : > { %v9274_v8 = vpop.f32.mrf.mxu1  ;;  %v3525_v5 = vsel %vm1742_vm0, %v9124_v1, 0.0  ;;  %v2732_v41 = vadd.f32 %v10240_v55, %v9052_v18  ;;  %v3687_v58 = vsel %vm1742_vm0, %v6389_v4, 0.0  ;;  %v2768_v49 = vadd.f32 %v9200_v42, %v9196_v14  ;;  %v10241_v1 = vld [vmem:[#allocation52_spill] sm:$0xff]  ;;  %v10246_v14 = vld [vmem:[#allocation94_spill] sm:$0xff]  ;;  %v10252_v4 = vld [vmem:[#allocation73_spill] sm:$0xff] }
 0x2d7   : > { %3685 = vadd.xlane.f32.xlu0 %v3684_v6  ;;  %v2741_v2 = vadd.f32 %v8894_v33, %v9071_v31  ;;  %v2750_v17 = vadd.f32 %v8924_v27, %v9092_v19  ;;  %v2759_v18 = vadd.f32 %v10242_v28, %v9188_v52  ;;  %v2804_v15 = vadd.f32 %v10243_v56, %v2665_v26  ;;  %v10247_v33 = vld [vmem:[#allocation65_spill] sm:$0xff]  ;;  %v10248_v27 = vld [vmem:[#allocation67_spill] sm:$0xff] }
 0x2d8   : > { %v6162_v37 = vpop.f32.mrf.mxu1  ;;  %3526 = vadd.xlane.f32.xlu1 %v3525_v5  ;;  %v9296_v63 = vadd.f32 %v2732_v41, %v10241_v1  ;;  %v2813_v30 = vadd.f32 %v10244_v61, %v2673_v47  ;;  %v2705_v42 = vadd.f32 %v10246_v14, %v10245_v36  ;;  %v2822_v20 = vadd.f32 %v9178_v48, %v2681_v40  ;;  %v6693_v47 = vld [vmem:[%s7054_s29 + $0x270] sm:$0xff]  ;;  %v6694_v41 = vld [vmem:[%s7054_s29 + $0x2e8] sm:$0xff] }
 0x2d9   : > { %v9305_v31 = vadd.f32 %v2741_v2, %v10247_v33  ;;  %v9308_v19 = vadd.f32 %v2750_v17, %v10248_v27  ;;  %v9314_v52 = vadd.f32 %v2759_v18, %v9192_v43  ;;  %v9316_v0 = vadd.f32 %v2804_v15, %v2666_v16  ;;  %v10254_v43 = vld [vmem:[#allocation91_spill] sm:$0xff]  ;;  %v6696_v28 = vld [vmem:[%s7054_s29 + $0x2b0] sm:$0xff] }
 0x2da   : > { %v9284_v60 = vpop.f32.mrf.mxu1  ;;  %v9318_v24 = vadd.f32 %v2813_v30, %v2674_v59  ;;  %v2831_v3 = vadd.f32 %v9220_v13, %v2689_v50  ;;  %v2634_v39 = vmul.f32 %v9204_v62, %v9204_v62  ;;  %v2397_v7 = vadd.f32 %v10251_v11, %v8779_v54  ;;  %v10255_v13 = vld [vmem:[#allocation86_spill] sm:$0xff]  ;;  %v10260_v61 = vld [vmem:[#allocation59_spill] sm:$0xff] }
 0x2db   : > { %10249 = vst [vmem:[#allocation34_spill] sm:$0xff] %v9316_v0  ;;  %3688 = vadd.xlane.f32.xlu0 %v3687_v58  ;;  %v3528_v48 = vsel %vm1742_vm0, %v10252_v4, 0.0  ;;  %v9327_v26 = vadd.f32 %v2822_v20, %v2682_v51  ;;  %v2578_v16 = vmul.f32 %v10254_v43, %v10254_v43  ;;  %v2513_v37 = vsub.f32 %v9208_v57, %v6693_v47  ;;  %v10257_v51 = vld [vmem:[#allocation57_spill] sm:$0xff] }
 0x2dc   : > { %v6167_v9 = vpop.f32.mrf.mxu1  ;;  %10250 = vst [vmem:[#allocation80_spill] sm:$0xff] %v9318_v24  ;;  %v2401_v62 = vadd.f32 %v10255_v13, %v8767_v34  ;;  %3529 = vadd.xlane.f32.xlu1 %v3528_v48  ;;  %v9335_v40 = vadd.f32 %v2831_v3, %v2690_v25  ;;  %v2776_v50 = vadd.f32 %v9212_v44, %v9214_v35  ;;  %6396 = vpow2.f32 %v9254_v45  ;;  %v9348_v44 = vpop.f32.mrf.mxu0  ;;  %v10259_v45 = vld [vmem:[#allocation50_spill] sm:$0xff]  ;;  %v10261_v48 = vld [vmem:[#allocation93_spill] sm:$0xff] }
 0x2dd   : > { %10253 = vst [vmem:[#allocation77_spill] sm:$0xff] %v9327_v26  ;;  %v2784_v6 = vadd.f32 %v10257_v51, %v9222_v38  ;;  %v2648_v5 = vmul.f32 %v9270_v53, %v9270_v53  ;;  %v2769_v55 = vadd.f32 %v2768_v49, %v2634_v39  ;;  %v2655_v57 = vmul.f32 %v2527_v10, %v2527_v10  ;;  %v6695_v9 = vld [vmem:[%s7054_s29 + $0x278] sm:$0xff]  ;;  %v10258_v53 = vld [vmem:[#allocation87_spill] sm:$0xff] }
 0x2de   : > { %v9311_v23 = vpop.f32.mrf.mxu1  ;;  %10256 = vst [vmem:[#allocation60_spill] sm:$0xff] %v9335_v40  ;;  %v2528_v58 = vsub.f32 %v2248_v22, %v6694_v41  ;;  %v2706_v2 = vadd.f32 %v2705_v42, %v2578_v16  ;;  %v6391_v25 = vpop.eup %6390  ;;  %v2514_v1 = vsub.f32 %v2397_v7, %v6695_v9  ;;  %v2641_v38 = vmul.f32 %v2513_v37, %v2513_v37  ;;  %v6697_v39 = vld [vmem:[%s7054_s29 + $0x2b8] sm:$0xff]  ;;  %v6698_v7 = vld [vmem:[%s7054_s29 + $0x2f0] sm:$0xff] }
 0x2df   : > { %2770 = vadd.xlane.f32.xlu0 %v2769_v55  ;;  %v2521_v18 = vsub.f32 %v2401_v62, %v6696_v28  ;;  %v2403_v49 = vadd.f32 %v10258_v53, %v8779_v54  ;;  %v2407_v10 = vadd.f32 %v10259_v45, %v8767_v34  ;;  %v2785_v15 = vadd.f32 %v2784_v6, %v2648_v5  ;;  %v3180_v20 = vpop.f32.mrf.mxu0  ;;  %v6699_v51 = vld [vmem:[%s7054_s29 + $0x2f8] sm:$0xff]  ;;  %v10262_v5 = vld [vmem:[#allocation15_spill] sm:$0xff] }
 0x2e0   : > { %v6172_v59 = vpop.f32.mrf.mxu1  ;;  %v6393_v35 = vpop.eup %6392  ;;  %2707 = vadd.xlane.f32.xlu1 %v2706_v2  ;;  %v2793_v30 = vadd.f32 %v10260_v61, %v2655_v57  ;;  %v2656_v36 = vmul.f32 %v2528_v58, %v2528_v58  ;;  %v3690_v14 = vsel %vm1742_vm0, %v6391_v25, 0.0  ;;  %v2777_v42 = vadd.f32 %v2776_v50, %v2641_v38 }
 0x2e1   : > { %v6395_v56 = vpop.eup %6394  ;;  %v2642_v27 = vmul.f32 %v2514_v1, %v2514_v1  ;;  %v3678_v3 = vsel %vm1742_vm0, %v9198_v21, 0.0  ;;  %v2649_v34 = vmul.f32 %v2521_v18, %v2521_v18  ;;  %v2522_v11 = vsub.f32 %v2403_v49, %v6697_v39  ;;  %v6139_v59 = vpop.f32.mrf.mxu0  ;;  %v10263_v1 = vld [vmem:[#allocation18_spill] sm:$0xff]  ;;  %v10264_v49 = vld [vmem:[#allocation17_spill] sm:$0xff] }
 0x2e2   : > { %v9345_v17 = vpop.f32.mrf.mxu1  ;;  %v2529_v4 = vsub.f32 %v2407_v10, %v6698_v7  ;;  %v2409_v43 = vadd.f32 %v10261_v48, %v8779_v54  ;;  %v2794_v47 = vadd.f32 %v2793_v30, %v2656_v36  ;;  %v3693_v37 = vsel %vm1742_vm0, %v6393_v35, 0.0  ;;  %v10267_v39 = vld [vmem:[#allocation22_spill] sm:$0xff] }
 0x2e3   : > { %3691 = vadd.xlane.f32.xlu0 %v3690_v14  ;;  %v2778_v13 = vadd.f32 %v2777_v42, %v2642_v27  ;;  %v2786_v62 = vadd.f32 %v2785_v15, %v2649_v34  ;;  %v2650_v50 = vmul.f32 %v2522_v11, %v2522_v11  ;;  %v3259_v55 = vsub.f32 %v10262_v5, %v3180_v20  ;;  %v3190_v2 = vpop.f32.mrf.mxu0  ;;  %v10265_v15 = vld [vmem:[#allocation20_spill] sm:$0xff]  ;;  %v10266_v42 = vld [vmem:[#allocation19_spill] sm:$0xff] }
 0x2e4   : > { %v6177_v22 = vpop.f32.mrf.mxu1  ;;  %3679 = vadd.xlane.f32.xlu1 %v3678_v3  ;;  %v2657_v21 = vmul.f32 %v2529_v4, %v2529_v4  ;;  %v2530_v6 = vsub.f32 %v2409_v43, %v6699_v51  ;;  %v3696_v57 = vsel %vm1742_vm0, %v6395_v56, 0.0  ;;  %v3262_v35 = vsub.f32 %v10263_v1, %v6139_v59  ;;  %v10268_v43 = vld [vmem:[#allocation21_spill] sm:$0xff]  ;;  %v5420_v51 = vld [vmem:[%s9387_s22] sm:$0xff] }
 0x2e5   : > { %v2787_v41 = vadd.f32 %v2786_v62, %v2650_v50  ;;  %v3275_v9 = vmul.f32 %v3259_v55, %v3259_v55  ;;  %v6142_v18 = vpop.f32.mrf.mxu0  ;;  %v3261_v45 = vsub.f32 %v10264_v49, %v3190_v2  ;;  %v10269_v62 = vld [vmem:[#allocation23_spill] sm:$0xff]  ;;  %v5436_v5 = vsub.f32 %v5420_v51, %v9274_v8 }
 0x2e6   : > { %v9357_v33 = vpop.f32.mrf.mxu1  ;;  %v2795_v54 = vadd.f32 %v2794_v47, %v2657_v21  ;;  %v2658_v25 = vmul.f32 %v2530_v6, %v2530_v6  ;;  %v3278_v53 = vmul.f32 %v3262_v35, %v3262_v35  ;;  %v3264_v61 = vsub.f32 %v10265_v15, %v6142_v18  ;;  %v5424_v18 = vld [vmem:[%s9387_s22 + $0x20] sm:$0xff]  ;;  %v5425_v15 = vld [vmem:[%s9387_s22 + $0x28] sm:$0xff] }
 0x2e7   : > { %3694 = vadd.xlane.f32.xlu0 %v3693_v37  ;;  %v3291_v10 = vsel %vm1742_vm0, %v3275_v9, 0.0  ;;  %v3200_v22 = vpop.f32.mrf.mxu0  ;;  %v3277_v56 = vmul.f32 %v3261_v45, %v3261_v45  ;;  %v5423_v9 = vld [vmem:[%s9387_s22 + $0x18] sm:$0xff]  ;;  %v5440_v49 = vsub.f32 %v5424_v18, %v9357_v33  ;;  %v10270_v18 = vld [vmem:[#allocation40_spill] sm:$0xff] }
 0x2e8   : > { %v6182_v16 = vpop.f32.mrf.mxu1  ;;  %2779 = vadd.xlane.f32.xlu1 %v2778_v13  ;;  %v2796_v28 = vadd.f32 %v2795_v54, %v2658_v25  ;;  %v3300_v30 = vsel %vm1742_vm0, %v3278_v53, 0.0  ;;  %v3280_v14 = vmul.f32 %v3264_v61, %v3264_v61  ;;  %v3263_v27 = vsub.f32 %v10266_v42, %v3200_v22 }
 0x2e9   : > { %v6397_v58 = vpop.eup %6396  ;;  %v6145_v36 = vpop.f32.mrf.mxu0  ;;  %v3297_v20 = vsel %vm1742_vm0, %v3277_v56, 0.0  ;;  %v5439_v35 = vsub.f32 %v5423_v9, %v9345_v17  ;;  %v5456_v56 = vmul.f32 %v5440_v49, %v5440_v49 }
 0x2ea   : > { %v3699_v38 = vsel %vm1742_vm0, %v6397_v58, 0.0  ;;  %v3279_v34 = vmul.f32 %v3263_v27, %v3263_v27  ;;  %v3266_v11 = vsub.f32 %v10267_v39, %v6145_v36  ;;  %v3306_v7 = vsel %vm1742_vm0, %v3280_v14, 0.0  ;;  %v5426_v27 = vld [vmem:[%s9387_s22 + $0x30] sm:$0xff] }
 0x2eb   : > { %3697 = vadd.xlane.f32.xlu0 %v3696_v57  ;;  %v3210_v3 = vpop.f32.mrf.mxu0  ;;  %v5452_v58 = vmul.f32 %v5436_v5, %v5436_v5  ;;  %v5481_v42 = vsel %vm5468_vm3, %v5456_v56, 0.0 }
 0x2ec   : > { %2788 = vadd.xlane.f32.xlu1 %v2787_v41  ;;  %v3282_v48 = vmul.f32 %v3266_v11, %v3266_v11  ;;  %v3265_v16 = vsub.f32 %v10268_v43, %v3210_v3  ;;  %v3303_v47 = vsel %vm1742_vm0, %v3279_v34, 0.0  ;;  %v5422_v41 = vld [vmem:[%s9387_s22 + $0x10] sm:$0xff]  ;;  %v5427_v43 = vld [vmem:[%s9387_s22 + $0x38] sm:$0xff] }
 0x2ed   : > { %v9379_v4 = vpop.f32.mrf.mxu0  ;;  %v5438_v2 = vsub.f32 %v5422_v41, %v9311_v23  ;;  %v5455_v23 = vmul.f32 %v5439_v35, %v5439_v35 }
 0x2ee   : > { %v3281_v13 = vmul.f32 %v3265_v16, %v3265_v16  ;;  %v3312_v50 = vsel %vm1742_vm0, %v3282_v48, 0.0 }
 0x2ef   : > { %3700 = vadd.xlane.f32.xlu0 %v3699_v38  ;;  %v3220_v37 = vpop.f32.mrf.mxu0  ;;  %v5454_v8 = vmul.f32 %v5438_v2, %v5438_v2  ;;  %v5469_v38 = vsel %vm5468_vm3, %v5452_v58, 0.0  ;;  %v5478_v17 = vsel %vm5468_vm3, %v5455_v23, 0.0 }
 0x2f0   : > { %2797 = vadd.xlane.f32.xlu1 %v2796_v28  ;;  %v3267_v59 = vsub.f32 %v10269_v62, %v3220_v37  ;;  %v3309_v55 = vsel %vm1742_vm0, %v3281_v13, 0.0 }
 0x2f1   : > { %v5475_v45 = vsel %vm5468_vm3, %v5454_v8, 0.0 }
 0x2f2   : > { %v3283_v6 = vmul.f32 %v3267_v59, %v3267_v59 }
 0x2f3   : > { %3292 = vadd.xlane.f32.xlu0 %v3291_v10 }
 0x2f4   : > { %v3315_v25 = vsel %vm1742_vm0, %v3283_v6, 0.0 }
 0x2f7   : > { %3301 = vadd.xlane.f32.xlu0 %v3300_v30 }
 0x2fb   : > { %3298 = vadd.xlane.f32.xlu0 %v3297_v20 }
 0x2ff   : > { %3307 = vadd.xlane.f32.xlu0 %v3306_v7  ;;  %v5428_v7 = vld [vmem:[%s9387_s22 + $0x40] sm:$0xff] }
 0x303   : > { %3304 = vadd.xlane.f32.xlu0 %v3303_v47  ;;  %v3485_v47 = vpop.xlane.xlu0 %3484 }
 0x304   : > { %v9391_v21 = vpop.f32.mrf.mxu0 }
 0x306   : > { %v9396_v57 = vpop.f32.mrf.mxu0 }
 0x307   : > { %3313 = vadd.xlane.f32.xlu0 %v3312_v50 }
 0x30b   : > { %3310 = vadd.xlane.f32.xlu0 %v3309_v55 }
 0x30d   : > { %v9399_v54 = vpop.f32.mrf.mxu0  ;;  %v3491_v5 = vpop.xlane.xlu0 %3490 }
 0x30f   : > { %3316 = vadd.xlane.f32.xlu0 %v3315_v25  ;;  %v9404_v1 = vpop.f32.mrf.mxu0 }
 0x313   : > { %5470 = vadd.xlane.f32.xlu0 %v5469_v38 }
 0x316   : > { %v9408_v28 = vpop.f32.mrf.mxu0 }
 0x317   : > { %5476 = vadd.xlane.f32.xlu0 %v5475_v45 }
 0x318   : > { %v9411_v53 = vpop.f32.mrf.mxu0 }
 0x31a   : > { %v4905_v10 = vpop.f32.mrf.mxu0 }
 0x31b   : > { %5479 = vadd.xlane.f32.xlu0 %v5478_v17  ;;  %v5444_v62 = vsub.f32 %v5428_v7, %v4905_v10  ;;  %v10271_v17 = vld [vmem:[#allocation42_spill] sm:$0xff]  ;;  %v10275_v7 = vld [vmem:[#allocation44_spill] sm:$0xff] }
 0x31c   : > { %v6202_v22 = vpop.f32.mrf.mxu0 }
 0x31d   : > { %v5460_v41 = vmul.f32 %v5444_v62, %v5444_v62 }
 0x31e   : > { %v9417_v61 = vpop.f32.mrf.mxu0 }
 0x31f   : > { %5482 = vadd.xlane.f32.xlu0 %v5481_v42  ;;  %v5493_v49 = vsel %vm5468_vm3, %v5460_v41, 0.0 }
 0x320   : > { %v4686_v30 = vpop.f32.mrf.mxu1  ;;  %v6212_v36 = vpop.f32.mrf.mxu0 }
 0x321   : > { %v5441_v14 = vsub.f32 %v5425_v15, %v4686_v30 }
 0x322   : > { %v6187_v33 = vpop.f32.mrf.mxu1 }
 0x323   : > { %v5457_v20 = vmul.f32 %v5441_v14, %v5441_v14  ;;  %v10273_v33 = vld [vmem:[#allocation43_spill] sm:$0xff] }
 0x324   : > { %v4759_v3 = vpop.f32.mrf.mxu1 }
 0x325   : > { %v5442_v34 = vsub.f32 %v5426_v27, %v4759_v3  ;;  %v5484_v39 = vsel %vm5468_vm3, %v5457_v20, 0.0 }
 0x326   : > { %v6192_v11 = vpop.f32.mrf.mxu1  ;;  %5485 = vadd.xlane.f32.xlu0 %v5484_v39 }
 0x327   : > { %v5458_v48 = vmul.f32 %v5442_v34, %v5442_v34 }
 0x328   : > { %v9424_v16 = vpop.f32.mrf.mxu0  ;;  %v4832_v37 = vpop.f32.mrf.mxu1 }
 0x329   : > { %v5487_v13 = vsel %vm5468_vm3, %v5458_v48, 0.0  ;;  %v5443_v59 = vsub.f32 %v5427_v43, %v4832_v37  ;;  %v9427_v55 = vpop.xlane.xlu1 %3487 }
 0x32a   : > { %v6222_v50 = vpop.f32.mrf.mxu0  ;;  %v6197_v51 = vpop.f32.mrf.mxu1  ;;  %5488 = vadd.xlane.f32.xlu0 %v5487_v13 }
 0x32b   : > { %v5459_v6 = vmul.f32 %v5443_v59, %v5443_v59  ;;  %v10277_v59 = vld [vmem:[#allocation45_spill] sm:$0xff] }
 0x32d   : > { %v9431_v2 = vpop.f32.mrf.mxu0  ;;  %v5490_v25 = vsel %vm5468_vm3, %v5459_v6, 0.0  ;;  %v3608_v35 = vpop.xlane.xlu1 %3607  ;;  %v10279_v6 = vld [vmem:[#allocation16_spill] sm:$0xff] }
 0x32e   : > { %v9429_v58 = vpop.f32.mrf.mxu1  ;;  %5491 = vadd.xlane.f32.xlu0 %v5490_v25  ;;  %v3494_v38 = vpop.xlane.xlu0 %3493  ;;  %v9435_v23 = vsub.f32 %v10270_v18, %v3608_v35  ;;  %v3260_v41 = vsub.f32 %v10279_v6, %v9348_v44  ;;  %v10280_v18 = vld [vmem:[#allocation47_spill] sm:$0xff] }
 0x32f   : > { %v6232_v8 = vpop.f32.mrf.mxu0 }
 0x330   : > { %v6207_v9 = vpop.f32.mrf.mxu1  ;;  %v3661_v45 = vmul.f32 1.442695, %v9435_v23 }
 0x331   : > { %v3611_v22 = vpop.xlane.xlu1 %3610 }
 0x332   : > { %5494 = vadd.xlane.f32.xlu0 %v5493_v49  ;;  %6398 = vpow2.f32 %v3661_v45  ;;  %v3497_v56 = vpop.xlane.xlu0 %3496  ;;  %v9442_v15 = vsub.f32 %v10271_v17, %v3611_v22  ;;  %v3276_v22 = vmul.f32 %v3260_v41, %v3260_v41 }
 0x333   : > { %v9439_v10 = vpop.f32.mrf.mxu1 }
 0x334   : > { %10272 = vst [vmem:[#allocation35_spill] sm:$0xff] %v9442_v15  ;;  %v3663_v36 = vmul.f32 1.442695, %v9442_v15 }
 0x335   : > { %v6217_v30 = vpop.f32.mrf.mxu1  ;;  %v3614_v42 = vpop.xlane.xlu1 %3613 }
 0x336   : > { %6400 = vpow2.f32 %v3663_v36  ;;  %v9448_v27 = vsub.f32 %v10273_v33, %v3614_v42  ;;  %v3500_v3 = vpop.xlane.xlu0 %3499  ;;  %v10282_v42 = vld [vmem:[#allocation48_spill] sm:$0xff] }
 0x337   : > { %v9445_v14 = vpop.f32.mrf.mxu1 }
 0x338   : > { %10274 = vst [vmem:[#allocation79_spill] sm:$0xff] %v9448_v27  ;;  %v3665_v34 = vmul.f32 1.442695, %v9448_v27 }
 0x339   : > { %v6227_v20 = vpop.f32.mrf.mxu1  ;;  %v3617_v11 = vpop.xlane.xlu1 %3616 }
 0x33a   : > { %v9454_v48 = vsub.f32 %v10275_v7, %v3617_v11  ;;  %6402 = vpow2.f32 %v3665_v34 }
 0x33b   : > { %v9451_v39 = vpop.f32.mrf.mxu1 }
 0x33c   : > { %10276 = vst [vmem:[#allocation36_spill] sm:$0xff] %v9454_v48  ;;  %v9456_v37 = vpop.xlane.xlu0 %3502  ;;  %v3667_v13 = vmul.f32 1.442695, %v9454_v48 }
 0x33d   : > { %v6237_v43 = vpop.f32.mrf.mxu1  ;;  %v3620_v62 = vpop.xlane.xlu1 %3619 }
 0x33e   : > { %v9460_v50 = vsub.f32 %v10277_v59, %v3620_v62  ;;  %6404 = vpow2.f32 %v3667_v13 }
 0x33f   : > { %v6399_v51 = vpop.eup %6398  ;;  %6406 = vlog2.f32 %v3485_v47  ;;  %v3294_v47 = vsel %vm1742_vm0, %v3276_v22, 0.0 }
 0x340   : > { %10278 = vst [vmem:[#allocation61_spill] sm:$0xff] %v9460_v50  ;;  %v3669_v25 = vmul.f32 1.442695, %v9460_v50  ;;  %v3702_v9 = vsel %vm1742_vm0, %v6399_v51, 0.0  ;;  %v9466_v8 = vpop.xlane.xlu0 %3505  ;;  %6408 = vlog2.f32 %v3491_v5 }
 0x341   : > { %v3623_v35 = vpop.xlane.xlu1 %3622  ;;  %3703 = vadd.xlane.f32.xlu1 %v3702_v9 }
 0x342   : > { %v9469_v49 = vsub.f32 %v10280_v18, %v3623_v35  ;;  %6410 = vpow2.f32 %v3669_v25  ;;  %v10284_v25 = vld [vmem:[#allocation24_spill] sm:$0xff] }
 0x343   : > { %v6401_v45 = vpop.eup %6400  ;;  %v3268_v9 = vsub.f32 %v10284_v25, %v9379_v4 }
 0x344   : > { %10281 = vst [vmem:[#allocation62_spill] sm:$0xff] %v9469_v49  ;;  %v3671_v17 = vmul.f32 1.442695, %v9469_v49  ;;  %v3705_v44 = vsel %vm1742_vm0, %v6401_v45, 0.0  ;;  %v9473_v36 = vpop.xlane.xlu0 %3508 }
 0x345   : > { %v3626_v30 = vpop.xlane.xlu1 %3625  ;;  %3706 = vadd.xlane.f32.xlu1 %v3705_v44 }
 0x346   : > { %6412 = vpow2.f32 %v3671_v17  ;;  %v9476_v33 = vsub.f32 %v10282_v42, %v3626_v30  ;;  %v10285_v17 = vld [vmem:[#allocation54_spill] sm:$0xff]  ;;  %v3284_v42 = vmul.f32 %v3268_v9, %v3268_v9 }
 0x347   : > { %v6403_v20 = vpop.eup %6402  ;;  %6414 = vlog2.f32 %v3494_v38 }
 0x348   : > { %10283 = vst [vmem:[#allocation55_spill] sm:$0xff] %v9476_v33  ;;  %v3673_v5 = vmul.f32 1.442695, %v9476_v33  ;;  %v3708_v11 = vsel %vm1742_vm0, %v6403_v20, 0.0  ;;  %6416 = vlog2.f32 %v3497_v56 }
 0x349   : > { %3295 = vadd.xlane.f32.xlu1 %v3294_v47  ;;  %v10286_v47 = vld [vmem:[#allocation58_spill] sm:$0xff] }
 0x34a   : > { %6418 = vpow2.f32 %v3673_v5 }
 0x34b   : > { %v2699_v34 = vpop.xlane.xlu0 %2698  ;;  %v6405_v7 = vpop.eup %6404  ;;  %6420 = vlog2.f32 %v3500_v3 }
 0x34c   : > { %v9481_v43 = vpop.xlane.xlu1 %3511  ;;  %v6407_v13 = vpop.eup %6406  ;;  %v3711_v51 = vsel %vm1742_vm0, %v6405_v7, 0.0  ;;  %v5421_v7 = vld [vmem:[%s9387_s22 + $0x8] sm:$0xff]  ;;  %v2835_v25 = vrot.slane %v2699_v34, 4 }
 0x34d   : > { %3709 = vadd.xlane.f32.xlu1 %v3708_v11  ;;  %v6409_v62 = vpop.eup %6408  ;;  %v3532_v38 = vmul.f32 0.6931472, %v6407_v13 }
 0x34e   : > { %v3536_v35 = vmul.f32 0.6931472, %v6409_v62  ;;  %v2836_v26 = vadd.f32 %v2835_v25, %v2699_v34  ;;  %v10293_v34 = vld [vmem:[#allocation30_spill] sm:$0xff] }
 0x34f   : > { %v6411_v6 = vpop.eup %6410  ;;  %v9492_v44 = vsub.f32 %v10285_v17, %v3532_v38  ;;  %v10288_v17 = vld [vmem:[#allocation25_spill] sm:$0xff]  ;;  %v3274_v25 = vsub.f32 %v10293_v34, %v9408_v28 }
 0x350   : > { %v2717_v59 = vpop.xlane.xlu0 %2716  ;;  %v3714_v45 = vsel %vm1742_vm0, %v6411_v6, 0.0  ;;  %v9495_v20 = vsub.f32 %v10286_v47, %v3536_v35  ;;  %v10287_v6 = vld [vmem:[#allocation26_spill] sm:$0xff]  ;;  %v3318_v35 = vsel %vm1742_vm0, %v3284_v42, 0.0  ;;  %v3269_v47 = vsub.f32 %v10288_v17, %v9396_v57 }
 0x351   : > { %v9484_v41 = vpop.xlane.xlu1 %3514  ;;  %3712 = vadd.xlane.f32.xlu1 %v3711_v51  ;;  %v3883_v13 = vmul.f32 1.442695, %v9492_v44  ;;  %v3270_v3 = vsub.f32 %v10287_v6, %v9391_v21  ;;  %v10289_v21 = vld [vmem:[#allocation68_spill] sm:$0xff]  ;;  %v2847_v42 = vrot.slane %v2717_v59, 4  ;;  %v3290_v34 = vmul.f32 %v3274_v25, %v3274_v25 }
 0x352   : > { %v3887_v38 = vmul.f32 1.442695, %v9495_v20  ;;  %v10290_v6 = vld [vmem:[#allocation28_spill] sm:$0xff] }
 0x353   : > { %v6413_v56 = vpop.eup %6412  ;;  %v3272_v40 = vsub.f32 %v10290_v6, %v9399_v54  ;;  %v2848_v6 = vadd.f32 %v2847_v42, %v2717_v59  ;;  %v10295_v59 = vld [vmem:[#allocation29_spill] sm:$0xff] }
 0x354   : > { %v2726_v18 = vpop.xlane.xlu0 %2725  ;;  %v6415_v30 = vpop.eup %6414  ;;  %v3717_v4 = vsel %vm1742_vm0, %v6413_v56, 0.0  ;;  %v5437_v56 = vsub.f32 %v5421_v7, %v9284_v60  ;;  %v10291_v60 = vld [vmem:[#allocation27_spill] sm:$0xff]  ;;  %v3273_v42 = vsub.f32 %v10295_v59, %v9411_v53 }
 0x355   : > { %v9489_v22 = vpop.xlane.xlu1 %3517  ;;  %3715 = vadd.xlane.f32.xlu1 %v3714_v45  ;;  %v3538_v62 = vmul.f32 0.6931472, %v6415_v30  ;;  %v6417_v51 = vpop.eup %6416  ;;  %v3271_v7 = vsub.f32 %v10291_v60, %v9404_v1 }
 0x356   : > { %v5453_v17 = vmul.f32 %v5437_v56, %v5437_v56 }
 0x357   : > { %v6419_v45 = vpop.eup %6418  ;;  %v3287_v1 = vmul.f32 %v3271_v7, %v3271_v7 }
 0x358   : > { %v3677_v5 = vpop.xlane.xlu0 %3676 }
 0x359   : > { %6422 = vlog2.f32 %v3677_v5  ;;  %v9498_v11 = vpop.xlane.xlu1 %3520  ;;  %3718 = vadd.xlane.f32.xlu1 %v3717_v4  ;;  %v9513_v5 = vsub.f32 %v10289_v21, %v3538_v62  ;;  %v3286_v4 = vmul.f32 %v3270_v3, %v3270_v3  ;;  %v10292_v3 = vld [vmem:[#allocation75_spill] sm:$0xff]  ;;  %v3288_v21 = vmul.f32 %v3272_v40, %v3272_v40 }
 0x35a   : > { %6424 = vlog2.f32 %v9456_v37  ;;  %v3540_v37 = vmul.f32 0.6931472, %v6417_v51 }
 0x35b   : > { %v3889_v51 = vmul.f32 1.442695, %v9513_v5 }
 0x35c   : > { %v3683_v9 = vpop.xlane.xlu0 %3682  ;;  %v9524_v54 = vsub.f32 %v10292_v3, %v3540_v37  ;;  %v9533_v37 = vsel %vm5468_vm3, %v5453_v17, 0.0 }
 0x35d   : > { %6426 = vlog2.f32 %v3683_v9  ;;  %v9510_v30 = vpop.xlane.xlu1 %3523  ;;  %3319 = vadd.xlane.f32.xlu1 %v3318_v35  ;;  %v3720_v9 = vsel %vm1742_vm0, %v6419_v45, 0.0  ;;  %v3285_v35 = vmul.f32 %v3269_v47, %v3269_v47  ;;  %v2837_v45 = vrot.slane %v2836_v26, 2 }
 0x35e   : > { %6428 = vpow2.f32 %v3883_v13  ;;  %v2853_v13 = vrot.slane %v2726_v18, 4  ;;  %v3324_v47 = vsel %vm1742_vm0, %v3286_v4, 0.0  ;;  %v3891_v28 = vmul.f32 1.442695, %v9524_v54 }
 0x35f   : > { %6430 = vpow2.f32 %v3887_v38  ;;  %v6421_v38 = vpop.eup %6420  ;;  %v2838_v17 = vadd.f32 %v2837_v45, %v2836_v26 }
 0x360   : > { %v3686_v57 = vpop.xlane.xlu0 %3685  ;;  %v2854_v60 = vadd.f32 %v2853_v13, %v2726_v18  ;;  %v3542_v7 = vmul.f32 0.6931472, %v6421_v38  ;;  %v2849_v18 = vrot.slane %v2848_v6, 2  ;;  %v3330_v13 = vsel %vm1742_vm0, %v3288_v21, 0.0  ;;  %v10296_v38 = vld [vmem:[#allocation51_spill] sm:$0xff]  ;;  %v10297_v21 = vld [vmem:[#allocation53_spill] sm:$0xff] }
 0x361   : > { %6432 = vlog2.f32 %v3686_v57  ;;  %v9520_v62 = vpop.xlane.xlu1 %3526  ;;  %3721 = vadd.xlane.f32.xlu1 %v3720_v9  ;;  %v3321_v9 = vsel %vm1742_vm0, %v3285_v35, 0.0  ;;  %v2839_v50 = vrot.slane %v2838_v17, 1 }
 0x362   : > { %v2855_v53 = vrot.slane %v2854_v60, 2  ;;  %v9545_v33 = vsub.f32 %v10297_v21, %v3542_v7  ;;  %v2850_v45 = vadd.f32 %v2849_v18, %v2848_v6 }
 0x364   : > { %v3689_v56 = vpop.xlane.xlu0 %3688 }
 0x365   : > { %6434 = vlog2.f32 %v3689_v56  ;;  %v9529_v57 = vpop.xlane.xlu1 %3529  ;;  %3325 = vadd.xlane.f32.xlu1 %v3324_v47  ;;  %v3327_v56 = vsel %vm1742_vm0, %v3287_v1, 0.0 }
 0x366   : > { %10294 = vst [vmem:[#allocation63_spill] sm:$0xff] %v9529_v57  ;;  %v6423_v40 = vpop.eup %6422  ;;  %6436 = vpow2.f32 %v3889_v51 }
 0x367   : > { %6438 = vlog2.f32 %v9466_v8  ;;  %v3724_v4 = vmul.f32 0.6931472, %v6423_v40  ;;  %v6425_v3 = vpop.eup %6424  ;;  %v3289_v40 = vmul.f32 %v3273_v42, %v3273_v42 }
 0x368   : > { %6440 = vlog2.f32 %v9427_v55  ;;  %v2771_v35 = vpop.xlane.xlu0 %2770  ;;  %v3544_v26 = vmul.f32 0.6931472, %v6425_v3  ;;  %v3336_v3 = vsel %vm1742_vm0, %v3290_v34, 0.0 }
 0x369   : > { %6442 = vlog2.f32 %v9473_v36  ;;  %v2883_v51 = vrot.slane %v2771_v35, 4  ;;  %v2708_v47 = vpop.xlane.xlu1 %2707  ;;  %v3755_v59 = vsub.f32 %v10296_v38, %v3724_v4  ;;  %3322 = vadd.xlane.f32.xlu1 %v3321_v9  ;;  %v2856_v4 = vadd.f32 %v2855_v53, %v2854_v60 }
 0x36a   : > { %v6427_v8 = vpop.eup %6426  ;;  %6444 = vpow2.f32 %v3891_v28  ;;  %v2841_v25 = vrot.slane %v2708_v47, 4  ;;  %v10298_v28 = vld [vmem:[#allocation66_spill] sm:$0xff] }
 0x36b   : > { %v6429_v55 = vpop.eup %6428  ;;  %v3728_v49 = vmul.f32 0.6931472, %v6427_v8  ;;  %v2884_v1 = vadd.f32 %v2883_v51, %v2771_v35  ;;  %v3771_v48 = vmul.f32 1.442695, %v3755_v59  ;;  %v3893_v35 = vmul.f32 1.442695, %v9545_v33 }
 0x36c   : > { %v2842_v36 = vadd.f32 %v2841_v25, %v2708_v47  ;;  %v3692_v24 = vpop.xlane.xlu0 %3691  ;;  %v3915_v0 = vmul.f32 %v6429_v55, %v3755_v59  ;;  %v6431_v27 = vpop.eup %6430  ;;  %v2851_v51 = vrot.slane %v2850_v45, 1  ;;  %v5429_v47 = vld [vmem:[%s9387_s22 + $0x48] sm:$0xff]  ;;  %v2857_v21 = vrot.slane %v2856_v4, 1 }
 0x36d   : > { %v2885_v9 = vrot.slane %v2884_v1, 2  ;;  %6446 = vlog2.f32 %v3692_v24  ;;  %v3680_v42 = vpop.xlane.xlu1 %3679  ;;  %v3757_v7 = vsub.f32 %v10298_v28, %v3728_v49  ;;  %3331 = vadd.xlane.f32.xlu1 %v3330_v13  ;;  %v10299_v24 = vld [vmem:[#allocation83_spill] sm:$0xff]  ;;  %v2840_v49 = vadd.f32 %v2839_v50, %v2838_v17 }
 0x36e   : > { %v6433_v38 = vpop.eup %6432  ;;  %v2843_v6 = vrot.slane %v2842_v36, 2  ;;  %v3931_v18 = vsel %vm1742_vm0, %v3915_v0, 0.0  ;;  %6448 = vpow2.f32 %v3771_v48  ;;  %v9553_v59 = vsub.f32 %v10299_v24, %v3544_v26 }
 0x36f   : > { %v3730_v60 = vmul.f32 0.6931472, %v6433_v38  ;;  %3932 = vadd.xlane.f32.xlu0 %v3931_v18  ;;  %v3917_v53 = vmul.f32 %v6431_v27, %v3757_v7  ;;  %6450 = vlog2.f32 %v3680_v42  ;;  %v2886_v0 = vadd.f32 %v2885_v9, %v2884_v1  ;;  %v10300_v38 = vld [vmem:[#allocation33_spill] sm:$0xff] }
 0x370   : > { %v2844_v13 = vadd.f32 %v2843_v6, %v2842_v36  ;;  %v3695_v8 = vpop.xlane.xlu0 %3694  ;;  %v3775_v34 = vmul.f32 1.442695, %v3757_v7  ;;  %v5445_v50 = vsub.f32 %v5429_v47, %v9429_v58  ;;  %v2852_v17 = vadd.f32 %v2851_v51, %v2850_v45  ;;  %v5430_v9 = vld [vmem:[%s9387_s22 + $0x50] sm:$0xff] }
 0x371   : > { %v3937_v48 = vsel %vm1742_vm0, %v3917_v53, 0.0  ;;  %v2780_v25 = vpop.xlane.xlu1 %2779  ;;  %3328 = vadd.xlane.f32.xlu1 %v3327_v56  ;;  %6452 = vlog2.f32 %v3695_v8  ;;  %v3758_v26 = vsub.f32 %v10300_v38, %v3730_v60  ;;  %v3333_v1 = vsel %vm1742_vm0, %v3289_v40, 0.0 }
 0x372   : > { %v6435_v55 = vpop.eup %6434  ;;  %v2845_v28 = vrot.slane %v2844_v13, 1  ;;  %v2889_v27 = vrot.slane %v2780_v25, 4  ;;  %6454 = vpow2.f32 %v3893_v35  ;;  %v3895_v42 = vmul.f32 1.442695, %v9553_v59 }
 0x373   : > { %v6437_v18 = vpop.eup %6436  ;;  %3938 = vadd.xlane.f32.xlu0 %v3937_v48  ;;  %v2932_v8 = vmul.f32 0.00012207031, %v2840_v49  ;;  %v2858_v57 = vadd.f32 %v2857_v21, %v2856_v4  ;;  %v3732_v60 = vmul.f32 0.6931472, %v6435_v55  ;;  %v2887_v38 = vrot.slane %v2886_v0, 1 }
 0x374   : > { %v6439_v36 = vpop.eup %6438  ;;  %v2846_v7 = vadd.f32 %v2845_v28, %v2844_v13  ;;  %v2890_v56 = vadd.f32 %v2889_v27, %v2780_v25  ;;  %v3698_v6 = vpop.xlane.xlu0 %3697  ;;  %v3918_v53 = vmul.f32 %v6437_v18, %v3758_v26  ;;  %6456 = vpow2.f32 %v3775_v34 }
 0x375   : > { %v6441_v24 = vpop.eup %6440  ;;  %v2789_v15 = vpop.xlane.xlu1 %2788  ;;  %3337 = vadd.xlane.f32.xlu1 %v3336_v3  ;;  %v5446_v47 = vsub.f32 %v5430_v9, %v9417_v61  ;;  %v3546_v13 = vmul.f32 0.6931472, %v6439_v36  ;;  %v2934_v48 = vmul.f32 0.00012207031, %v2852_v17  ;;  %6458 = vpow2.f32 %v3895_v42  ;;  %v10301_v17 = vld [vmem:[#allocation70_spill] sm:$0xff]  ;;  %v10302_v42 = vld [vmem:[#allocation85_spill] sm:$0xff] }
 0x376   : > { %v6443_v58 = vpop.eup %6442  ;;  %v2933_v45 = vmul.f32 0.00012207031, %v2846_v7  ;;  %v2891_v35 = vrot.slane %v2890_v56, 2  ;;  %v3940_v40 = vsel %vm1742_vm0, %v3918_v53, 0.0  ;;  %v2895_v25 = vrot.slane %v2789_v15, 4 }
 0x377   : > { %v6445_v51 = vpop.eup %6444  ;;  %3941 = vadd.xlane.f32.xlu0 %v3940_v40  ;;  %v3777_v21 = vmul.f32 1.442695, %v3758_v26  ;;  %v2935_v55 = vmul.f32 0.00012207031, %v2858_v57  ;;  %v2888_v3 = vadd.f32 %v2887_v38, %v2886_v0  ;;  %v5461_v18 = vmul.f32 %v5445_v50, %v5445_v50  ;;  %v5431_v0 = vld [vmem:[%s9387_s22 + $0x58] sm:$0xff] }
 0x378   : > { %v5700_v4 = vsel %vm5597_vm4, %v2933_v45, %v2932_v8  ;;  %v2892_v49 = vadd.f32 %v2891_v35, %v2890_v56  ;;  %v2896_v28 = vadd.f32 %v2895_v25, %v2789_v15  ;;  %6460 = vlog2.f32 %v3698_v6  ;;  %v3701_v61 = vpop.xlane.xlu0 %3700 }
 0x379   : > { %v5701_v34 = vsel %vm5599_vm5, %v2934_v48, %v5700_v4  ;;  %3334 = vadd.xlane.f32.xlu1 %v3333_v1  ;;  %v3759_v36 = vsub.f32 %v10301_v17, %v3732_v60  ;;  %v9567_v53 = vsub.f32 %v10302_v42, %v3546_v13  ;;  %v3548_v8 = vmul.f32 0.6931472, %v6443_v58 }
 0x37a   : > { %v6447_v27 = vpop.eup %6446  ;;  %v2893_v7 = vrot.slane %v2892_v49, 1  ;;  %v2897_v26 = vrot.slane %v2896_v28, 2  ;;  %v9570_v57 = vsel %vm5601_vm6, %v2935_v55, %v5701_v34  ;;  %6462 = vpow2.f32 %v3777_v21  ;;  %v10303_v55 = vld [vmem:[#allocation69_spill] sm:$0xff]  ;;  %v10304_v34 = vld [vmem:[#allocation64_spill] sm:$0xff] }
 0x37b   : > { %v6449_v9 = vpop.eup %6448  ;;  %v3734_v56 = vmul.f32 0.6931472, %v6447_v27  ;;  %v3534_v6 = vmul.f32 0.6931472, %v6441_v24  ;;  %v2940_v38 = vmul.f32 0.00012207031, %v2888_v3  ;;  %6464 = vlog2.f32 %v3701_v61 }
 0x37c   : > { %v2894_v15 = vadd.f32 %v2893_v7, %v2892_v49  ;;  %v3803_v50 = vmul.f32 %v6449_v9, %v9492_v44  ;;  %v6451_v1 = vpop.eup %6450  ;;  %v2898_v60 = vadd.f32 %v2897_v26, %v2896_v28  ;;  %v3919_v40 = vmul.f32 %v6445_v51, %v3759_v36  ;;  %v5432_v49 = vld [vmem:[%s9387_s22 + $0x60] sm:$0xff] }
 0x37d   : > { %5473 = vadd.xlane.f32.xlu1 %v9533_v37  ;;  %v3760_v13 = vsub.f32 %v9218_v46, %v3734_v56  ;;  %v5462_v58 = vmul.f32 %v5446_v47, %v5446_v47  ;;  %v5447_v25 = vsub.f32 %v5431_v0, %v9439_v10  ;;  %v5496_v44 = vsel %vm5468_vm3, %v5461_v18, 0.0  ;;  %v10305_v56 = vld [vmem:[#allocation32_spill] sm:$0xff] }
 0x37e   : > { %v2941_v45 = vmul.f32 0.00012207031, %v2894_v15  ;;  %v3819_v35 = vsel %vm1742_vm0, %v3803_v50, 0.0  ;;  %v6453_v48 = vpop.eup %6452  ;;  %v2899_v4 = vrot.slane %v2898_v60, 1  ;;  %v3897_v21 = vmul.f32 1.442695, %v9567_v53  ;;  %v5433_v15 = vld [vmem:[%s9387_s22 + $0x68] sm:$0xff] }
 0x37f   : > { %3820 = vadd.xlane.f32.xlu0 %v3819_v35  ;;  %v6455_v24 = vpop.eup %6454  ;;  %v9582_v37 = vsub.f32 %v10303_v55, %v3548_v8  ;;  %v3726_v3 = vmul.f32 0.6931472, %v6451_v1  ;;  %v9586_v46 = vsub.f32 %v10304_v34, %v3534_v6  ;;  %v3736_v10 = vmul.f32 0.6931472, %v6453_v48 }
 0x380   : > { %v5707_v51 = vsel %vm5597_vm4, %v2941_v45, %v2940_v38  ;;  %v2900_v47 = vadd.f32 %v2899_v4, %v2898_v60  ;;  %v3943_v28 = vsel %vm1742_vm0, %v3919_v40, 0.0  ;;  %v3920_v27 = vmul.f32 %v6455_v24, %v3760_v13 }
 0x381   : > { %5497 = vadd.xlane.f32.xlu1 %v5496_v44  ;;  %v6457_v18 = vpop.eup %6456  ;;  %v5448_v7 = vsub.f32 %v5432_v49, %v9424_v16  ;;  %v5499_v17 = vsel %vm5468_vm3, %v5462_v58, 0.0  ;;  %v5463_v9 = vmul.f32 %v5447_v25, %v5447_v25  ;;  %6466 = vpow2.f32 %v3897_v21  ;;  %v5435_v21 = vld [vmem:[%s9387_s22 + $0x78] sm:$0xff] }
 0x382   : > { %v2942_v61 = vmul.f32 0.00012207031, %v2900_v47  ;;  %v3899_v42 = vmul.f32 1.442695, %v9582_v37  ;;  %v9593_v26 = vsub.f32 %v10305_v56, %v3726_v3  ;;  %v6459_v0 = vpop.eup %6458  ;;  %v3885_v8 = vmul.f32 1.442695, %v9586_v46 }
 0x383   : > { %3944 = vadd.xlane.f32.xlu0 %v3943_v28  ;;  %v3779_v16 = vmul.f32 1.442695, %v3759_v36  ;;  %v3946_v1 = vsel %vm1742_vm0, %v3920_v27, 0.0  ;;  %v3805_v6 = vmul.f32 %v6457_v18, %v9495_v20  ;;  %v3761_v38 = vsub.f32 %v9228_v32, %v3736_v10  ;;  %v5434_v36 = vld [vmem:[%s9387_s22 + $0x70] sm:$0xff] }
 0x384   : > { %v9598_v50 = vsel %vm5599_vm5, %v2942_v61, %v5707_v51  ;;  %v5464_v45 = vmul.f32 %v5448_v7, %v5448_v7  ;;  %v5449_v35 = vsub.f32 %v5433_v15, %v9445_v14  ;;  %6468 = vpow2.f32 %v3899_v42 }
 0x385   : > { %5500 = vadd.xlane.f32.xlu1 %v5499_v17  ;;  %v6461_v60 = vpop.eup %6460  ;;  %v5502_v40 = vsel %vm5468_vm3, %v5463_v9, 0.0  ;;  %v3773_v48 = vmul.f32 1.442695, %v9593_v26  ;;  %6470 = vpow2.f32 %v3885_v8  ;;  %v3781_v25 = vmul.f32 1.442695, %v3760_v13 }
 0x386   : > { %v3738_v20 = vmul.f32 0.6931472, %v6461_v60  ;;  %6472 = vpow2.f32 %v3779_v16  ;;  %v3825_v32 = vsel %vm1742_vm0, %v3805_v6, 0.0  ;;  %v3921_v44 = vmul.f32 %v6459_v0, %v3761_v38 }
 0x387   : > { %3947 = vadd.xlane.f32.xlu0 %v3946_v1  ;;  %v6463_v58 = vpop.eup %6462  ;;  %v5450_v14 = vsub.f32 %v5434_v36, %v9431_v2  ;;  %v5465_v24 = vmul.f32 %v5449_v35, %v5449_v35  ;;  %v5505_v49 = vsel %vm5468_vm3, %v5464_v45, 0.0  ;;  %6474 = vpow2.f32 %v3773_v48 }
 0x388   : > { %v6465_v4 = vpop.eup %6464  ;;  %6476 = vpow2.f32 %v3781_v25  ;;  %v3783_v55 = vmul.f32 1.442695, %v3761_v38  ;;  %v3949_v13 = vsel %vm1742_vm0, %v3921_v44, 0.0  ;;  %v3806_v51 = vmul.f32 %v6463_v58, %v9513_v5  ;;  %v9624_v38 = vpop.xlane.xlu0 %3292 }
 0x389   : > { %5503 = vadd.xlane.f32.xlu1 %v5502_v40  ;;  %v3740_v3 = vmul.f32 0.6931472, %v6465_v4  ;;  %v3762_v34 = vsub.f32 %v9239_v12, %v3738_v20  ;;  %v5466_v47 = vmul.f32 %v5450_v14, %v5450_v14  ;;  %v5451_v10 = vsub.f32 %v5435_v21, %v9451_v39 }
 0x38a   : > { %v5508_v2 = vsel %vm5468_vm3, %v5465_v24, 0.0  ;;  %6478 = vpow2.f32 %v3783_v55  ;;  %v3828_v27 = vsel %vm1742_vm0, %v3806_v51, 0.0  ;;  %v10307_v51 = vld [vmem:[#allocation72_spill] sm:$0xff] }
 0x38b   : > { %3826 = vadd.xlane.f32.xlu0 %v3825_v32  ;;  %v3785_v7 = vmul.f32 1.442695, %v3762_v34  ;;  %v3763_v61 = vsub.f32 %v9225_v29, %v3740_v3  ;;  %v5467_v17 = vmul.f32 %v5451_v10, %v5451_v10  ;;  %v5511_v5 = vsel %vm5468_vm3, %v5466_v47, 0.0  ;;  %v9660_v3 = vpop.xlane.xlu1 %2797 }
 0x38c   : > { %v9631_v58 = vpop.xlane.xlu0 %3301 }
 0x38d   : > { %5506 = vadd.xlane.f32.xlu1 %v5505_v49  ;;  %6480 = vpow2.f32 %v3785_v7  ;;  %v3787_v56 = vmul.f32 1.442695, %v3763_v61  ;;  %v5514_v8 = vsel %vm5468_vm3, %v5467_v17, 0.0 }
 0x38e   : > { %v6467_v28 = vpop.eup %6466 }
 0x38f   : > { %3950 = vadd.xlane.f32.xlu0 %v3949_v13  ;;  %v3922_v18 = vmul.f32 %v6467_v28, %v3762_v34  ;;  %6482 = vpow2.f32 %v3787_v56  ;;  %v10308_v28 = vld [vmem:[#allocation74_spill] sm:$0xff] }
 0x390   : > { %v9637_v32 = vpop.xlane.xlu0 %3298  ;;  %6484 = vlog2.f32 %v9481_v43 }
 0x391   : > { %5509 = vadd.xlane.f32.xlu1 %v5508_v2  ;;  %v6469_v12 = vpop.eup %6468  ;;  %v3952_v39 = vsel %vm1742_vm0, %v3922_v18, 0.0  ;;  %6486 = vlog2.f32 %v9484_v41 }
 0x392   : > { %v6471_v9 = vpop.eup %6470  ;;  %v3923_v42 = vmul.f32 %v6469_v12, %v3763_v61  ;;  %6488 = vlog2.f32 %v9489_v22 }
 0x393   : > { %3829 = vadd.xlane.f32.xlu0 %v3828_v27  ;;  %v6473_v0 = vpop.eup %6472  ;;  %v3916_v15 = vmul.f32 %v6471_v9, %v9593_v26  ;;  %6490 = vlog2.f32 %v9498_v11 }
 0x394   : > { %v6475_v16 = vpop.eup %6474  ;;  %v3955_v1 = vsel %vm1742_vm0, %v3923_v42, 0.0  ;;  %v3807_v6 = vmul.f32 %v6473_v0, %v9524_v54  ;;  %v9641_v14 = vpop.xlane.xlu0 %3307 }
 0x395   : > { %5512 = vadd.xlane.f32.xlu1 %v5511_v5  ;;  %v6477_v29 = vpop.eup %6476  ;;  %v3934_v60 = vsel %vm1742_vm0, %v3916_v15, 0.0  ;;  %v3804_v45 = vmul.f32 %v6475_v16, %v9586_v46 }
 0x396   : > { %v3831_v40 = vsel %vm1742_vm0, %v3807_v6, 0.0  ;;  %v3808_v26 = vmul.f32 %v6477_v29, %v9545_v33 }
 0x397   : > { %3953 = vadd.xlane.f32.xlu0 %v3952_v39  ;;  %v6479_v35 = vpop.eup %6478  ;;  %v3822_v48 = vsel %vm1742_vm0, %v3804_v45, 0.0  ;;  %v10310_v45 = vld [vmem:[#allocation35_spill] sm:$0xff] }
 0x398   : > { %v3834_v54 = vsel %vm1742_vm0, %v3808_v26, 0.0  ;;  %v3809_v36 = vmul.f32 %v6479_v35, %v9553_v59  ;;  %v9646_v59 = vpop.xlane.xlu0 %3304 }
 0x399   : > { %5515 = vadd.xlane.f32.xlu1 %v5514_v8  ;;  %v10309_v8 = vld [vmem:[#allocation81_spill] sm:$0xff] }
 0x39a   : > { %v6481_v25 = vpop.eup %6480  ;;  %v3837_v46 = vsel %vm1742_vm0, %v3809_v36, 0.0 }
 0x39b   : > { %3956 = vadd.xlane.f32.xlu0 %v3955_v1  ;;  %v3810_v4 = vmul.f32 %v6481_v25, %v9567_v53 }
 0x39c   : > { %v6483_v20 = vpop.eup %6482  ;;  %v9650_v53 = vpop.xlane.xlu0 %3313 }
 0x39d   : > { %3935 = vadd.xlane.f32.xlu1 %v3934_v60  ;;  %v3840_v33 = vsel %vm1742_vm0, %v3810_v4, 0.0  ;;  %v3811_v44 = vmul.f32 %v6483_v20, %v9582_v37  ;;  %v6485_v37 = vpop.eup %6484 }
 0x39e   : > { %v3550_v43 = vmul.f32 0.6931472, %v6485_v37  ;;  %v6487_v21 = vpop.eup %6486 }
 0x39f   : > { %3832 = vadd.xlane.f32.xlu0 %v3831_v40  ;;  %v3843_v24 = vsel %vm1742_vm0, %v3811_v44, 0.0  ;;  %v6489_v13 = vpop.eup %6488  ;;  %v10312_v44 = vld [vmem:[#allocation49_spill] sm:$0xff] }
 0x3a0   : > { %v9655_v49 = vpop.xlane.xlu0 %3310  ;;  %v3554_v47 = vmul.f32 0.6931472, %v6489_v13  ;;  %v6491_v7 = vpop.eup %6490 }
 0x3a1   : > { %3823 = vadd.xlane.f32.xlu1 %v3822_v48  ;;  %v3556_v9 = vmul.f32 0.6931472, %v6491_v7 }
 0x3a2   : > { %v9674_v11 = vsub.f32 %v10308_v28, %v3554_v47 }
 0x3a3   : > { %3835 = vadd.xlane.f32.xlu0 %v3834_v54  ;;  %v9686_v15 = vsub.f32 %v10309_v8, %v3556_v9  ;;  %v10316_v8 = vld [vmem:[#allocation34_spill] sm:$0xff] }
 0x3a4   : > { %v9662_v41 = vpop.xlane.xlu0 %3316  ;;  %v3905_v61 = vmul.f32 1.442695, %v9674_v11 }
 0x3a5   : > { %v3907_v26 = vmul.f32 1.442695, %v9686_v15 }
 0x3a7   : > { %3838 = vadd.xlane.f32.xlu0 %v3837_v46 }
 0x3a8   : > { %v9669_v34 = vpop.xlane.xlu0 %5470 }
 0x3ab   : > { %3841 = vadd.xlane.f32.xlu0 %v3840_v33 }
 0x3ac   : > { %v9676_v27 = vpop.xlane.xlu0 %5476 }
 0x3af   : > { %3844 = vadd.xlane.f32.xlu0 %v3843_v24 }
 0x3b0   : > { %v9682_v12 = vpop.xlane.xlu0 %5479 }
 0x3b3   : > { %2734 = vadd.xlane.f32.xlu0 %v9296_v63  ;;  %v10306_v63 = vld [vmem:[#allocation71_spill] sm:$0xff] }
 0x3b4   : > { %v9658_v55 = vsub.f32 %v10306_v63, %v3550_v43  ;;  %v9688_v6 = vpop.xlane.xlu0 %5482  ;;  %v10313_v63 = vld [vmem:[#allocation79_spill] sm:$0xff] }
 0x3b7   : > { %2743 = vadd.xlane.f32.xlu0 %v9305_v31  ;;  %v3552_v31 = vmul.f32 0.6931472, %v6487_v21 }
 0x3b8   : > { %v9694_v36 = vpop.xlane.xlu0 %5485 }
 0x3bb   : > { %2752 = vadd.xlane.f32.xlu0 %v9308_v19  ;;  %v3901_v19 = vmul.f32 1.442695, %v9658_v55 }
 0x3bc   : > { %v9703_v13 = vpop.xlane.xlu0 %5488 }
 0x3bf   : > { %2761 = vadd.xlane.f32.xlu0 %v9314_v52  ;;  %v9667_v52 = vsub.f32 %v10307_v51, %v3552_v31 }
 0x3c0   : > { %v9710_v9 = vpop.xlane.xlu0 %5491 }
 0x3c1   : > { %v3903_v2 = vmul.f32 1.442695, %v9667_v52 }
 0x3ca   : > { %v3704_v22 = vpop.xlane.xlu1 %3703 }
 0x3cb   : > { %6492 = vlog2.f32 %v3704_v22 }
 0x3cc   : > { %6494 = vpow2.f32 %v3901_v19 }
 0x3ce   : > { %v3707_v10 = vpop.xlane.xlu1 %3706 }
 0x3cf   : > { %6496 = vlog2.f32 %v3707_v10 }
 0x3d0   : > { %6498 = vlog2.f32 %v9510_v30 }
 0x3d1   : > { %6500 = vpow2.f32 %v3903_v2 }
 0x3d2   : > { %v9678_v18 = vpop.xlane.xlu1 %3295 }
 0x3d6   : > { %v3710_v17 = vpop.xlane.xlu1 %3709 }
 0x3d7   : > { %6502 = vlog2.f32 %v3710_v17 }
 0x3d8   : > { %v6493_v5 = vpop.eup %6492  ;;  %6504 = vlog2.f32 %v9520_v62 }
 0x3d9   : > { %v3742_v30 = vmul.f32 0.6931472, %v6493_v5  ;;  %6506 = vpow2.f32 %v3905_v61  ;;  %v6495_v42 = vpop.eup %6494  ;;  %v10314_v61 = vld [vmem:[#allocation89_spill] sm:$0xff] }
 0x3da   : > { %v3713_v39 = vpop.xlane.xlu1 %3712 }
 0x3db   : > { %6508 = vlog2.f32 %v3713_v39  ;;  %v3764_v56 = vsub.f32 %v9435_v23, %v3742_v30  ;;  %v10311_v23 = vld [vmem:[#allocation63_spill] sm:$0xff]  ;;  %v10315_v39 = vld [vmem:[#allocation36_spill] sm:$0xff] }
 0x3dc   : > { %v6497_v0 = vpop.eup %6496  ;;  %6510 = vlog2.f32 %v10311_v23 }
 0x3dd   : > { %v3744_v16 = vmul.f32 0.6931472, %v6497_v0  ;;  %v3924_v29 = vmul.f32 %v6495_v42, %v3764_v56  ;;  %v6499_v1 = vpop.eup %6498  ;;  %v3789_v46 = vmul.f32 1.442695, %v3764_v56 }
 0x3de   : > { %v3716_v62 = vpop.xlane.xlu1 %3715  ;;  %v6501_v40 = vpop.eup %6500  ;;  %v3558_v48 = vmul.f32 0.6931472, %v6499_v1 }
 0x3df   : > { %v3958_v60 = vsel %vm1742_vm0, %v3924_v29, 0.0  ;;  %v3765_v35 = vsub.f32 %v10310_v45, %v3744_v16  ;;  %6512 = vlog2.f32 %v3716_v62 }
 0x3e0   : > { %3959 = vadd.xlane.f32.xlu1 %v3958_v60  ;;  %6514 = vpow2.f32 %v3907_v26  ;;  %v9698_v24 = vsub.f32 %v10312_v44, %v3558_v48  ;;  %v10317_v26 = vld [vmem:[#allocation80_spill] sm:$0xff] }
 0x3e1   : > { %v3925_v54 = vmul.f32 %v6501_v40, %v3765_v35  ;;  %6516 = vpow2.f32 %v3789_v46  ;;  %v3791_v10 = vmul.f32 1.442695, %v3765_v35  ;;  %v9719_v40 = vpop.xlane.xlu0 %5494  ;;  %v10318_v48 = vld [vmem:[#allocation92_spill] sm:$0xff] }
 0x3e2   : > { %v3719_v25 = vpop.xlane.xlu1 %3718  ;;  %v3909_v51 = vmul.f32 1.442695, %v9698_v24 }
 0x3e3   : > { %v3961_v4 = vsel %vm1742_vm0, %v3925_v54, 0.0  ;;  %6518 = vlog2.f32 %v3719_v25 }
 0x3e4   : > { %v6503_v20 = vpop.eup %6502  ;;  %3962 = vadd.xlane.f32.xlu1 %v3961_v4  ;;  %6520 = vpow2.f32 %v3909_v51 }
 0x3e5   : > { %v6505_v33 = vpop.eup %6504  ;;  %v3746_v37 = vmul.f32 0.6931472, %v6503_v20  ;;  %6522 = vpow2.f32 %v3791_v10  ;;  %v10319_v20 = vld [vmem:[#allocation61_spill] sm:$0xff] }
 0x3e6   : > { %v9700_v43 = vpop.xlane.xlu1 %3319  ;;  %v6507_v21 = vpop.eup %6506  ;;  %v3560_v22 = vmul.f32 0.6931472, %v6505_v33 }
 0x3e7   : > { %v3766_v31 = vsub.f32 %v10313_v63, %v3746_v37 }
 0x3e8   : > { %v6509_v19 = vpop.eup %6508  ;;  %v9708_v17 = vsub.f32 %v10314_v61, %v3560_v22 }
 0x3e9   : > { %v3926_v47 = vmul.f32 %v6507_v21, %v3766_v31  ;;  %v3748_v28 = vmul.f32 0.6931472, %v6509_v19  ;;  %v6511_v5 = vpop.eup %6510  ;;  %v3793_v60 = vmul.f32 1.442695, %v3766_v31 }
 0x3ea   : > { %v3722_v2 = vpop.xlane.xlu1 %3721  ;;  %v3911_v0 = vmul.f32 1.442695, %v9708_v17  ;;  %v3562_v16 = vmul.f32 0.6931472, %v6511_v5 }
 0x3eb   : > { %v3964_v7 = vsel %vm1742_vm0, %v3926_v47, 0.0  ;;  %6524 = vlog2.f32 %v3722_v2  ;;  %v3767_v42 = vsub.f32 %v10315_v39, %v3748_v28  ;;  %v10320_v28 = vld [vmem:[#allocation62_spill] sm:$0xff] }
 0x3ec   : > { %3965 = vadd.xlane.f32.xlu1 %v3964_v7  ;;  %v6513_v56 = vpop.eup %6512  ;;  %6526 = vpow2.f32 %v3911_v0  ;;  %v9723_v23 = vsub.f32 %v10318_v48, %v3562_v16  ;;  %v10321_v0 = vld [vmem:[#allocation46_spill] sm:$0xff] }
 0x3ed   : > { %v6515_v29 = vpop.eup %6514  ;;  %v3750_v62 = vmul.f32 0.6931472, %v6513_v56  ;;  %6528 = vpow2.f32 %v3793_v60  ;;  %v3795_v31 = vmul.f32 1.442695, %v3767_v42 }
 0x3ee   : > { %v9712_v30 = vpop.xlane.xlu1 %3325  ;;  %v3927_v45 = vmul.f32 %v6515_v29, %v3767_v42  ;;  %v6517_v35 = vpop.eup %6516  ;;  %v3913_v37 = vmul.f32 1.442695, %v9723_v23 }
 0x3ef   : > { %v3812_v4 = vmul.f32 %v6517_v35, %v9658_v55  ;;  %v3768_v33 = vsub.f32 %v10319_v20, %v3750_v62  ;;  %v10323_v35 = vld [vmem:[#allocation55_spill] sm:$0xff] }
 0x3f0   : > { %2806 = vadd.xlane.f32.xlu1 %v10316_v8  ;;  %v6519_v25 = vpop.eup %6518  ;;  %v3967_v46 = vsel %vm1742_vm0, %v3927_v45, 0.0  ;;  %6530 = vpow2.f32 %v3913_v37  ;;  %v10322_v8 = vld [vmem:[#allocation31_spill] sm:$0xff] }
 0x3f1   : > { %v6521_v21 = vpop.eup %6520  ;;  %v3752_v63 = vmul.f32 0.6931472, %v6519_v25  ;;  %v3846_v51 = vsel %vm1742_vm0, %v3812_v4, 0.0  ;;  %6532 = vpow2.f32 %v3795_v31  ;;  %v3797_v39 = vmul.f32 1.442695, %v3768_v33 }
 0x3f2   : > { %v9717_v1 = vpop.xlane.xlu1 %3322  ;;  %v6523_v22 = vpop.eup %6522  ;;  %v3928_v47 = vmul.f32 %v6521_v21, %v3768_v33  ;;  %v9745_v16 = vsub.s32 %v10322_v8, %v10321_v0  ;;  %vm5646_vm11 = vcmp.eq.s32.totalorder %v10322_v8, 1  ;;  %vm5645_vm12 = vcmp.eq.s32.totalorder %v10322_v8, 0 }
 0x3f3   : > { %v3769_v7 = vsub.f32 %v10320_v28, %v3752_v63  ;;  %v3813_v42 = vmul.f32 %v6523_v22, %v9667_v52  ;;  %6534 = vpow2.f32 %v3797_v39 }
 0x3f4   : > { %2815 = vadd.xlane.f32.xlu1 %v10317_v26  ;;  %v3970_v5 = vsel %vm1742_vm0, %v3928_v47, 0.0  ;;  %v5536_v52 = vrot.slane %v9669_v34, %v9745_v16  ;;  %v5544_v21 = vrot.slane %v9676_v27, %v9745_v16  ;;  %v5548_v31 = vrot.slane %v9682_v12, %v9745_v16 }
 0x3f5   : > { %v3849_v60 = vsel %vm1742_vm0, %v3813_v42, 0.0  ;;  %v3799_v45 = vmul.f32 1.442695, %v3769_v7  ;;  %v3339_v42 = vmax.f32 %v9624_v38, 1e-08 }
 0x3f6   : > { %v9725_v54 = vpop.xlane.xlu1 %3331 }
 0x3f7   : > { %6536 = vpow2.f32 %v3799_v45 }
 0x3f8   : > { %v9730_v44 = vpop.xlane.xlu0 %3932  ;;  %3968 = vadd.xlane.f32.xlu1 %v3967_v46  ;;  %v6525_v10 = vpop.eup %6524 }
 0x3f9   : > { %v3754_v61 = vmul.f32 0.6931472, %v6525_v10  ;;  %v6527_v56 = vpop.eup %6526 }
 0x3fa   : > { %v9733_v19 = vpop.xlane.xlu1 %3328  ;;  %v3929_v62 = vmul.f32 %v6527_v56, %v3769_v7  ;;  %v6529_v48 = vpop.eup %6528 }
 0x3fb   : > { %v3770_v26 = vsub.f32 %v10323_v35, %v3754_v61  ;;  %v3814_v33 = vmul.f32 %v6529_v48, %v9674_v11  ;;  %v5556_v11 = vrot.slane %v9694_v36, %v9745_v16  ;;  %v5560_v61 = vrot.slane %v9703_v13, %v9745_v16 }
 0x3fc   : > { %3847 = vadd.xlane.f32.xlu1 %v3846_v51  ;;  %v9736_v55 = vpop.xlane.xlu0 %3938  ;;  %v3973_v4 = vsel %vm1742_vm0, %v3929_v62, 0.0  ;;  %v5552_v51 = vrot.slane %v9688_v6, %v9745_v16  ;;  %v5564_v36 = vrot.slane %v9710_v9, %v9745_v16  ;;  %v3342_v62 = vmax.f32 %v9631_v58, 1e-08 }
 0x3fd   : > { %v3801_v37 = vmul.f32 1.442695, %v3770_v26  ;;  %v6531_v34 = vpop.eup %6530  ;;  %v3852_v12 = vsel %vm1742_vm0, %v3814_v33, 0.0 }
 0x3fe   : > { %v9738_v2 = vpop.xlane.xlu1 %3337  ;;  %v6533_v27 = vpop.eup %6532  ;;  %v3930_v7 = vmul.f32 %v6531_v34, %v3770_v26  ;;  %v3341_v26 = vmax.f32 %v9637_v32, 1e-08 }
 0x3ff   : > { %6538 = vpow2.f32 %v3801_v37  ;;  %v3815_v45 = vmul.f32 %v6533_v27, %v9686_v15 }
 0x400   : > { %3971 = vadd.xlane.f32.xlu1 %v3970_v5  ;;  %v9751_v25 = vpop.xlane.xlu0 %3941  ;;  %v3976_v13 = vsel %vm1742_vm0, %v3930_v7, 0.0  ;;  %v6535_v35 = vpop.eup %6534  ;;  %6540 = vrcp.f32 %v3339_v42 }
 0x401   : > { %6542 = vrcp.f32 %v3342_v62  ;;  %v3855_v58 = vsel %vm1742_vm0, %v3815_v45, 0.0 }
 0x402   : > { %v9747_v29 = vpop.xlane.xlu1 %3334  ;;  %6544 = vrcp.f32 %v3341_v26 }
 0x404   : > { %3850 = vadd.xlane.f32.xlu1 %v3849_v60 }
 0x406   : > { %v5474_v46 = vpop.xlane.xlu1 %5473 }
 0x407   : > { %v5540_v20 = vrot.slane %v5474_v46, %v9745_v16  ;;  %v6537_v46 = vpop.eup %6536 }
 0x408   : > { %v3821_v63 = vpop.xlane.xlu0 %3820  ;;  %3974 = vadd.xlane.f32.xlu1 %v3973_v4 }
 0x409   : > { %v5598_v22 = vsel %vm5597_vm4, %v5540_v20, %v5536_v52  ;;  %v3816_v52 = vmul.f32 %v6535_v35, %v9698_v24  ;;  %v3817_v20 = vmul.f32 %v6537_v46, %v9708_v17  ;;  %v3867_v37 = vmul.f32 -0.5, %v3821_v63  ;;  %v10324_v46 = vld [vmem:[#allocation77_spill] sm:$0xff] }
 0x40a   : > { %v5600_v47 = vsel %vm5599_vm5, %v5544_v21, %v5598_v22  ;;  %v9768_v10 = vpop.xlane.xlu1 %5497  ;;  %v3343_v24 = vmax.f32 %v9646_v59, 1e-08  ;;  %v3340_v17 = vmax.f32 %v9678_v18, 1e-08  ;;  %v3982_v63 = vmul.f32 0.5, %v9751_v25 }
 0x40b   : > { %v5602_v28 = vsel %vm5601_vm6, %v5548_v31, %v5600_v47  ;;  %v3858_v32 = vsel %vm1742_vm0, %v3816_v52, 0.0  ;;  %v3979_v31 = vmul.f32 0.5, %v9730_v44  ;;  %v3981_v47 = vmul.f32 0.5, %v9736_v55 }
 0x40c   : > { %v9774_v5 = vpop.xlane.xlu0 %3944  ;;  %3853 = vadd.xlane.f32.xlu1 %v3852_v12  ;;  %v5604_v6 = vsel %vm5603_vm7, %v5552_v51, %v5602_v28  ;;  %v6539_v33 = vpop.eup %6538  ;;  %v3861_v51 = vsel %vm1742_vm0, %v3817_v20, 0.0  ;;  %v3344_v44 = vmax.f32 %v9641_v14, 1e-08  ;;  %v5572_v7 = vrot.slane %v9768_v10, %v9745_v16 }
 0x40d   : > { %v5606_v39 = vsel %vm5605_vm8, %v5556_v11, %v5604_v6  ;;  %v3818_v11 = vmul.f32 %v6539_v33, %v9723_v23  ;;  %v3995_v27 = vsub.f32 %v3867_v37, %v3979_v31  ;;  %v6541_v6 = vpop.eup %6540  ;;  %6546 = vrcp.f32 %v3343_v24 }
 0x40e   : > { %v9781_v56 = vpop.xlane.xlu1 %5500  ;;  %v5608_v0 = vsel %vm5607_vm9, %v5560_v61, %v5606_v39  ;;  %v6543_v39 = vpop.eup %6542  ;;  %v5568_v18 = vrot.slane %v9719_v40, %v9745_v16  ;;  %6548 = vrcp.f32 %v3340_v17  ;;  %v3345_v40 = vmax.f32 %v9655_v49, 1e-08 }
 0x40f   : > { %v5610_v60 = vsel %vm5609_vm10, %v5564_v36, %v5608_v0  ;;  %v5576_v23 = vrot.slane %v9781_v56, %v9745_v16  ;;  %v3864_v36 = vsel %vm1742_vm0, %v3818_v11, 0.0  ;;  %v4011_v25 = vmul.f32 %v6541_v6, %v3995_v27  ;;  %v6545_v10 = vpop.eup %6544 }
 0x410   : > { %v9789_v9 = vpop.xlane.xlu0 %3947  ;;  %3977 = vadd.xlane.f32.xlu1 %v3976_v13  ;;  %v5620_v38 = vsel %vm5468_vm3, %v5610_v60, 0.0  ;;  %v5611_v62 = vsel %vm5597_vm4, %v5572_v7, %v5568_v18  ;;  %6550 = vrcp.f32 %v3344_v44  ;;  %v3346_v37 = vmax.f32 %v9650_v53, 1e-08 }
 0x411   : > { %5621 = vadd.xlane.f32.xlu0 %v5620_v38  ;;  %v5612_v35 = vsel %vm5599_vm5, %v5576_v23, %v5611_v62  ;;  %v4027_v38 = vrot.slane %v4011_v25, 4  ;;  %6552 = vrcp.f32 %v3345_v40  ;;  %v3983_v24 = vmul.f32 0.5, %v9774_v5 }
 0x412   : > { %v5504_v48 = vpop.xlane.xlu1 %5503  ;;  %6554 = vrcp.f32 %v3346_v37  ;;  %vm5647_vm0 = vcmp.eq.s32.totalorder %v10322_v8, 2 }
 0x413   : > { %v5580_v14 = vrot.slane %v5504_v48, %v9745_v16  ;;  %v4028_v31 = vadd.f32 %v4027_v38, %v4011_v25 }
 0x414   : > { %v3827_v4 = vpop.xlane.xlu0 %3826  ;;  %3856 = vadd.xlane.f32.xlu1 %v3855_v58 }
 0x415   : > { %v3869_v22 = vmul.f32 -0.5, %v3827_v4  ;;  %v5613_v48 = vsel %vm5601_vm6, %v5580_v14, %v5612_v35  ;;  %v4029_v53 = vrot.slane %v4028_v31, 2 }
 0x416   : > { %v5507_v15 = vpop.xlane.xlu1 %5506 }
 0x417   : > { %v3997_v59 = vsub.f32 %v3869_v22, %v3981_v47  ;;  %v5584_v0 = vrot.slane %v5507_v15, %v9745_v16 }
 0x418   : > { %v9796_v21 = vpop.xlane.xlu0 %3950  ;;  %3859 = vadd.xlane.f32.xlu1 %v3858_v32 }
 0x419   : > { %v4013_v56 = vmul.f32 %v6545_v10, %v3997_v59  ;;  %v5614_v4 = vsel %vm5603_vm7, %v5584_v0, %v5613_v48  ;;  %v3984_v59 = vmul.f32 0.5, %v9789_v9  ;;  %v4030_v10 = vadd.f32 %v4029_v53, %v4028_v31 }
 0x41a   : > { %v5510_v34 = vpop.xlane.xlu1 %5509  ;;  %v6547_v44 = vpop.eup %6546  ;;  %v3985_v0 = vmul.f32 0.5, %v9796_v21 }
 0x41b   : > { %v5588_v60 = vrot.slane %v5510_v34, %v9745_v16  ;;  %v4039_v15 = vrot.slane %v4013_v56, 4  ;;  %v10325_v34 = vld [vmem:[#allocation60_spill] sm:$0xff]  ;;  %v6549_v5 = vpop.eup %6548 }
 0x41c   : > { %v3830_v28 = vpop.xlane.xlu0 %3829  ;;  %3862 = vadd.xlane.f32.xlu1 %v3861_v51 }
 0x41d   : > { %v3870_v12 = vmul.f32 -0.5, %v3830_v28  ;;  %v5615_v20 = vsel %vm5605_vm8, %v5588_v60, %v5614_v4  ;;  %v4040_v11 = vadd.f32 %v4039_v15, %v4013_v56  ;;  %v6551_v14 = vpop.eup %6550 }
 0x41e   : > { %v5513_v61 = vpop.xlane.xlu1 %5512 }
 0x41f   : > { %v3998_v55 = vsub.f32 %v3870_v12, %v3982_v63  ;;  %v5592_v26 = vrot.slane %v5513_v61, %v9745_v16 }
 0x420   : > { %v9814_v42 = vpop.xlane.xlu0 %3953  ;;  %3865 = vadd.xlane.f32.xlu1 %v3864_v36 }
 0x421   : > { %v4014_v13 = vmul.f32 %v6543_v39, %v3998_v55  ;;  %v5616_v33 = vsel %vm5607_vm9, %v5592_v26, %v5615_v20  ;;  %v4041_v55 = vrot.slane %v4040_v11, 2  ;;  %v3986_v21 = vmul.f32 0.5, %v9814_v42 }
 0x422   : > { %v5516_v45 = vpop.xlane.xlu1 %5515 }
 0x423   : > { %v5596_v52 = vrot.slane %v5516_v45, %v9745_v16  ;;  %v4045_v32 = vrot.slane %v4014_v13, 4  ;;  %v4042_v40 = vadd.f32 %v4041_v55, %v4040_v11 }
 0x424   : > { %v9823_v58 = vpop.xlane.xlu0 %3956  ;;  %2824 = vadd.xlane.f32.xlu1 %v10324_v46  ;;  %v4031_v46 = vrot.slane %v4030_v10, 1 }
 0x425   : > { %v5617_v16 = vsel %vm5609_vm10, %v5596_v52, %v5616_v33  ;;  %v4046_v47 = vadd.f32 %v4045_v32, %v4014_v13  ;;  %v6553_v52 = vpop.eup %6552  ;;  %v4043_v33 = vrot.slane %v4042_v40, 1 }
 0x426   : > { %v3936_v49 = vpop.xlane.xlu1 %3935  ;;  %v5623_v12 = vsel %vm5468_vm3, %v5617_v16, 0.0  ;;  %v6555_v11 = vpop.eup %6554 }
 0x427   : > { %v3980_v17 = vmul.f32 0.5, %v3936_v49  ;;  %v4047_v36 = vrot.slane %v4046_v47, 2 }
 0x428   : > { %v3833_v22 = vpop.xlane.xlu0 %3832  ;;  %2833 = vadd.xlane.f32.xlu1 %v10325_v34 }
 0x429   : > { %v3871_v51 = vmul.f32 -0.5, %v3833_v22  ;;  %v4048_v9 = vadd.f32 %v4047_v36, %v4046_v47  ;;  %v4032_v47 = vadd.f32 %v4031_v46, %v4030_v10 }
 0x42a   : > { %v3824_v27 = vpop.xlane.xlu1 %3823 }
 0x42b   : > { %v3999_v28 = vsub.f32 %v3871_v51, %v3983_v24  ;;  %v3868_v63 = vmul.f32 -0.5, %v3824_v27  ;;  %v4049_v31 = vrot.slane %v4048_v9, 1 }
 0x42c   : > { %v3836_v7 = vpop.xlane.xlu0 %3835  ;;  %5624 = vadd.xlane.f32.xlu1 %v5623_v12 }
 0x42d   : > { %v4015_v61 = vmul.f32 %v6547_v44, %v3999_v28  ;;  %v3872_v6 = vmul.f32 -0.5, %v3836_v7  ;;  %v3996_v23 = vsub.f32 %v3868_v63, %v3980_v17  ;;  %v4044_v63 = vadd.f32 %v4043_v33, %v4042_v40 }
 0x42e   : > { %v4050_v44 = vadd.f32 %v4049_v31, %v4048_v9 }
 0x42f   : > { %v4051_v39 = vrot.slane %v4015_v61, 4  ;;  %v4000_v18 = vsub.f32 %v3872_v6, %v3984_v59  ;;  %v4012_v25 = vmul.f32 %v6549_v5, %v3996_v23  ;;  %v4124_v6 = vmul.f32 0.125, %v4032_v47 }
 0x430   : > { %v3839_v62 = vpop.xlane.xlu0 %3838  ;;  %v4126_v36 = vmul.f32 0.125, %v4044_v63  ;;  %v3349_v63 = vmax.f32 %v9717_v1, 1e-08 }
 0x431   : > { %v4052_v56 = vadd.f32 %v4051_v39, %v4015_v61  ;;  %v4016_v13 = vmul.f32 %v6551_v14, %v4000_v18  ;;  %v3873_v60 = vmul.f32 -0.5, %v3839_v62  ;;  %v4033_v45 = vrot.slane %v4012_v25, 4 }
 0x432   : > { %v4127_v18 = vmul.f32 0.125, %v4050_v44 }
 0x433   : > { %v4053_v35 = vrot.slane %v4052_v56, 2  ;;  %v4057_v26 = vrot.slane %v4016_v13, 4  ;;  %v4001_v38 = vsub.f32 %v3873_v60, %v3985_v0  ;;  %v4034_v48 = vadd.f32 %v4033_v45, %v4012_v25 }
 0x434   : > { %v3842_v4 = vpop.xlane.xlu0 %3841 }
 0x435   : > { %v4054_v15 = vadd.f32 %v4053_v35, %v4052_v56  ;;  %v4058_v32 = vadd.f32 %v4057_v26, %v4016_v13  ;;  %v4017_v20 = vmul.f32 %v6553_v52, %v4001_v38  ;;  %v4035_v49 = vrot.slane %v4034_v48, 2 }
 0x436   : > { %v3874_v37 = vmul.f32 -0.5, %v3842_v4 }
 0x437   : > { %v4059_v22 = vrot.slane %v4058_v32, 2  ;;  %v4063_v34 = vrot.slane %v4017_v20, 4  ;;  %v4036_v16 = vadd.f32 %v4035_v49, %v4034_v48  ;;  %v4055_v24 = vrot.slane %v4054_v15, 1 }
 0x438   : > { %v4002_v51 = vsub.f32 %v3874_v37, %v3986_v21  ;;  %v3845_v4 = vpop.xlane.xlu0 %3844  ;;  %v3987_v37 = vmul.f32 0.5, %v9823_v58 }
 0x439   : > { %v4060_v27 = vadd.f32 %v4059_v22, %v4058_v32  ;;  %v4064_v28 = vadd.f32 %v4063_v34, %v4017_v20  ;;  %v4037_v17 = vrot.slane %v4036_v16, 1  ;;  %v4056_v61 = vadd.f32 %v4055_v24, %v4054_v15 }
 0x43a   : > { %v4018_v12 = vmul.f32 %v6555_v11, %v4002_v51  ;;  %v3347_v15 = vmax.f32 %v9662_v41, 1e-08  ;;  %v3875_v21 = vmul.f32 -0.5, %v3845_v4  ;;  %v3348_v34 = vmax.f32 %v9700_v43, 1e-08 }
 0x43b   : > { %v4061_v53 = vrot.slane %v4060_v27, 1  ;;  %v4065_v7 = vrot.slane %v4064_v28, 2  ;;  %v4038_v59 = vadd.f32 %v4037_v17, %v4036_v16  ;;  %v4128_v10 = vmul.f32 0.125, %v4056_v61 }
 0x43c   : > { %v4069_v42 = vrot.slane %v4018_v12, 4  ;;  %v2735_v20 = vpop.xlane.xlu0 %2734  ;;  %6556 = vrcp.f32 %v3347_v15  ;;  %v4003_v22 = vsub.f32 %v3875_v21, %v3987_v37  ;;  %v3351_v4 = vmax.f32 %v9733_v19, 1e-08 }
 0x43d   : > { %v4062_v23 = vadd.f32 %v4061_v53, %v4060_v27  ;;  %v4066_v5 = vadd.f32 %v4065_v7, %v4064_v28  ;;  %v4125_v55 = vmul.f32 0.125, %v4038_v59  ;;  %6558 = vrcp.f32 %v3348_v34 }
 0x43e   : > { %v4070_v39 = vadd.f32 %v4069_v42, %v4018_v12  ;;  %v2859_v41 = vrot.slane %v2735_v20, 4  ;;  %6560 = vrcp.f32 %v3349_v63 }
 0x43f   : > { %v4067_v25 = vrot.slane %v4066_v5, 1  ;;  %v5666_v14 = vsel %vm5597_vm4, %v4125_v55, %v4124_v6  ;;  %v4129_v56 = vmul.f32 0.125, %v4062_v23 }
 0x440   : > { %v4071_v0 = vrot.slane %v4070_v39, 2  ;;  %v5667_v62 = vsel %vm5599_vm5, %v4126_v36, %v5666_v14  ;;  %v2744_v33 = vpop.xlane.xlu0 %2743  ;;  %v2860_v12 = vadd.f32 %v2859_v41, %v2735_v20 }
 0x441   : > { %v4068_v13 = vadd.f32 %v4067_v25, %v4066_v5  ;;  %v5668_v60 = vsel %vm5601_vm6, %v4127_v18, %v5667_v62  ;;  %v2865_v17 = vrot.slane %v2744_v33, 4 }
 0x442   : > { %v4072_v45 = vadd.f32 %v4071_v0, %v4070_v39  ;;  %v5669_v40 = vsel %vm5603_vm7, %v4128_v10, %v5668_v60  ;;  %v2861_v61 = vrot.slane %v2860_v12, 2  ;;  %v3350_v39 = vmax.f32 %v9712_v30, 1e-08 }
 0x443   : > { %v4130_v9 = vmul.f32 0.125, %v4068_v13  ;;  %v5670_v35 = vsel %vm5605_vm8, %v4129_v56, %v5669_v40  ;;  %v2866_v7 = vadd.f32 %v2865_v17, %v2744_v33 }
 0x444   : > { %v4073_v26 = vrot.slane %v4072_v45, 1  ;;  %v2753_v16 = vpop.xlane.xlu0 %2752  ;;  %v2862_v14 = vadd.f32 %v2861_v61, %v2860_v12  ;;  %6562 = vrcp.f32 %v3350_v39 }
 0x445   : > { %v5671_v38 = vsel %vm5607_vm9, %v4130_v9, %v5670_v35  ;;  %v2871_v58 = vrot.slane %v2753_v16, 4  ;;  %v2867_v36 = vrot.slane %v2866_v7, 2  ;;  %6564 = vrcp.f32 %v3351_v4 }
 0x446   : > { %v4074_v48 = vadd.f32 %v4073_v26, %v4072_v45  ;;  %v2863_v40 = vrot.slane %v2862_v14, 1 }
 0x447   : > { %v2872_v59 = vadd.f32 %v2871_v58, %v2753_v16  ;;  %v2868_v13 = vadd.f32 %v2867_v36, %v2866_v7  ;;  %v3353_v7 = vmax.f32 %v9747_v29, 1e-08 }
 0x448   : > { %v4131_v52 = vmul.f32 0.125, %v4074_v48  ;;  %v2762_v27 = vpop.xlane.xlu0 %2761  ;;  %v2864_v21 = vadd.f32 %v2863_v40, %v2862_v14 }
 0x449   : > { %v6557_v51 = vpop.eup %6556  ;;  %v2877_v44 = vrot.slane %v2762_v27, 4  ;;  %v2873_v18 = vrot.slane %v2872_v59, 2 }
 0x44a   : > { %v9845_v46 = vsel %vm5609_vm10, %v4131_v52, %v5671_v38  ;;  %v4019_v11 = vmul.f32 %v6557_v51, %v4003_v22  ;;  %v6559_v25 = vpop.eup %6558  ;;  %v2869_v52 = vrot.slane %v2868_v13, 1  ;;  %v3352_v51 = vmax.f32 %v9725_v54, 1e-08 }
 0x44b   : > { %v2878_v42 = vadd.f32 %v2877_v44, %v2762_v27  ;;  %v2874_v60 = vadd.f32 %v2873_v18, %v2872_v59  ;;  %v6561_v33 = vpop.eup %6560  ;;  %v2936_v17 = vmul.f32 0.00012207031, %v2864_v21 }
 0x44c   : > { %v4075_v28 = vrot.slane %v4019_v11, 4  ;;  %6566 = vrcp.f32 %v3352_v51 }
 0x44d   : > { %v2879_v10 = vrot.slane %v2878_v42, 2  ;;  %v2875_v15 = vrot.slane %v2874_v60, 1  ;;  %6568 = vrcp.f32 %v3353_v7 }
 0x44e   : > { %v4076_v43 = vadd.f32 %v4075_v28, %v4019_v11 }
 0x44f   : > { %v2880_v9 = vadd.f32 %v2879_v10, %v2878_v42  ;;  %v2876_v41 = vadd.f32 %v2875_v15, %v2874_v60 }
 0x450   : > { %v4077_v55 = vrot.slane %v4076_v43, 2 }
 0x451   : > { %v2881_v37 = vrot.slane %v2880_v9, 1  ;;  %v2938_v61 = vmul.f32 0.00012207031, %v2876_v41 }
 0x452   : > { %v4078_v56 = vadd.f32 %v4077_v55, %v4076_v43  ;;  %v3354_v55 = vmax.f32 %v9738_v2, 1e-08 }
 0x453   : > { %v2882_v19 = vadd.f32 %v2881_v37, %v2880_v9 }
 0x454   : > { %v4079_v30 = vrot.slane %v4078_v56, 1  ;;  %6570 = vrcp.f32 %v3354_v55 }
 0x455   : > { %v2939_v36 = vmul.f32 0.00012207031, %v2882_v19 }
 0x456   : > { %v4080_v11 = vadd.f32 %v4079_v30, %v4078_v56 }
 0x458   : > { %v4132_v59 = vmul.f32 0.125, %v4080_v11 }
 0x469   : > { %v3960_v32 = vpop.xlane.xlu1 %3959 }
 0x46a   : > { %v3988_v23 = vmul.f32 0.5, %v3960_v32 }
 0x46d   : > { %v3963_v49 = vpop.xlane.xlu1 %3962 }
 0x46e   : > { %v3989_v26 = vmul.f32 0.5, %v3963_v49  ;;  %v2870_v49 = vadd.f32 %v2869_v52, %v2868_v13 }
 0x470   : > { %v2937_v54 = vmul.f32 0.00012207031, %v2870_v49 }
 0x475   : > { %v9849_v31 = vpop.xlane.xlu1 %3965 }
 0x476   : > { %v3990_v58 = vmul.f32 0.5, %v9849_v31  ;;  %v5703_v31 = vsel %vm5603_vm7, %v2936_v17, %v9570_v57 }
 0x477   : > { %v5704_v14 = vsel %vm5605_vm8, %v2937_v54, %v5703_v31 }
 0x478   : > { %v5705_v56 = vsel %vm5607_vm9, %v2938_v61, %v5704_v14 }
 0x479   : > { %v9852_v24 = vpop.xlane.xlu1 %2806  ;;  %v5706_v13 = vsel %vm5609_vm10, %v2939_v36, %v5705_v56 }
 0x47a   : > { %v2907_v15 = vrot.slane %v9852_v24, 4 }
 0x47d   : > { %v9854_v47 = vpop.xlane.xlu1 %2815 }
 0x481   : > { %v9857_v53 = vpop.xlane.xlu1 %3968 }
 0x482   : > { %v3991_v57 = vmul.f32 0.5, %v9857_v53 }
 0x485   : > { %v3848_v6 = vpop.xlane.xlu1 %3847 }
 0x486   : > { %v3876_v5 = vmul.f32 -0.5, %v3848_v6 }
 0x488   : > { %v4004_v1 = vsub.f32 %v3876_v5, %v3988_v23  ;;  %v6563_v5 = vpop.eup %6562 }
 0x489   : > { %v9860_v0 = vpop.xlane.xlu1 %3971  ;;  %v6565_v4 = vpop.eup %6564 }
 0x48a   : > { %v4020_v62 = vmul.f32 %v6559_v25, %v4004_v1  ;;  %v6567_v51 = vpop.eup %6566 }
 0x48c   : > { %v4081_v45 = vrot.slane %v4020_v62, 4 }
 0x48d   : > { %v3851_v35 = vpop.xlane.xlu1 %3850 }
 0x48e   : > { %v4082_v38 = vadd.f32 %v4081_v45, %v4020_v62  ;;  %v3877_v48 = vmul.f32 -0.5, %v3851_v35 }
 0x490   : > { %v4083_v32 = vrot.slane %v4082_v38, 2  ;;  %v4005_v20 = vsub.f32 %v3877_v48, %v3989_v26 }
 0x491   : > { %v9863_v22 = vpop.xlane.xlu1 %3974 }
 0x492   : > { %v4084_v34 = vadd.f32 %v4083_v32, %v4082_v38  ;;  %v4021_v16 = vmul.f32 %v6561_v33, %v4005_v20  ;;  %v2901_v38 = vrot.slane %v9660_v3, 4  ;;  %v2913_v32 = vrot.slane %v9854_v47, 4 }
 0x493   : > { %v3993_v17 = vmul.f32 0.5, %v9863_v22 }
 0x494   : > { %v4085_v27 = vrot.slane %v4084_v34, 1  ;;  %v4087_v28 = vrot.slane %v4021_v16, 4 }
 0x495   : > { %v3854_v63 = vpop.xlane.xlu1 %3853 }
 0x496   : > { %v4086_v12 = vadd.f32 %v4085_v27, %v4084_v34  ;;  %v4088_v44 = vadd.f32 %v4087_v28, %v4021_v16  ;;  %v3878_v43 = vmul.f32 -0.5, %v3854_v63  ;;  %v2902_v16 = vadd.f32 %v2901_v38, %v9660_v3 }
 0x497   : > { %v2908_v27 = vadd.f32 %v2907_v15, %v9852_v24  ;;  %v2914_v28 = vadd.f32 %v2913_v32, %v9854_v47 }
 0x498   : > { %v4133_v42 = vmul.f32 0.125, %v4086_v12  ;;  %v4089_v6 = vrot.slane %v4088_v44, 2  ;;  %v4006_v23 = vsub.f32 %v3878_v43, %v3990_v58  ;;  %v6569_v43 = vpop.eup %6568 }
 0x499   : > { %v3978_v39 = vpop.xlane.xlu1 %3977  ;;  %v2909_v61 = vrot.slane %v2908_v27, 2 }
 0x49a   : > { %v5673_v18 = vsel %vm5597_vm4, %v4133_v42, %v4132_v59  ;;  %v4090_v29 = vadd.f32 %v4089_v6, %v4088_v44  ;;  %v4022_v1 = vmul.f32 %v6563_v5, %v4006_v23  ;;  %v5622_v25 = vpop.xlane.xlu0 %5621  ;;  %v2903_v44 = vrot.slane %v2902_v16, 2 }
 0x49b   : > { %v5627_v10 = vmul.f32 0.015625, %v5622_v25  ;;  %v2915_v42 = vrot.slane %v2914_v28, 2  ;;  %v3994_v6 = vmul.f32 0.5, %v3978_v39  ;;  %v6571_v25 = vpop.eup %6570  ;;  %v2910_v14 = vadd.f32 %v2909_v61, %v2908_v27 }
 0x49c   : > { %v4091_v2 = vrot.slane %v4090_v29, 1  ;;  %v4093_v62 = vrot.slane %v4022_v1, 4  ;;  %v2904_v22 = vadd.f32 %v2903_v44, %v2902_v16 }
 0x49d   : > { %v5648_v60 = vsel %vm5647_vm0, %v5627_v10, 0.0  ;;  %v3857_v45 = vpop.xlane.xlu1 %3856  ;;  %v2916_v10 = vadd.f32 %v2915_v42, %v2914_v28 }
 0x49e   : > { %v4092_v40 = vadd.f32 %v4091_v2, %v4090_v29  ;;  %v4094_v9 = vadd.f32 %v4093_v62, %v4022_v1  ;;  %v5682_v35 = vsel %vm5646_vm11, %v9845_v46, %v5648_v60  ;;  %v3879_v26 = vmul.f32 -0.5, %v3857_v45 }
 0x49f   : > { %v5716_v48 = vsel %vm5645_vm12, %v5706_v13, %v5682_v35  ;;  %v3992_v46 = vmul.f32 0.5, %v9860_v0  ;;  %v2905_v13 = vrot.slane %v2904_v22, 1  ;;  %v2917_v38 = vrot.slane %v2916_v10, 1 }
 0x4a0   : > { %v4134_v53 = vmul.f32 0.125, %v4092_v40  ;;  %v4095_v30 = vrot.slane %v4094_v9, 2  ;;  %5718 = vst [vmem:[%s9888_s7] sm:$0xff] %v5716_v48  ;;  %v4007_v52 = vsub.f32 %v3879_v26, %v3991_v57  ;;  %v2911_v26 = vrot.slane %v2910_v14, 1 }
 0x4a1   : > { %v3860_v20 = vpop.xlane.xlu1 %3859  ;;  %v2906_v32 = vadd.f32 %v2905_v13, %v2904_v22 }
 0x4a2   : > { %v5674_v33 = vsel %vm5599_vm5, %v4134_v53, %v5673_v18  ;;  %v4096_v21 = vadd.f32 %v4095_v30, %v4094_v9  ;;  %v4023_v37 = vmul.f32 %v6565_v4, %v4007_v52  ;;  %v3880_v34 = vmul.f32 -0.5, %v3860_v20 }
 0x4a3   : > { %v2912_v16 = vadd.f32 %v2911_v26, %v2910_v14 }
 0x4a4   : > { %v4097_v11 = vrot.slane %v4096_v21, 1  ;;  %v4099_v49 = vrot.slane %v4023_v37, 4  ;;  %v4008_v41 = vsub.f32 %v3880_v34, %v3992_v46 }
 0x4a5   : > { %v3863_v19 = vpop.xlane.xlu1 %3862  ;;  %v2944_v44 = vmul.f32 0.00012207031, %v2912_v16 }
 0x4a6   : > { %v4098_v0 = vadd.f32 %v4097_v11, %v4096_v21  ;;  %v4100_v63 = vadd.f32 %v4099_v49, %v4023_v37  ;;  %v4024_v58 = vmul.f32 %v6567_v51, %v4008_v41  ;;  %v3881_v12 = vmul.f32 -0.5, %v3863_v19 }
 0x4a7   : > { %v2918_v51 = vadd.f32 %v2917_v38, %v2916_v10 }
 0x4a8   : > { %v4135_v7 = vmul.f32 0.125, %v4098_v0  ;;  %v4101_v59 = vrot.slane %v4100_v63, 2  ;;  %v4105_v3 = vrot.slane %v4024_v58, 4  ;;  %v4009_v54 = vsub.f32 %v3881_v12, %v3993_v17 }
 0x4a9   : > { %v3866_v23 = vpop.xlane.xlu1 %3865  ;;  %v2943_v0 = vmul.f32 0.00012207031, %v2906_v32 }
 0x4aa   : > { %v4102_v24 = vadd.f32 %v4101_v59, %v4100_v63  ;;  %v4106_v5 = vadd.f32 %v4105_v3, %v4024_v58  ;;  %v4025_v47 = vmul.f32 %v6569_v43, %v4009_v54  ;;  %v3882_v55 = vmul.f32 -0.5, %v3866_v23 }
 0x4ab   : > { %v5675_v36 = vsel %vm5601_vm6, %v4135_v7, %v5674_v33  ;;  %v2945_v43 = vmul.f32 0.00012207031, %v2918_v51 }
 0x4ac   : > { %v4103_v31 = vrot.slane %v4102_v24, 1  ;;  %v4107_v18 = vrot.slane %v4106_v5, 2  ;;  %v4111_v29 = vrot.slane %v4025_v47, 4  ;;  %v4010_v1 = vsub.f32 %v3882_v55, %v3994_v6 }
 0x4ad   : > { %v2825_v2 = vpop.xlane.xlu1 %2824  ;;  %v5709_v6 = vsel %vm5601_vm6, %v2943_v0, %v9598_v50 }
 0x4ae   : > { %v4104_v62 = vadd.f32 %v4103_v31, %v4102_v24  ;;  %v4108_v56 = vadd.f32 %v4107_v18, %v4106_v5  ;;  %v4112_v57 = vadd.f32 %v4111_v29, %v4025_v47  ;;  %v4026_v39 = vmul.f32 %v6571_v25, %v4010_v1 }
 0x4af   : > { %v2919_v60 = vrot.slane %v2825_v2, 4  ;;  %v5710_v5 = vsel %vm5603_vm7, %v2944_v44, %v5709_v6 }
 0x4b0   : > { %v4136_v45 = vmul.f32 0.125, %v4104_v62  ;;  %v4109_v40 = vrot.slane %v4108_v56, 1  ;;  %v4113_v9 = vrot.slane %v4112_v57, 2  ;;  %v4117_v35 = vrot.slane %v4026_v39, 4 }
 0x4b1   : > { %v2920_v48 = vadd.f32 %v2919_v60, %v2825_v2  ;;  %v2834_v53 = vpop.xlane.xlu1 %2833  ;;  %v5711_v47 = vsel %vm5605_vm8, %v2945_v43, %v5710_v5 }
 0x4b2   : > { %v4110_v30 = vadd.f32 %v4109_v40, %v4108_v56  ;;  %v4114_v52 = vadd.f32 %v4113_v9, %v4112_v57  ;;  %v4118_v4 = vadd.f32 %v4117_v35, %v4026_v39  ;;  %v2925_v15 = vrot.slane %v2834_v53, 4 }
 0x4b3   : > { %v2921_v46 = vrot.slane %v2920_v48, 2  ;;  %v5676_v20 = vsel %vm5603_vm7, %v4136_v45, %v5675_v36 }
 0x4b4   : > { %v4137_v33 = vmul.f32 0.125, %v4110_v30  ;;  %v4115_v21 = vrot.slane %v4114_v52, 1  ;;  %v4119_v37 = vrot.slane %v4118_v4, 2  ;;  %v2926_v34 = vadd.f32 %v2925_v15, %v2834_v53 }
 0x4b5   : > { %v2922_v11 = vadd.f32 %v2921_v46, %v2920_v48  ;;  %v5625_v17 = vpop.xlane.xlu1 %5624 }
 0x4b6   : > { %v4116_v49 = vadd.f32 %v4115_v21, %v4114_v52  ;;  %v4120_v41 = vadd.f32 %v4119_v37, %v4118_v4  ;;  %v2927_v27 = vrot.slane %v2926_v34, 2  ;;  %v5677_v19 = vsel %vm5605_vm8, %v4137_v33, %v5676_v20 }
 0x4b7   : > { %v2923_v28 = vrot.slane %v2922_v11, 1  ;;  %v5628_v54 = vmul.f32 0.015625, %v5625_v17 }
 0x4b8   : > { %v4138_v63 = vmul.f32 0.125, %v4116_v49  ;;  %v4121_v58 = vrot.slane %v4120_v41, 1  ;;  %v2928_v12 = vadd.f32 %v2927_v27, %v2926_v34 }
 0x4b9   : > { %v2924_v7 = vadd.f32 %v2923_v28, %v2922_v11  ;;  %v5649_v22 = vsel %vm5647_vm0, %v5628_v54, 0.0 }
 0x4ba   : > { %v4122_v59 = vadd.f32 %v4121_v58, %v4120_v41  ;;  %v2929_v3 = vrot.slane %v2928_v12, 1  ;;  %v5678_v61 = vsel %vm5607_vm9, %v4138_v63, %v5677_v19 }
 0x4bb   : > { %v2946_v42 = vmul.f32 0.00012207031, %v2924_v7 }
 0x4bc   : > { %v2930_v23 = vadd.f32 %v2929_v3, %v2928_v12  ;;  %v4139_v24 = vmul.f32 0.125, %v4122_v59 }
 0x4bd   : > { %v5712_v50 = vsel %vm5607_vm9, %v2946_v42, %v5711_v47 }
 0x4be   : > { %v2947_v55 = vmul.f32 0.00012207031, %v2930_v23  ;;  %v5679_v36 = vsel %vm5609_vm10, %v4139_v24, %v5678_v61 }
 0x4bf   : > { %v5683_v31 = vsel %vm5646_vm11, %v5679_v36, %v5649_v22 }
 0x4c0   : > { %v5713_v18 = vsel %vm5609_vm10, %v2947_v55, %v5712_v50 }
 0x4c1   : > { %v5717_v29 = vsel %vm5645_vm12, %v5713_v18, %v5683_v31 }
 0x4c2   : > { %5719 = vst [vmem:[%s9888_s7 + $0x8] sm:$0xff] %v5717_v29 }
 0x4c3   : > { %6793 = shalt.err (!%p6790_p5)
}
 0x4c4   : > { %s6794_s29 = scalar_lea.hbm %s9920_s23, 256  ;;  %s6798_s28 = scalar_lea.hbm %s9978_s11, 512 }
 0x4c5   : > { %p6795_p3 = scmp.ne.s32.totalorder %s9920_s23, %s6794_s29  ;;  %p6799_p6 = scmp.lt.s32.totalorder %s9920_s23, %s9978_s11 }
 0x4c6   : > { %p6800_p8 = scmp.lt.s32.totalorder %s6798_s28, %s6794_s29 }
 0x4c7   : > { %p6796_p10 = pnand %p6795_p3, %p10326_p1 }
 0x4c8   : > { %p6801_p9 = por %p6800_p8, %p6799_p6 }
 0x4c9   : > { %p6797_p4 = pneg %p6796_p10 }
 0x4cb   : > { %p6802_p11 = pnand %p6801_p9, %p6797_p4 }
 0x4cd   : > { %6805 = shalt.err (!%p6802_p11)
}
 0x4ce   : > { %s6861_s21 = smov 128   ;;  %s6862_s13 = smov 8  }
 0x4cf   : > { %6248 = dma.vmem_to_hbm [thread:$0]  (%p10326_p1), %s9909_s25, 256, %s9920_s23, %s5726_s16, %s6861_s21, %s6861_s21, %s6862_s13  }
 0x4d0 PF: > { %s5766_s15 = sand.u32 1, %s6836_s17   ;;  %p10327_p2 = scmp.ne.s32.totalorder %s10069_s24, 0 }
 0x4d1   : > { %p10328_p12 = scmp.ge.s32.totalorder %s6848_s20, 2  ;;  %s5767_s26 = scalar_lea.sflag [#allocation4], %s5766_s15 }
 0x4d3   : > { %p6262_p7 = pnand %p10328_p12, %p10327_p2 }
 0x4d5   : > { %p6263_p13 = pneg %p6262_p7 }
 0x4d7   : > { %6831 = dma.done.wait (%p6263_p13), %s5767_s26, 256  }
 0x4d8   : > { %6833 = vsyncadd (%p6263_p13), %s5767_s26, 4294967040  ;;  %s10329_s20 = sld [smem:[#allocation13_spill]]  ;;  %s10332_s17 = smov %s6840_s18 }
 0x4d9   : > { %s10330_s30 = sld [smem:[#allocation12_spill]] }
 0x4da   : > { %s10331_s19 = sld [smem:[#allocation14_spill]] }
 0x4de   : > { %p26_p0 = scmp.ge.s32.totalorder %s10329_s20, 4  }
 0x4df   : > { %s10333_s18 = smov %s10330_s30 }
 0x4e0   :  { %28 = sbr.rel (!%p26_p0) target bundleno = 9 (0x9), region = 131 }
 0x4e5   :  { %5772 = vsyncpa [#allocation3], 1 }
 0x4e6   :  { %5774 = vsyncpa [#allocation3 + $0x1], 1 }
 0x4e7   :  { %5775 = vsyncpa [#allocation6], 1 }
 0x4e8   :  { %5776 = vsyncpa [#allocation4], 1 }
 0x4e9   :  { %5778 = vsyncpa [#allocation4 + $0x1], 1 }

</bundles_post_ra>
